<compile_context>
chip_gen: v7x
topology: tpu7x:2x2x1
jax: 0.10.0
libtpu: 0.0.40
codegen_flags: <defaults>
</compile_context>

<pallas_src>
import functools
import math

import jax
import jax.numpy as jnp
from jax.experimental import pallas as pl
from jax.experimental.pallas import tpu as pltpu

EPS = 1e-5                                   # PyTorch default eps (InstanceNorm1d / BatchNorm1d)
C1_K, C1_S, C1_P, C1_OUT = 64, 16, 24, 16    # conv1 kernel / stride / padding / out-channels
CONV3_CFGS = [(16, 32, 1), (32, 64, 1), (64, 64, 1), (64, 64, 0)]  # (C_in, C_out, pad) conv2..5
GUARD = 8                                    # sublane-aligned guard band in the conv scratch


# ---------------- in-kernel math helpers ----------------

def _erf(x):
    # Abramowitz & Stegun 7.1.26 (max abs err ~1.5e-7); the divide is an
    # approximate EUP reciprocal so the long VALU chain loses the divide.
    a1, a2, a3, a4, a5 = 0.254829592, -0.284496736, 1.421413741, -1.453152027, 1.061405429
    p = 0.3275911
    s = jnp.where(x >= 0.0, 1.0, -1.0)
    ax = jnp.abs(x)
    t = pl.reciprocal(1.0 + p * ax, approx=True)
    poly = ((((a5 * t + a4) * t + a3) * t + a2) * t + a1) * t
    return s * (1.0 - poly * jnp.exp(-ax * ax))


def _gelu_exact(x):
    return 0.5 * x * (1.0 + _erf(x * (1.0 / math.sqrt(2.0))))


def _inorm_gelu_pool(y2, bt, l, c):
    """InstanceNorm1d(affine=False) + GELU + MaxPool1d(2,2) on batch-folded rows.

    y2: (bt*l, c) conv output, rows grouped by sample.  Returns (bt, l//2, c).
    """
    y = y2.reshape(bt, l, c)
    inv_l = 1.0 / float(l)
    mean = jnp.sum(y, axis=1, keepdims=True) * inv_l           # one-pass stats:
    msq = jnp.sum(y * y, axis=1, keepdims=True) * inv_l        # two independent reduces
    var = msq - mean * mean                                    # biased variance (PyTorch)
    y = (y - mean) * jax.lax.rsqrt(var + EPS)
    y = _gelu_exact(y)
    p = l // 2
    y = y[:, : 2 * p, :].reshape(bt, p, 2, c)                  # floor semantics, last dim unchanged
    return jnp.max(y, axis=2)                                  # (bt, p, c)


def _conv3(act, w_ref, s_ref, *, bt, l_in, c_in, c_out, pad):
    """k=3, stride=1 Conv1d as ONE matmul with K=3*c_in.

    act:   (bt, l_in, c_in) channels-last activation value
    w_ref: (3*c_in, c_out) flattened weight, tap-major / channel-minor
    s_ref: (bt, l_in + 2*GUARD, c_in) scratch; activation stored at row GUARD
    Returns ((bt*l_out, c_out) folded conv output, l_out).
    """
    l_out = l_in + 2 * pad - 2
    if pad == 1:
        # zero ONLY the guard bands the shifted windows read (aligned 8-row stores)
        z = jnp.zeros((bt, GUARD, c_in), jnp.float32)
        s_ref[:, 0:GUARD, :] = z
        s_ref[:, GUARD + l_in:GUARD + l_in + GUARD, :] = z
    s_ref[:, GUARD:GUARD + l_in, :] = act                      # sublane-aligned store
    wins = [s_ref[:, GUARD + t - pad: GUARD + t - pad + l_out, :] for t in range(3)]
    cols = jnp.concatenate(wins, axis=-1)                      # (bt, l_out, 3*c_in)
    acc = jnp.dot(cols.reshape(bt * l_out, 3 * c_in), w_ref[...],
                  preferred_element_type=jnp.float32)
    return acc, l_out


# ---------------- the kernels ----------------

def _trunk_kernel(xc_ref, w1_ref, w2_ref, w3_ref, w4_ref, w5_ref, wl_ref,
                  y_ref, s2, s3, s4, s5, *, bt, l1):
    # conv1: single fused-tap matmul (K = 64*cin), batch folded into M
    k1 = xc_ref.shape[-1]
    acc = jnp.dot(xc_ref[...].reshape(bt * l1, k1), w1_ref[...],
                  preferred_element_type=jnp.float32)
    act = _inorm_gelu_pool(acc, bt, l1, C1_OUT)                # (bt, l1//2, 16)
    l = l1 // 2

    # conv2 .. conv5 (+ IN + GELU + pool), one MXU dot each
    for (c_in, c_out, pad), w_ref, s_ref in zip(
            CONV3_CFGS, (w2_ref, w3_ref, w4_ref, w5_ref), (s2, s3, s4, s5)):
        acc, l_out = _conv3(act, w_ref, s_ref, bt=bt, l_in=l, c_in=c_in,
                            c_out=c_out, pad=pad)
        act = _inorm_gelu_pool(acc, bt, l_out, c_out)
        l = l_out // 2

    # head Linear(bias=False); BN+ReLU happen in the follow-up batch-wide call.
    # wl rows were pre-ordered (length-major / channel-minor) so torch.flatten's
    # channel-major order is already folded into the weight.
    c_last = CONV3_CFGS[-1][1]
    y = None
    for li in range(l):                                        # l == final length (1 here)
        term = jnp.dot(act[:, li, :], wl_ref[li * c_last:(li + 1) * c_last, :],
                       preferred_element_type=jnp.float32)
        y = term if y is None else y + term
    y_ref[...] = y[None, :, :]


def _bn_relu_kernel(y_ref, o_ref):
    # BatchNorm1d(affine=False) with train-mode (batch) statistics + ReLU
    y = y_ref[...]
    inv_n = 1.0 / float(y.shape[0])
    mean = jnp.sum(y, axis=0, keepdims=True) * inv_n
    msq = jnp.sum(y * y, axis=0, keepdims=True) * inv_n
    var = msq - mean * mean                                    # biased (train-mode BN)
    o_ref[...] = jnp.maximum((y - mean) * jax.lax.rsqrt(var + EPS), 0.0)


# ---------------- wrapper / params ----------------

def linear_input_size(input_size):
    # mirrors Net.get_linear_input_size()
    l = (input_size + 2 * C1_P - C1_K) // C1_S + 1
    l //= 2
    for _, _, pad in CONV3_CFGS:
        l = (l + 2 * pad - 2) // 2
    return CONV3_CFGS[-1][1] * l


def init_params(key, input_size, latent, in_channels):
    shapes = [(C1_OUT, in_channels, C1_K)] + [(co, ci, 3) for ci, co, _ in CONV3_CFGS]
    keys = jax.random.split(key, len(shapes) + 1)
    conv_ws = [jax.random.normal(k, s, jnp.float32) * 0.1 for k, s in zip(keys[:-1], shapes)]
    feat = linear_input_size(input_size)
    w_lin = jax.random.normal(keys[-1], (latent, feat), jnp.float32) * 0.1   # PyTorch (out, in)
    return {"conv_ws": conv_ws, "w_lin": w_lin}


def prepare_params(raw):
    """One-time weight re-layout (hoisted out of the per-call path)."""
    def conv_mat(w):  # (C_out, C_in, k) -> (k*C_in, C_out), tap-major / channel-minor
        return jnp.transpose(w, (2, 1, 0)).reshape(-1, w.shape[0])

    mats = {f"w{i + 1}": conv_mat(w) for i, w in enumerate(raw["conv_ws"])}
    latent, feat = raw["w_lin"].shape
    c_last = CONV3_CFGS[-1][1]
    lf = feat // c_last
    # Fold torch.flatten's channel-major order on (B, C, L), plus the linear
    # transpose, into the weight: the kernel flattens length-major / channel-minor.
    wl = raw["w_lin"].reshape(latent, c_last, lf)
    mats["wl"] = jnp.transpose(wl, (2, 1, 0)).reshape(feat, latent)
    return mats


def _pick_batch_tile(b):
    for d in (8, 4, 2, 1):
        if b % d == 0 and b // d >= 2:
            return d
    return b


def net_forward(x, prepared, *, in_channels, batch_tile=None):
    b = x.shape[0]
    x = x.reshape(b, in_channels, -1).astype(jnp.float32)       # as in Net.forward
    l0 = x.shape[-1]
    total = l0 + 2 * C1_P
    l1 = (total - C1_K) // C1_S + 1
    assert l1 >= 1

    # conv1 im2col (one-time layout work in the wrapper): channels-last, zero pad,
    # stride-16 block, then 4 block-taps concatenated -> (b, l1, 64*cin).
    xc = jnp.transpose(x, (0, 2, 1))                            # (b, l0, cin)
    ntaps = C1_K // C1_S                                        # 4
    nb = max(l1 + ntaps - 1, -(-total // C1_S))
    xp = jnp.pad(xc, ((0, 0), (C1_P, C1_P + nb * C1_S - total), (0, 0)))
    xb = xp.reshape(b, nb, C1_S * in_channels)
    xcols = jnp.concatenate([xb[:, j:j + l1, :] for j in range(ntaps)], axis=-1)
    k1 = C1_K * in_channels

    latent = prepared["wl"].shape[1]

    # static per-layer input lengths for the k=3 convs (scratch sizing)
    lens_in, l = [], l1 // 2
    for ci, co, pad in CONV3_CFGS:
        lens_in.append(l)
        l = (l + 2 * pad - 2) // 2
    feat = CONV3_CFGS[-1][1] * l
    assert prepared["wl"].shape[0] == feat

    bt = batch_tile if batch_tile is not None else _pick_batch_tile(b)
    assert b % bt == 0
    gsteps = b // bt

    in_arrays = [xcols, prepared["w1"], prepared["w2"], prepared["w3"],
                 prepared["w4"], prepared["w5"], prepared["wl"]]

    def whole(shape):                                           # resident full-array block
        zeros = (0,) * len(shape)
        return pl.BlockSpec(shape, lambda i, _z=zeros: _z)

    in_specs = [pl.BlockSpec((bt, l1, k1), lambda i: (i, 0, 0))]
    in_specs += [whole(a.shape) for a in in_arrays[1:]]
    out_spec = pl.BlockSpec((1, bt, latent), lambda i: (i, 0, 0))

    scratch_shapes = [pltpu.VMEM((bt, li + 2 * GUARD, ci), jnp.float32)
                      for li, (ci, _, _) in zip(lens_in, CONV3_CFGS)]

    # advisory cost so XLA schedules the tiny custom calls sanely
    flops = 2 * b * l1 * k1 * C1_OUT + 2 * b * feat * latent
    trans = b * l1 * C1_OUT
    lcur = l1 // 2
    for ci, co, pad in CONV3_CFGS:
        lo = lcur + 2 * pad - 2
        flops += 2 * b * lo * (3 * ci) * co
        trans += b * lo * co
        lcur = lo // 2
    bytes_accessed = 4 * (sum(int(math.prod(a.shape)) for a in in_arrays) + b * latent)

    kernel = functools.partial(_trunk_kernel, bt=bt, l1=l1)
    y_pre = pl.pallas_call(
        kernel,
        out_shape=jax.ShapeDtypeStruct((gsteps, bt, latent), jnp.float32),
        grid=(gsteps,),
        in_specs=in_specs,
        out_specs=out_spec,
        scratch_shapes=scratch_shapes,
        compiler_params=pltpu.CompilerParams(dimension_semantics=("parallel",)),
        cost_estimate=pl.CostEstimate(flops=flops, transcendentals=trans,
                                      bytes_accessed=bytes_accessed),
    )(*in_arrays)
    y_pre = y_pre.reshape(b, latent)

    # Cross-batch BatchNorm1d(affine=False, train-mode stats) + ReLU needs all samples:
    # tiny follow-up call on the whole (b, latent) tensor.
    return pl.pallas_call(
        _bn_relu_kernel,
        out_shape=jax.ShapeDtypeStruct((b, latent), jnp.float32),
    )(y_pre)


if __name__ == "__main__":
    B, IN_CH, INPUT_SIZE, LATENT = 2, 1, 1024, 32

    key = jax.random.PRNGKey(0)
    kx, kp = jax.random.split(key)
    x = jax.random.normal(kx, (B, IN_CH, INPUT_SIZE), jnp.float32)
    raw_params = init_params(kp, INPUT_SIZE, LATENT, IN_CH)
    prepared = prepare_params(raw_params)      # hoisted weight re-layouts (done once)

    fwd = jax.jit(functools.partial(net_forward, in_channels=IN_CH))
    out = fwd(x, prepared)
    jax.block_until_ready(out)

    assert out.shape == (B, LATENT), out.shape
    assert bool(jnp.all(jnp.isfinite(out)))
    print("KERNEL_OK")
</pallas_src>

<mosaic_0001>
module attributes {stable_mosaic.version = 11 : i64} {
  func.func @_bn_relu_kernel(%arg0: memref<2x32xf32, #tpu.memory_space<vmem>>, %arg1: memref<2x32xf32, #tpu.memory_space<vmem>>) attributes {dimension_semantics = [], scalar_prefetch = 0 : i64, scratch_operands = 0 : i64, tpu.core_type = #tpu.core_type<tc>} {
    %c0 = arith.constant 0 : index
    %c0_0 = arith.constant 0 : index
    %0 = vector.load %arg0[%c0, %c0_0] : memref<2x32xf32, #tpu.memory_space<vmem>>, vector<2x32xf32>
    %cst = arith.constant dense<0.000000e+00> : vector<32xf32>
    %1 = vector.multi_reduction <add>, %0, %cst [0] : vector<2x32xf32> to vector<32xf32>
    %2 = vector.shape_cast %1 : vector<32xf32> to vector<1x32xf32>
    %cst_1 = arith.constant 5.000000e-01 : f32
    %3 = vector.broadcast %cst_1 : f32 to vector<1x32xf32>
    %4 = arith.mulf %2, %3 : vector<1x32xf32>
    %5 = arith.mulf %0, %0 : vector<2x32xf32>
    %cst_2 = arith.constant dense<0.000000e+00> : vector<32xf32>
    %6 = vector.multi_reduction <add>, %5, %cst_2 [0] : vector<2x32xf32> to vector<32xf32>
    %7 = vector.shape_cast %6 : vector<32xf32> to vector<1x32xf32>
    %cst_3 = arith.constant 5.000000e-01 : f32
    %8 = vector.broadcast %cst_3 : f32 to vector<1x32xf32>
    %9 = arith.mulf %7, %8 : vector<1x32xf32>
    %10 = arith.mulf %4, %4 : vector<1x32xf32>
    %11 = arith.subf %9, %10 : vector<1x32xf32>
    %12 = vector.broadcast %4 : vector<1x32xf32> to vector<2x32xf32>
    %13 = arith.subf %0, %12 : vector<2x32xf32>
    %cst_4 = arith.constant 9.99999974E-6 : f32
    %14 = vector.broadcast %cst_4 : f32 to vector<1x32xf32>
    %15 = arith.addf %11, %14 : vector<1x32xf32>
    %16 = math.rsqrt %15 : vector<1x32xf32>
    %17 = vector.broadcast %16 : vector<1x32xf32> to vector<2x32xf32>
    %18 = arith.mulf %13, %17 : vector<2x32xf32>
    %cst_5 = arith.constant 0.000000e+00 : f32
    %19 = vector.broadcast %cst_5 : f32 to vector<2x32xf32>
    %20 = arith.maximumf %18, %19 : vector<2x32xf32>
    %c0_6 = arith.constant 0 : index
    %c0_7 = arith.constant 0 : index
    %21 = vector.load %arg1[%c0_6, %c0_7] : memref<2x32xf32, #tpu.memory_space<vmem>>, vector<2x32xf32>
    tpu.vector_store %arg1[%c0_6, %c0_7], %20 {strides = array<i32>} : memref<2x32xf32, #tpu.memory_space<vmem>>, vector<2x32xf32>,
    return
  }
}

module attributes {stable_mosaic.version = 11 : i64} {
  func.func @_trunk_kernel(%arg0: i32, %arg1: memref<1x64x64xf32, #tpu.memory_space<vmem>>, %arg2: memref<64x16xf32, #tpu.memory_space<vmem>>, %arg3: memref<48x32xf32, #tpu.memory_space<vmem>>, %arg4: memref<96x64xf32, #tpu.memory_space<vmem>>, %arg5: memref<192x64xf32, #tpu.memory_space<vmem>>, %arg6: memref<192x64xf32, #tpu.memory_space<vmem>>, %arg7: memref<64x32xf32, #tpu.memory_space<vmem>>, %arg8: memref<1x1x32xf32, #tpu.memory_space<vmem>>, %arg9: memref<1x48x16xf32, #tpu.memory_space<vmem>>, %arg10: memref<1x32x32xf32, #tpu.memory_space<vmem>>, %arg11: memref<1x24x64xf32, #tpu.memory_space<vmem>>, %arg12: memref<1x20x64xf32, #tpu.memory_space<vmem>>) attributes {dimension_semantics = [#tpu.dimension_semantics<parallel>], iteration_bounds = array<i64: 2>, scalar_prefetch = 0 : i64, scratch_operands = 4 : i64, tpu.core_type = #tpu.core_type<tc>, window_params = [{transform_indices = @transform_0, window_bounds = array<i64: 1, 64, 64>}, {pipeline_mode = #tpu.pipeline_mode<synchronous>, transform_indices = @transform_1, window_bounds = array<i64: 64, 16>}, {pipeline_mode = #tpu.pipeline_mode<synchronous>, transform_indices = @transform_2, window_bounds = array<i64: 48, 32>}, {pipeline_mode = #tpu.pipeline_mode<synchronous>, transform_indices = @transform_3, window_bounds = array<i64: 96, 64>}, {pipeline_mode = #tpu.pipeline_mode<synchronous>, transform_indices = @transform_4, window_bounds = array<i64: 192, 64>}, {pipeline_mode = #tpu.pipeline_mode<synchronous>, transform_indices = @transform_5, window_bounds = array<i64: 192, 64>}, {pipeline_mode = #tpu.pipeline_mode<synchronous>, transform_indices = @transform_6, window_bounds = array<i64: 64, 32>}, {transform_indices = @transform_7, window_bounds = array<i64: 1, 1, 32>}]} {
    %c0 = arith.constant 0 : index
    %c0_0 = arith.constant 0 : index
    %c0_1 = arith.constant 0 : index
    %0 = vector.load %arg1[%c0, %c0_0, %c0_1] : memref<1x64x64xf32, #tpu.memory_space<vmem>>, vector<1x64x64xf32>
    %1 = vector.shape_cast %0 : vector<1x64x64xf32> to vector<64x64xf32>
    %c0_2 = arith.constant 0 : index
    %c0_3 = arith.constant 0 : index
    %2 = vector.load %arg2[%c0_2, %c0_3] : memref<64x16xf32, #tpu.memory_space<vmem>>, vector<64x16xf32>
    %cst = arith.constant dense<0.000000e+00> : vector<64x16xf32>
    %3 = tpu.matmul %1, %2, %cst {dimension_numbers = #tpu.dot_dimension_numbers<[1], [0], [0], [1], [0, 0, 1, 1], [], []>} : vector<64x64xf32>, vector<64x16xf32>, vector<64x16xf32> -> vector<64x16xf32>
    %4 = vector.shape_cast %3 : vector<64x16xf32> to vector<1x64x16xf32>
    %cst_4 = arith.constant dense<0.000000e+00> : vector<1x16xf32>
    %5 = vector.multi_reduction <add>, %4, %cst_4 [1] : vector<1x64x16xf32> to vector<1x16xf32>
    %6 = vector.shape_cast %5 : vector<1x16xf32> to vector<1x1x16xf32>
    %cst_5 = arith.constant 1.562500e-02 : f32
    %7 = vector.broadcast %cst_5 : f32 to vector<1x1x16xf32>
    %8 = arith.mulf %6, %7 : vector<1x1x16xf32>
    %9 = arith.mulf %4, %4 : vector<1x64x16xf32>
    %cst_6 = arith.constant dense<0.000000e+00> : vector<1x16xf32>
    %10 = vector.multi_reduction <add>, %9, %cst_6 [1] : vector<1x64x16xf32> to vector<1x16xf32>
    %11 = vector.shape_cast %10 : vector<1x16xf32> to vector<1x1x16xf32>
    %cst_7 = arith.constant 1.562500e-02 : f32
    %12 = vector.broadcast %cst_7 : f32 to vector<1x1x16xf32>
    %13 = arith.mulf %11, %12 : vector<1x1x16xf32>
    %14 = arith.mulf %8, %8 : vector<1x1x16xf32>
    %15 = arith.subf %13, %14 : vector<1x1x16xf32>
    %16 = vector.broadcast %8 : vector<1x1x16xf32> to vector<1x64x16xf32>
    %17 = arith.subf %4, %16 : vector<1x64x16xf32>
    %cst_8 = arith.constant 9.99999974E-6 : f32
    %18 = vector.broadcast %cst_8 : f32 to vector<1x1x16xf32>
    %19 = arith.addf %15, %18 : vector<1x1x16xf32>
    %20 = math.rsqrt %19 : vector<1x1x16xf32>
    %21 = vector.broadcast %20 : vector<1x1x16xf32> to vector<1x64x16xf32>
    %22 = arith.mulf %17, %21 : vector<1x64x16xf32>
    %cst_9 = arith.constant 5.000000e-01 : f32
    %23 = vector.broadcast %cst_9 : f32 to vector<1x64x16xf32>
    %24 = arith.mulf %23, %22 : vector<1x64x16xf32>
    %cst_10 = arith.constant 0.707106769 : f32
    %25 = vector.broadcast %cst_10 : f32 to vector<1x64x16xf32>
    %26 = arith.mulf %22, %25 : vector<1x64x16xf32>
    %cst_11 = arith.constant 0.000000e+00 : f32
    %27 = vector.broadcast %cst_11 : f32 to vector<1x64x16xf32>
    %28 = arith.cmpf oge, %26, %27 : vector<1x64x16xf32>
    %cst_12 = arith.constant 1.000000e+00 : f32
    %cst_13 = arith.constant -1.000000e+00 : f32
    %29 = vector.broadcast %cst_12 : f32 to vector<1x64x16xf32>
    %30 = vector.broadcast %cst_13 : f32 to vector<1x64x16xf32>
    %31 = arith.select %28, %29, %30 : vector<1x64x16xi1>, vector<1x64x16xf32>
    %32 = math.absf %26 : vector<1x64x16xf32>
    %cst_14 = arith.constant 0.327591091 : f32
    %33 = vector.broadcast %cst_14 : f32 to vector<1x64x16xf32>
    %34 = arith.mulf %33, %32 : vector<1x64x16xf32>
    %cst_15 = arith.constant 1.000000e+00 : f32
    %35 = vector.broadcast %cst_15 : f32 to vector<1x64x16xf32>
    %36 = arith.addf %35, %34 : vector<1x64x16xf32>
    %37 = tpu.reciprocal %36 {approx = true} : vector<1x64x16xf32> -> vector<1x64x16xf32>
    %cst_16 = arith.constant 1.06140542 : f32
    %38 = vector.broadcast %cst_16 : f32 to vector<1x64x16xf32>
    %39 = arith.mulf %38, %37 : vector<1x64x16xf32>
    %cst_17 = arith.constant -1.45315206 : f32
    %40 = vector.broadcast %cst_17 : f32 to vector<1x64x16xf32>
    %41 = arith.addf %39, %40 : vector<1x64x16xf32>
    %42 = arith.mulf %41, %37 : vector<1x64x16xf32>
    %cst_18 = arith.constant 1.42141378 : f32
    %43 = vector.broadcast %cst_18 : f32 to vector<1x64x16xf32>
    %44 = arith.addf %42, %43 : vector<1x64x16xf32>
    %45 = arith.mulf %44, %37 : vector<1x64x16xf32>
    %cst_19 = arith.constant -0.284496725 : f32
    %46 = vector.broadcast %cst_19 : f32 to vector<1x64x16xf32>
    %47 = arith.addf %45, %46 : vector<1x64x16xf32>
    %48 = arith.mulf %47, %37 : vector<1x64x16xf32>
    %cst_20 = arith.constant 0.254829586 : f32
    %49 = vector.broadcast %cst_20 : f32 to vector<1x64x16xf32>
    %50 = arith.addf %48, %49 : vector<1x64x16xf32>
    %51 = arith.mulf %50, %37 : vector<1x64x16xf32>
    %cst_21 = arith.constant 0.000000e+00 : f32
    %52 = vector.broadcast %cst_21 : f32 to vector<1x64x16xf32>
    %53 = arith.subf %52, %32 : vector<1x64x16xf32>
    %54 = arith.mulf %53, %32 : vector<1x64x16xf32>
    %55 = math.exp %54 : vector<1x64x16xf32>
    %56 = arith.mulf %51, %55 : vector<1x64x16xf32>
    %cst_22 = arith.constant 1.000000e+00 : f32
    %57 = vector.broadcast %cst_22 : f32 to vector<1x64x16xf32>
    %58 = arith.subf %57, %56 : vector<1x64x16xf32>
    %59 = arith.mulf %31, %58 : vector<1x64x16xf32>
    %cst_23 = arith.constant 1.000000e+00 : f32
    %60 = vector.broadcast %cst_23 : f32 to vector<1x64x16xf32>
    %61 = arith.addf %60, %59 : vector<1x64x16xf32>
    %62 = arith.mulf %24, %61 : vector<1x64x16xf32>
    %63 = vector.shape_cast %62 : vector<1x64x16xf32> to vector<1x32x2x16xf32>
    %cst_24 = arith.constant dense<0xFF800000> : vector<1x32x16xf32>
    %64 = vector.multi_reduction <maximumf>, %63, %cst_24 [2] : vector<1x32x2x16xf32> to vector<1x32x16xf32>
    %cst_25 = arith.constant 0.000000e+00 : f32
    %65 = vector.broadcast %cst_25 : f32 to vector<1x8x16xf32>
    %c0_26 = arith.constant 0 : index
    %c0_27 = arith.constant 0 : index
    %c0_28 = arith.constant 0 : index
    %66 = vector.load %arg9[%c0_26, %c0_27, %c0_28] : memref<1x48x16xf32, #tpu.memory_space<vmem>>, vector<1x8x16xf32>
    tpu.vector_store %arg9[%c0_26, %c0_27, %c0_28], %65 {strides = array<i32>} : memref<1x48x16xf32, #tpu.memory_space<vmem>>, vector<1x8x16xf32>,
    %c0_29 = arith.constant 0 : index
    %c40 = arith.constant 40 : index
    %c0_30 = arith.constant 0 : index
    %67 = vector.load %arg9[%c0_29, %c40, %c0_30] : memref<1x48x16xf32, #tpu.memory_space<vmem>>, vector<1x8x16xf32>
    tpu.vector_store %arg9[%c0_29, %c40, %c0_30], %65 {strides = array<i32>} : memref<1x48x16xf32, #tpu.memory_space<vmem>>, vector<1x8x16xf32>,
    %c0_31 = arith.constant 0 : index
    %c8 = arith.constant 8 : index
    %c0_32 = arith.constant 0 : index
    %68 = vector.load %arg9[%c0_31, %c8, %c0_32] : memref<1x48x16xf32, #tpu.memory_space<vmem>>, vector<1x32x16xf32>
    tpu.vector_store %arg9[%c0_31, %c8, %c0_32], %64 {strides = array<i32>} : memref<1x48x16xf32, #tpu.memory_space<vmem>>, vector<1x32x16xf32>,
    %c0_33 = arith.constant 0 : index
    %c7 = arith.constant 7 : index
    %c0_34 = arith.constant 0 : index
    %69 = vector.load %arg9[%c0_33, %c7, %c0_34] : memref<1x48x16xf32, #tpu.memory_space<vmem>>, vector<1x32x16xf32>
    %c0_35 = arith.constant 0 : index
    %c8_36 = arith.constant 8 : index
    %c0_37 = arith.constant 0 : index
    %70 = vector.load %arg9[%c0_35, %c8_36, %c0_37] : memref<1x48x16xf32, #tpu.memory_space<vmem>>, vector<1x32x16xf32>
    %c0_38 = arith.constant 0 : index
    %c9 = arith.constant 9 : index
    %c0_39 = arith.constant 0 : index
    %71 = vector.load %arg9[%c0_38, %c9, %c0_39] : memref<1x48x16xf32, #tpu.memory_space<vmem>>, vector<1x32x16xf32>
    %72 = tpu.concatenate %69, %70, %71 in 2 : vector<1x32x16xf32>, vector<1x32x16xf32>, vector<1x32x16xf32> -> vector<1x32x48xf32>
    %73 = vector.shape_cast %72 : vector<1x32x48xf32> to vector<32x48xf32>
    %c0_40 = arith.constant 0 : index
    %c0_41 = arith.constant 0 : index
    %74 = vector.load %arg3[%c0_40, %c0_41] : memref<48x32xf32, #tpu.memory_space<vmem>>, vector<48x32xf32>
    %cst_42 = arith.constant dense<0.000000e+00> : vector<32x32xf32>
    %75 = tpu.matmul %73, %74, %cst_42 {dimension_numbers = #tpu.dot_dimension_numbers<[1], [0], [0], [1], [0, 0, 1, 1], [], []>} : vector<32x48xf32>, vector<48x32xf32>, vector<32x32xf32> -> vector<32x32xf32>
    %76 = vector.shape_cast %75 : vector<32x32xf32> to vector<1x32x32xf32>
    %cst_43 = arith.constant dense<0.000000e+00> : vector<1x32xf32>
    %77 = vector.multi_reduction <add>, %76, %cst_43 [1] : vector<1x32x32xf32> to vector<1x32xf32>
    %78 = vector.shape_cast %77 : vector<1x32xf32> to vector<1x1x32xf32>
    %cst_44 = arith.constant 3.125000e-02 : f32
    %79 = vector.broadcast %cst_44 : f32 to vector<1x1x32xf32>
    %80 = arith.mulf %78, %79 : vector<1x1x32xf32>
    %81 = arith.mulf %76, %76 : vector<1x32x32xf32>
    %cst_45 = arith.constant dense<0.000000e+00> : vector<1x32xf32>
    %82 = vector.multi_reduction <add>, %81, %cst_45 [1] : vector<1x32x32xf32> to vector<1x32xf32>
    %83 = vector.shape_cast %82 : vector<1x32xf32> to vector<1x1x32xf32>
    %cst_46 = arith.constant 3.125000e-02 : f32
    %84 = vector.broadcast %cst_46 : f32 to vector<1x1x32xf32>
    %85 = arith.mulf %83, %84 : vector<1x1x32xf32>
    %86 = arith.mulf %80, %80 : vector<1x1x32xf32>
    %87 = arith.subf %85, %86 : vector<1x1x32xf32>
    %88 = vector.broadcast %80 : vector<1x1x32xf32> to vector<1x32x32xf32>
    %89 = arith.subf %76, %88 : vector<1x32x32xf32>
    %cst_47 = arith.constant 9.99999974E-6 : f32
    %90 = vector.broadcast %cst_47 : f32 to vector<1x1x32xf32>
    %91 = arith.addf %87, %90 : vector<1x1x32xf32>
    %92 = math.rsqrt %91 : vector<1x1x32xf32>
    %93 = vector.broadcast %92 : vector<1x1x32xf32> to vector<1x32x32xf32>
    %94 = arith.mulf %89, %93 : vector<1x32x32xf32>
    %cst_48 = arith.constant 5.000000e-01 : f32
    %95 = vector.broadcast %cst_48 : f32 to vector<1x32x32xf32>
    %96 = arith.mulf %95, %94 : vector<1x32x32xf32>
    %cst_49 = arith.constant 0.707106769 : f32
    %97 = vector.broadcast %cst_49 : f32 to vector<1x32x32xf32>
    %98 = arith.mulf %94, %97 : vector<1x32x32xf32>
    %cst_50 = arith.constant 0.000000e+00 : f32
    %99 = vector.broadcast %cst_50 : f32 to vector<1x32x32xf32>
    %100 = arith.cmpf oge, %98, %99 : vector<1x32x32xf32>
    %cst_51 = arith.constant 1.000000e+00 : f32
    %cst_52 = arith.constant -1.000000e+00 : f32
    %101 = vector.broadcast %cst_51 : f32 to vector<1x32x32xf32>
    %102 = vector.broadcast %cst_52 : f32 to vector<1x32x32xf32>
    %103 = arith.select %100, %101, %102 : vector<1x32x32xi1>, vector<1x32x32xf32>
    %104 = math.absf %98 : vector<1x32x32xf32>
    %cst_53 = arith.constant 0.327591091 : f32
    %105 = vector.broadcast %cst_53 : f32 to vector<1x32x32xf32>
    %106 = arith.mulf %105, %104 : vector<1x32x32xf32>
    %cst_54 = arith.constant 1.000000e+00 : f32
    %107 = vector.broadcast %cst_54 : f32 to vector<1x32x32xf32>
    %108 = arith.addf %107, %106 : vector<1x32x32xf32>
    %109 = tpu.reciprocal %108 {approx = true} : vector<1x32x32xf32> -> vector<1x32x32xf32>
    %cst_55 = arith.constant 1.06140542 : f32
    %110 = vector.broadcast %cst_55 : f32 to vector<1x32x32xf32>
    %111 = arith.mulf %110, %109 : vector<1x32x32xf32>
    %cst_56 = arith.constant -1.45315206 : f32
    %112 = vector.broadcast %cst_56 : f32 to vector<1x32x32xf32>
    %113 = arith.addf %111, %112 : vector<1x32x32xf32>
    %114 = arith.mulf %113, %109 : vector<1x32x32xf32>
    %cst_57 = arith.constant 1.42141378 : f32
    %115 = vector.broadcast %cst_57 : f32 to vector<1x32x32xf32>
    %116 = arith.addf %114, %115 : vector<1x32x32xf32>
    %117 = arith.mulf %116, %109 : vector<1x32x32xf32>
    %cst_58 = arith.constant -0.284496725 : f32
    %118 = vector.broadcast %cst_58 : f32 to vector<1x32x32xf32>
    %119 = arith.addf %117, %118 : vector<1x32x32xf32>
    %120 = arith.mulf %119, %109 : vector<1x32x32xf32>
    %cst_59 = arith.constant 0.254829586 : f32
    %121 = vector.broadcast %cst_59 : f32 to vector<1x32x32xf32>
    %122 = arith.addf %120, %121 : vector<1x32x32xf32>
    %123 = arith.mulf %122, %109 : vector<1x32x32xf32>
    %cst_60 = arith.constant 0.000000e+00 : f32
    %124 = vector.broadcast %cst_60 : f32 to vector<1x32x32xf32>
    %125 = arith.subf %124, %104 : vector<1x32x32xf32>
    %126 = arith.mulf %125, %104 : vector<1x32x32xf32>
    %127 = math.exp %126 : vector<1x32x32xf32>
    %128 = arith.mulf %123, %127 : vector<1x32x32xf32>
    %cst_61 = arith.constant 1.000000e+00 : f32
    %129 = vector.broadcast %cst_61 : f32 to vector<1x32x32xf32>
    %130 = arith.subf %129, %128 : vector<1x32x32xf32>
    %131 = arith.mulf %103, %130 : vector<1x32x32xf32>
    %cst_62 = arith.constant 1.000000e+00 : f32
    %132 = vector.broadcast %cst_62 : f32 to vector<1x32x32xf32>
    %133 = arith.addf %132, %131 : vector<1x32x32xf32>
    %134 = arith.mulf %96, %133 : vector<1x32x32xf32>
    %135 = vector.shape_cast %134 : vector<1x32x32xf32> to vector<1x16x2x32xf32>
    %cst_63 = arith.constant dense<0xFF800000> : vector<1x16x32xf32>
    %136 = vector.multi_reduction <maximumf>, %135, %cst_63 [2] : vector<1x16x2x32xf32> to vector<1x16x32xf32>
    %cst_64 = arith.constant 0.000000e+00 : f32
    %137 = vector.broadcast %cst_64 : f32 to vector<1x8x32xf32>
    %c0_65 = arith.constant 0 : index
    %c0_66 = arith.constant 0 : index
    %c0_67 = arith.constant 0 : index
    %138 = vector.load %arg10[%c0_65, %c0_66, %c0_67] : memref<1x32x32xf32, #tpu.memory_space<vmem>>, vector<1x8x32xf32>
    tpu.vector_store %arg10[%c0_65, %c0_66, %c0_67], %137 {strides = array<i32>} : memref<1x32x32xf32, #tpu.memory_space<vmem>>, vector<1x8x32xf32>,
    %c0_68 = arith.constant 0 : index
    %c24 = arith.constant 24 : index
    %c0_69 = arith.constant 0 : index
    %139 = vector.load %arg10[%c0_68, %c24, %c0_69] : memref<1x32x32xf32, #tpu.memory_space<vmem>>, vector<1x8x32xf32>
    tpu.vector_store %arg10[%c0_68, %c24, %c0_69], %137 {strides = array<i32>} : memref<1x32x32xf32, #tpu.memory_space<vmem>>, vector<1x8x32xf32>,
    %c0_70 = arith.constant 0 : index
    %c8_71 = arith.constant 8 : index
    %c0_72 = arith.constant 0 : index
    %140 = vector.load %arg10[%c0_70, %c8_71, %c0_72] : memref<1x32x32xf32, #tpu.memory_space<vmem>>, vector<1x16x32xf32>
    tpu.vector_store %arg10[%c0_70, %c8_71, %c0_72], %136 {strides = array<i32>} : memref<1x32x32xf32, #tpu.memory_space<vmem>>, vector<1x16x32xf32>,
    %c0_73 = arith.constant 0 : index
    %c7_74 = arith.constant 7 : index
    %c0_75 = arith.constant 0 : index
    %141 = vector.load %arg10[%c0_73, %c7_74, %c0_75] : memref<1x32x32xf32, #tpu.memory_space<vmem>>, vector<1x16x32xf32>
    %c0_76 = arith.constant 0 : index
    %c8_77 = arith.constant 8 : index
    %c0_78 = arith.constant 0 : index
    %142 = vector.load %arg10[%c0_76, %c8_77, %c0_78] : memref<1x32x32xf32, #tpu.memory_space<vmem>>, vector<1x16x32xf32>
    %c0_79 = arith.constant 0 : index
    %c9_80 = arith.constant 9 : index
    %c0_81 = arith.constant 0 : index
    %143 = vector.load %arg10[%c0_79, %c9_80, %c0_81] : memref<1x32x32xf32, #tpu.memory_space<vmem>>, vector<1x16x32xf32>
    %144 = tpu.concatenate %141, %142, %143 in 2 : vector<1x16x32xf32>, vector<1x16x32xf32>, vector<1x16x32xf32> -> vector<1x16x96xf32>
    %145 = vector.shape_cast %144 : vector<1x16x96xf32> to vector<16x96xf32>
    %c0_82 = arith.constant 0 : index
    %c0_83 = arith.constant 0 : index
    %146 = vector.load %arg4[%c0_82, %c0_83] : memref<96x64xf32, #tpu.memory_space<vmem>>, vector<96x64xf32>
    %cst_84 = arith.constant dense<0.000000e+00> : vector<16x64xf32>
    %147 = tpu.matmul %145, %146, %cst_84 {dimension_numbers = #tpu.dot_dimension_numbers<[1], [0], [0], [1], [0, 0, 1, 1], [], []>} : vector<16x96xf32>, vector<96x64xf32>, vector<16x64xf32> -> vector<16x64xf32>
    %148 = vector.shape_cast %147 : vector<16x64xf32> to vector<1x16x64xf32>
    %cst_85 = arith.constant dense<0.000000e+00> : vector<1x64xf32>
    %149 = vector.multi_reduction <add>, %148, %cst_85 [1] : vector<1x16x64xf32> to vector<1x64xf32>
    %150 = vector.shape_cast %149 : vector<1x64xf32> to vector<1x1x64xf32>
    %cst_86 = arith.constant 6.250000e-02 : f32
    %151 = vector.broadcast %cst_86 : f32 to vector<1x1x64xf32>
    %152 = arith.mulf %150, %151 : vector<1x1x64xf32>
    %153 = arith.mulf %148, %148 : vector<1x16x64xf32>
    %cst_87 = arith.constant dense<0.000000e+00> : vector<1x64xf32>
    %154 = vector.multi_reduction <add>, %153, %cst_87 [1] : vector<1x16x64xf32> to vector<1x64xf32>
    %155 = vector.shape_cast %154 : vector<1x64xf32> to vector<1x1x64xf32>
    %cst_88 = arith.constant 6.250000e-02 : f32
    %156 = vector.broadcast %cst_88 : f32 to vector<1x1x64xf32>
    %157 = arith.mulf %155, %156 : vector<1x1x64xf32>
    %158 = arith.mulf %152, %152 : vector<1x1x64xf32>
    %159 = arith.subf %157, %158 : vector<1x1x64xf32>
    %160 = vector.broadcast %152 : vector<1x1x64xf32> to vector<1x16x64xf32>
    %161 = arith.subf %148, %160 : vector<1x16x64xf32>
    %cst_89 = arith.constant 9.99999974E-6 : f32
    %162 = vector.broadcast %cst_89 : f32 to vector<1x1x64xf32>
    %163 = arith.addf %159, %162 : vector<1x1x64xf32>
    %164 = math.rsqrt %163 : vector<1x1x64xf32>
    %165 = vector.broadcast %164 : vector<1x1x64xf32> to vector<1x16x64xf32>
    %166 = arith.mulf %161, %165 : vector<1x16x64xf32>
    %cst_90 = arith.constant 5.000000e-01 : f32
    %167 = vector.broadcast %cst_90 : f32 to vector<1x16x64xf32>
    %168 = arith.mulf %167, %166 : vector<1x16x64xf32>
    %cst_91 = arith.constant 0.707106769 : f32
    %169 = vector.broadcast %cst_91 : f32 to vector<1x16x64xf32>
    %170 = arith.mulf %166, %169 : vector<1x16x64xf32>
    %cst_92 = arith.constant 0.000000e+00 : f32
    %171 = vector.broadcast %cst_92 : f32 to vector<1x16x64xf32>
    %172 = arith.cmpf oge, %170, %171 : vector<1x16x64xf32>
    %cst_93 = arith.constant 1.000000e+00 : f32
    %cst_94 = arith.constant -1.000000e+00 : f32
    %173 = vector.broadcast %cst_93 : f32 to vector<1x16x64xf32>
    %174 = vector.broadcast %cst_94 : f32 to vector<1x16x64xf32>
    %175 = arith.select %172, %173, %174 : vector<1x16x64xi1>, vector<1x16x64xf32>
    %176 = math.absf %170 : vector<1x16x64xf32>
    %cst_95 = arith.constant 0.327591091 : f32
    %177 = vector.broadcast %cst_95 : f32 to vector<1x16x64xf32>
    %178 = arith.mulf %177, %176 : vector<1x16x64xf32>
    %cst_96 = arith.constant 1.000000e+00 : f32
    %179 = vector.broadcast %cst_96 : f32 to vector<1x16x64xf32>
    %180 = arith.addf %179, %178 : vector<1x16x64xf32>
    %181 = tpu.reciprocal %180 {approx = true} : vector<1x16x64xf32> -> vector<1x16x64xf32>
    %cst_97 = arith.constant 1.06140542 : f32
    %182 = vector.broadcast %cst_97 : f32 to vector<1x16x64xf32>
    %183 = arith.mulf %182, %181 : vector<1x16x64xf32>
    %cst_98 = arith.constant -1.45315206 : f32
    %184 = vector.broadcast %cst_98 : f32 to vector<1x16x64xf32>
    %185 = arith.addf %183, %184 : vector<1x16x64xf32>
    %186 = arith.mulf %185, %181 : vector<1x16x64xf32>
    %cst_99 = arith.constant 1.42141378 : f32
    %187 = vector.broadcast %cst_99 : f32 to vector<1x16x64xf32>
    %188 = arith.addf %186, %187 : vector<1x16x64xf32>
    %189 = arith.mulf %188, %181 : vector<1x16x64xf32>
    %cst_100 = arith.constant -0.284496725 : f32
    %190 = vector.broadcast %cst_100 : f32 to vector<1x16x64xf32>
    %191 = arith.addf %189, %190 : vector<1x16x64xf32>
    %192 = arith.mulf %191, %181 : vector<1x16x64xf32>
    %cst_101 = arith.constant 0.254829586 : f32
    %193 = vector.broadcast %cst_101 : f32 to vector<1x16x64xf32>
    %194 = arith.addf %192, %193 : vector<1x16x64xf32>
    %195 = arith.mulf %194, %181 : vector<1x16x64xf32>
    %cst_102 = arith.constant 0.000000e+00 : f32
    %196 = vector.broadcast %cst_102 : f32 to vector<1x16x64xf32>
    %197 = arith.subf %196, %176 : vector<1x16x64xf32>
    %198 = arith.mulf %197, %176 : vector<1x16x64xf32>
    %199 = math.exp %198 : vector<1x16x64xf32>
    %200 = arith.mulf %195, %199 : vector<1x16x64xf32>
    %cst_103 = arith.constant 1.000000e+00 : f32
    %201 = vector.broadcast %cst_103 : f32 to vector<1x16x64xf32>
    %202 = arith.subf %201, %200 : vector<1x16x64xf32>
    %203 = arith.mulf %175, %202 : vector<1x16x64xf32>
    %cst_104 = arith.constant 1.000000e+00 : f32
    %204 = vector.broadcast %cst_104 : f32 to vector<1x16x64xf32>
    %205 = arith.addf %204, %203 : vector<1x16x64xf32>
    %206 = arith.mulf %168, %205 : vector<1x16x64xf32>
    %207 = vector.shape_cast %206 : vector<1x16x64xf32> to vector<1x8x2x64xf32>
    %cst_105 = arith.constant dense<0xFF800000> : vector<1x8x64xf32>
    %208 = vector.multi_reduction <maximumf>, %207, %cst_105 [2] : vector<1x8x2x64xf32> to vector<1x8x64xf32>
    %cst_106 = arith.constant 0.000000e+00 : f32
    %209 = vector.broadcast %cst_106 : f32 to vector<1x8x64xf32>
    %c0_107 = arith.constant 0 : index
    %c0_108 = arith.constant 0 : index
    %c0_109 = arith.constant 0 : index
    %210 = vector.load %arg11[%c0_107, %c0_108, %c0_109] : memref<1x24x64xf32, #tpu.memory_space<vmem>>, vector<1x8x64xf32>
    tpu.vector_store %arg11[%c0_107, %c0_108, %c0_109], %209 {strides = array<i32>} : memref<1x24x64xf32, #tpu.memory_space<vmem>>, vector<1x8x64xf32>,
    %c0_110 = arith.constant 0 : index
    %c16 = arith.constant 16 : index
    %c0_111 = arith.constant 0 : index
    %211 = vector.load %arg11[%c0_110, %c16, %c0_111] : memref<1x24x64xf32, #tpu.memory_space<vmem>>, vector<1x8x64xf32>
    tpu.vector_store %arg11[%c0_110, %c16, %c0_111], %209 {strides = array<i32>} : memref<1x24x64xf32, #tpu.memory_space<vmem>>, vector<1x8x64xf32>,
    %c0_112 = arith.constant 0 : index
    %c8_113 = arith.constant 8 : index
    %c0_114 = arith.constant 0 : index
    %212 = vector.load %arg11[%c0_112, %c8_113, %c0_114] : memref<1x24x64xf32, #tpu.memory_space<vmem>>, vector<1x8x64xf32>
    tpu.vector_store %arg11[%c0_112, %c8_113, %c0_114], %208 {strides = array<i32>} : memref<1x24x64xf32, #tpu.memory_space<vmem>>, vector<1x8x64xf32>,
    %c0_115 = arith.constant 0 : index
    %c7_116 = arith.constant 7 : index
    %c0_117 = arith.constant 0 : index
    %213 = vector.load %arg11[%c0_115, %c7_116, %c0_117] : memref<1x24x64xf32, #tpu.memory_space<vmem>>, vector<1x8x64xf32>
    %c0_118 = arith.constant 0 : index
    %c8_119 = arith.constant 8 : index
    %c0_120 = arith.constant 0 : index
    %214 = vector.load %arg11[%c0_118, %c8_119, %c0_120] : memref<1x24x64xf32, #tpu.memory_space<vmem>>, vector<1x8x64xf32>
    %c0_121 = arith.constant 0 : index
    %c9_122 = arith.constant 9 : index
    %c0_123 = arith.constant 0 : index
    %215 = vector.load %arg11[%c0_121, %c9_122, %c0_123] : memref<1x24x64xf32, #tpu.memory_space<vmem>>, vector<1x8x64xf32>
    %216 = tpu.concatenate %213, %214, %215 in 2 : vector<1x8x64xf32>, vector<1x8x64xf32>, vector<1x8x64xf32> -> vector<1x8x192xf32>
    %217 = vector.shape_cast %216 : vector<1x8x192xf32> to vector<8x192xf32>
    %c0_124 = arith.constant 0 : index
    %c0_125 = arith.constant 0 : index
    %218 = vector.load %arg5[%c0_124, %c0_125] : memref<192x64xf32, #tpu.memory_space<vmem>>, vector<192x64xf32>
    %cst_126 = arith.constant dense<0.000000e+00> : vector<8x64xf32>
    %219 = tpu.matmul %217, %218, %cst_126 {dimension_numbers = #tpu.dot_dimension_numbers<[1], [0], [0], [1], [0, 0, 1, 1], [], []>} : vector<8x192xf32>, vector<192x64xf32>, vector<8x64xf32> -> vector<8x64xf32>
    %220 = vector.shape_cast %219 : vector<8x64xf32> to vector<1x8x64xf32>
    %cst_127 = arith.constant dense<0.000000e+00> : vector<1x64xf32>
    %221 = vector.multi_reduction <add>, %220, %cst_127 [1] : vector<1x8x64xf32> to vector<1x64xf32>
    %222 = vector.shape_cast %221 : vector<1x64xf32> to vector<1x1x64xf32>
    %cst_128 = arith.constant 1.250000e-01 : f32
    %223 = vector.broadcast %cst_128 : f32 to vector<1x1x64xf32>
    %224 = arith.mulf %222, %223 : vector<1x1x64xf32>
    %225 = arith.mulf %220, %220 : vector<1x8x64xf32>
    %cst_129 = arith.constant dense<0.000000e+00> : vector<1x64xf32>
    %226 = vector.multi_reduction <add>, %225, %cst_129 [1] : vector<1x8x64xf32> to vector<1x64xf32>
    %227 = vector.shape_cast %226 : vector<1x64xf32> to vector<1x1x64xf32>
    %cst_130 = arith.constant 1.250000e-01 : f32
    %228 = vector.broadcast %cst_130 : f32 to vector<1x1x64xf32>
    %229 = arith.mulf %227, %228 : vector<1x1x64xf32>
    %230 = arith.mulf %224, %224 : vector<1x1x64xf32>
    %231 = arith.subf %229, %230 : vector<1x1x64xf32>
    %232 = vector.broadcast %224 : vector<1x1x64xf32> to vector<1x8x64xf32>
    %233 = arith.subf %220, %232 : vector<1x8x64xf32>
    %cst_131 = arith.constant 9.99999974E-6 : f32
    %234 = vector.broadcast %cst_131 : f32 to vector<1x1x64xf32>
    %235 = arith.addf %231, %234 : vector<1x1x64xf32>
    %236 = math.rsqrt %235 : vector<1x1x64xf32>
    %237 = vector.broadcast %236 : vector<1x1x64xf32> to vector<1x8x64xf32>
    %238 = arith.mulf %233, %237 : vector<1x8x64xf32>
    %cst_132 = arith.constant 5.000000e-01 : f32
    %239 = vector.broadcast %cst_132 : f32 to vector<1x8x64xf32>
    %240 = arith.mulf %239, %238 : vector<1x8x64xf32>
    %cst_133 = arith.constant 0.707106769 : f32
    %241 = vector.broadcast %cst_133 : f32 to vector<1x8x64xf32>
    %242 = arith.mulf %238, %241 : vector<1x8x64xf32>
    %cst_134 = arith.constant 0.000000e+00 : f32
    %243 = vector.broadcast %cst_134 : f32 to vector<1x8x64xf32>
    %244 = arith.cmpf oge, %242, %243 : vector<1x8x64xf32>
    %cst_135 = arith.constant 1.000000e+00 : f32
    %cst_136 = arith.constant -1.000000e+00 : f32
    %245 = vector.broadcast %cst_135 : f32 to vector<1x8x64xf32>
    %246 = vector.broadcast %cst_136 : f32 to vector<1x8x64xf32>
    %247 = arith.select %244, %245, %246 : vector<1x8x64xi1>, vector<1x8x64xf32>
    %248 = math.absf %242 : vector<1x8x64xf32>
    %cst_137 = arith.constant 0.327591091 : f32
    %249 = vector.broadcast %cst_137 : f32 to vector<1x8x64xf32>
    %250 = arith.mulf %249, %248 : vector<1x8x64xf32>
    %cst_138 = arith.constant 1.000000e+00 : f32
    %251 = vector.broadcast %cst_138 : f32 to vector<1x8x64xf32>
    %252 = arith.addf %251, %250 : vector<1x8x64xf32>
    %253 = tpu.reciprocal %252 {approx = true} : vector<1x8x64xf32> -> vector<1x8x64xf32>
    %cst_139 = arith.constant 1.06140542 : f32
    %254 = vector.broadcast %cst_139 : f32 to vector<1x8x64xf32>
    %255 = arith.mulf %254, %253 : vector<1x8x64xf32>
    %cst_140 = arith.constant -1.45315206 : f32
    %256 = vector.broadcast %cst_140 : f32 to vector<1x8x64xf32>
    %257 = arith.addf %255, %256 : vector<1x8x64xf32>
    %258 = arith.mulf %257, %253 : vector<1x8x64xf32>
    %cst_141 = arith.constant 1.42141378 : f32
    %259 = vector.broadcast %cst_141 : f32 to vector<1x8x64xf32>
    %260 = arith.addf %258, %259 : vector<1x8x64xf32>
    %261 = arith.mulf %260, %253 : vector<1x8x64xf32>
    %cst_142 = arith.constant -0.284496725 : f32
    %262 = vector.broadcast %cst_142 : f32 to vector<1x8x64xf32>
    %263 = arith.addf %261, %262 : vector<1x8x64xf32>
    %264 = arith.mulf %263, %253 : vector<1x8x64xf32>
    %cst_143 = arith.constant 0.254829586 : f32
    %265 = vector.broadcast %cst_143 : f32 to vector<1x8x64xf32>
    %266 = arith.addf %264, %265 : vector<1x8x64xf32>
    %267 = arith.mulf %266, %253 : vector<1x8x64xf32>
    %cst_144 = arith.constant 0.000000e+00 : f32
    %268 = vector.broadcast %cst_144 : f32 to vector<1x8x64xf32>
    %269 = arith.subf %268, %248 : vector<1x8x64xf32>
    %270 = arith.mulf %269, %248 : vector<1x8x64xf32>
    %271 = math.exp %270 : vector<1x8x64xf32>
    %272 = arith.mulf %267, %271 : vector<1x8x64xf32>
    %cst_145 = arith.constant 1.000000e+00 : f32
    %273 = vector.broadcast %cst_145 : f32 to vector<1x8x64xf32>
    %274 = arith.subf %273, %272 : vector<1x8x64xf32>
    %275 = arith.mulf %247, %274 : vector<1x8x64xf32>
    %cst_146 = arith.constant 1.000000e+00 : f32
    %276 = vector.broadcast %cst_146 : f32 to vector<1x8x64xf32>
    %277 = arith.addf %276, %275 : vector<1x8x64xf32>
    %278 = arith.mulf %240, %277 : vector<1x8x64xf32>
    %279 = vector.shape_cast %278 : vector<1x8x64xf32> to vector<1x4x2x64xf32>
    %cst_147 = arith.constant dense<0xFF800000> : vector<1x4x64xf32>
    %280 = vector.multi_reduction <maximumf>, %279, %cst_147 [2] : vector<1x4x2x64xf32> to vector<1x4x64xf32>
    %c0_148 = arith.constant 0 : index
    %c8_149 = arith.constant 8 : index
    %c0_150 = arith.constant 0 : index
    %281 = vector.load %arg12[%c0_148, %c8_149, %c0_150] : memref<1x20x64xf32, #tpu.memory_space<vmem>>, vector<1x4x64xf32>
    tpu.vector_store %arg12[%c0_148, %c8_149, %c0_150], %280 {strides = array<i32>} : memref<1x20x64xf32, #tpu.memory_space<vmem>>, vector<1x4x64xf32>,
    %c0_151 = arith.constant 0 : index
    %c8_152 = arith.constant 8 : index
    %c0_153 = arith.constant 0 : index
    %282 = vector.load %arg12[%c0_151, %c8_152, %c0_153] : memref<1x20x64xf32, #tpu.memory_space<vmem>>, vector<1x2x64xf32>
    %c0_154 = arith.constant 0 : index
    %c9_155 = arith.constant 9 : index
    %c0_156 = arith.constant 0 : index
    %283 = vector.load %arg12[%c0_154, %c9_155, %c0_156] : memref<1x20x64xf32, #tpu.memory_space<vmem>>, vector<1x2x64xf32>
    %c0_157 = arith.constant 0 : index
    %c10 = arith.constant 10 : index
    %c0_158 = arith.constant 0 : index
    %284 = vector.load %arg12[%c0_157, %c10, %c0_158] : memref<1x20x64xf32, #tpu.memory_space<vmem>>, vector<1x2x64xf32>
    %285 = tpu.concatenate %282, %283, %284 in 2 : vector<1x2x64xf32>, vector<1x2x64xf32>, vector<1x2x64xf32> -> vector<1x2x192xf32>
    %286 = vector.shape_cast %285 : vector<1x2x192xf32> to vector<2x192xf32>
    %c0_159 = arith.constant 0 : index
    %c0_160 = arith.constant 0 : index
    %287 = vector.load %arg6[%c0_159, %c0_160] : memref<192x64xf32, #tpu.memory_space<vmem>>, vector<192x64xf32>
    %cst_161 = arith.constant dense<0.000000e+00> : vector<2x64xf32>
    %288 = tpu.matmul %286, %287, %cst_161 {dimension_numbers = #tpu.dot_dimension_numbers<[1], [0], [0], [1], [0, 0, 1, 1], [], []>} : vector<2x192xf32>, vector<192x64xf32>, vector<2x64xf32> -> vector<2x64xf32>
    %289 = vector.shape_cast %288 : vector<2x64xf32> to vector<1x2x64xf32>
    %cst_162 = arith.constant dense<0.000000e+00> : vector<1x64xf32>
    %290 = vector.multi_reduction <add>, %289, %cst_162 [1] : vector<1x2x64xf32> to vector<1x64xf32>
    %291 = vector.shape_cast %290 : vector<1x64xf32> to vector<1x1x64xf32>
    %cst_163 = arith.constant 5.000000e-01 : f32
    %292 = vector.broadcast %cst_163 : f32 to vector<1x1x64xf32>
    %293 = arith.mulf %291, %292 : vector<1x1x64xf32>
    %294 = arith.mulf %289, %289 : vector<1x2x64xf32>
    %cst_164 = arith.constant dense<0.000000e+00> : vector<1x64xf32>
    %295 = vector.multi_reduction <add>, %294, %cst_164 [1] : vector<1x2x64xf32> to vector<1x64xf32>
    %296 = vector.shape_cast %295 : vector<1x64xf32> to vector<1x1x64xf32>
    %cst_165 = arith.constant 5.000000e-01 : f32
    %297 = vector.broadcast %cst_165 : f32 to vector<1x1x64xf32>
    %298 = arith.mulf %296, %297 : vector<1x1x64xf32>
    %299 = arith.mulf %293, %293 : vector<1x1x64xf32>
    %300 = arith.subf %298, %299 : vector<1x1x64xf32>
    %301 = vector.broadcast %293 : vector<1x1x64xf32> to vector<1x2x64xf32>
    %302 = arith.subf %289, %301 : vector<1x2x64xf32>
    %cst_166 = arith.constant 9.99999974E-6 : f32
    %303 = vector.broadcast %cst_166 : f32 to vector<1x1x64xf32>
    %304 = arith.addf %300, %303 : vector<1x1x64xf32>
    %305 = math.rsqrt %304 : vector<1x1x64xf32>
    %306 = vector.broadcast %305 : vector<1x1x64xf32> to vector<1x2x64xf32>
    %307 = arith.mulf %302, %306 : vector<1x2x64xf32>
    %cst_167 = arith.constant 5.000000e-01 : f32
    %308 = vector.broadcast %cst_167 : f32 to vector<1x2x64xf32>
    %309 = arith.mulf %308, %307 : vector<1x2x64xf32>
    %cst_168 = arith.constant 0.707106769 : f32
    %310 = vector.broadcast %cst_168 : f32 to vector<1x2x64xf32>
    %311 = arith.mulf %307, %310 : vector<1x2x64xf32>
    %cst_169 = arith.constant 0.000000e+00 : f32
    %312 = vector.broadcast %cst_169 : f32 to vector<1x2x64xf32>
    %313 = arith.cmpf oge, %311, %312 : vector<1x2x64xf32>
    %cst_170 = arith.constant 1.000000e+00 : f32
    %cst_171 = arith.constant -1.000000e+00 : f32
    %314 = vector.broadcast %cst_170 : f32 to vector<1x2x64xf32>
    %315 = vector.broadcast %cst_171 : f32 to vector<1x2x64xf32>
    %316 = arith.select %313, %314, %315 : vector<1x2x64xi1>, vector<1x2x64xf32>
    %317 = math.absf %311 : vector<1x2x64xf32>
    %cst_172 = arith.constant 0.327591091 : f32
    %318 = vector.broadcast %cst_172 : f32 to vector<1x2x64xf32>
    %319 = arith.mulf %318, %317 : vector<1x2x64xf32>
    %cst_173 = arith.constant 1.000000e+00 : f32
    %320 = vector.broadcast %cst_173 : f32 to vector<1x2x64xf32>
    %321 = arith.addf %320, %319 : vector<1x2x64xf32>
    %322 = tpu.reciprocal %321 {approx = true} : vector<1x2x64xf32> -> vector<1x2x64xf32>
    %cst_174 = arith.constant 1.06140542 : f32
    %323 = vector.broadcast %cst_174 : f32 to vector<1x2x64xf32>
    %324 = arith.mulf %323, %322 : vector<1x2x64xf32>
    %cst_175 = arith.constant -1.45315206 : f32
    %325 = vector.broadcast %cst_175 : f32 to vector<1x2x64xf32>
    %326 = arith.addf %324, %325 : vector<1x2x64xf32>
    %327 = arith.mulf %326, %322 : vector<1x2x64xf32>
    %cst_176 = arith.constant 1.42141378 : f32
    %328 = vector.broadcast %cst_176 : f32 to vector<1x2x64xf32>
    %329 = arith.addf %327, %328 : vector<1x2x64xf32>
    %330 = arith.mulf %329, %322 : vector<1x2x64xf32>
    %cst_177 = arith.constant -0.284496725 : f32
    %331 = vector.broadcast %cst_177 : f32 to vector<1x2x64xf32>
    %332 = arith.addf %330, %331 : vector<1x2x64xf32>
    %333 = arith.mulf %332, %322 : vector<1x2x64xf32>
    %cst_178 = arith.constant 0.254829586 : f32
    %334 = vector.broadcast %cst_178 : f32 to vector<1x2x64xf32>
    %335 = arith.addf %333, %334 : vector<1x2x64xf32>
    %336 = arith.mulf %335, %322 : vector<1x2x64xf32>
    %cst_179 = arith.constant 0.000000e+00 : f32
    %337 = vector.broadcast %cst_179 : f32 to vector<1x2x64xf32>
    %338 = arith.subf %337, %317 : vector<1x2x64xf32>
    %339 = arith.mulf %338, %317 : vector<1x2x64xf32>
    %340 = math.exp %339 : vector<1x2x64xf32>
    %341 = arith.mulf %336, %340 : vector<1x2x64xf32>
    %cst_180 = arith.constant 1.000000e+00 : f32
    %342 = vector.broadcast %cst_180 : f32 to vector<1x2x64xf32>
    %343 = arith.subf %342, %341 : vector<1x2x64xf32>
    %344 = arith.mulf %316, %343 : vector<1x2x64xf32>
    %cst_181 = arith.constant 1.000000e+00 : f32
    %345 = vector.broadcast %cst_181 : f32 to vector<1x2x64xf32>
    %346 = arith.addf %345, %344 : vector<1x2x64xf32>
    %347 = arith.mulf %309, %346 : vector<1x2x64xf32>
    %348 = vector.shape_cast %347 : vector<1x2x64xf32> to vector<1x1x2x64xf32>
    %cst_182 = arith.constant dense<0xFF800000> : vector<1x1x64xf32>
    %349 = vector.multi_reduction <maximumf>, %348, %cst_182 [2] : vector<1x1x2x64xf32> to vector<1x1x64xf32>
    %350 = vector.shape_cast %349 : vector<1x1x64xf32> to vector<1x64xf32>
    %c0_183 = arith.constant 0 : index
    %c0_184 = arith.constant 0 : index
    %351 = vector.load %arg7[%c0_183, %c0_184] : memref<64x32xf32, #tpu.memory_space<vmem>>, vector<64x32xf32>
    %cst_185 = arith.constant dense<0.000000e+00> : vector<1x32xf32>
    %352 = tpu.matmul %350, %351, %cst_185 {dimension_numbers = #tpu.dot_dimension_numbers<[1], [0], [0], [1], [0, 0, 1, 1], [], []>} : vector<1x64xf32>, vector<64x32xf32>, vector<1x32xf32> -> vector<1x32xf32>
    %353 = vector.shape_cast %352 : vector<1x32xf32> to vector<1x1x32xf32>
    %c0_186 = arith.constant 0 : index
    %c0_187 = arith.constant 0 : index
    %c0_188 = arith.constant 0 : index
    %354 = vector.load %arg8[%c0_186, %c0_187, %c0_188] : memref<1x1x32xf32, #tpu.memory_space<vmem>>, vector<1x1x32xf32>
    tpu.vector_store %arg8[%c0_186, %c0_187, %c0_188], %353 {strides = array<i32>} : memref<1x1x32xf32, #tpu.memory_space<vmem>>, vector<1x1x32xf32>,
    return
  }
  func.func @transform_0(%arg0: i32) -> (i32, i32, i32) {
    %c0_i32 = arith.constant 0 : i32
    %c0_i32_0 = arith.constant 0 : i32
    %c0_i32_1 = arith.constant 0 : i32
    return %arg0, %c0_i32, %c0_i32_0 : i32, i32, i32
  }
  func.func @transform_1(%arg0: i32) -> (i32, i32) {
    %c0_i32 = arith.constant 0 : i32
    %c0_i32_0 = arith.constant 0 : i32
    %c0_i32_1 = arith.constant 0 : i32
    return %c0_i32, %c0_i32_0 : i32, i32
  }
  func.func @transform_2(%arg0: i32) -> (i32, i32) {
    %c0_i32 = arith.constant 0 : i32
    %c0_i32_0 = arith.constant 0 : i32
    %c0_i32_1 = arith.constant 0 : i32
    return %c0_i32, %c0_i32_0 : i32, i32
  }
  func.func @transform_3(%arg0: i32) -> (i32, i32) {
    %c0_i32 = arith.constant 0 : i32
    %c0_i32_0 = arith.constant 0 : i32
    %c0_i32_1 = arith.constant 0 : i32
    return %c0_i32, %c0_i32_0 : i32, i32
  }
  func.func @transform_4(%arg0: i32) -> (i32, i32) {
    %c0_i32 = arith.constant 0 : i32
    %c0_i32_0 = arith.constant 0 : i32
    %c0_i32_1 = arith.constant 0 : i32
    return %c0_i32, %c0_i32_0 : i32, i32
  }
  func.func @transform_5(%arg0: i32) -> (i32, i32) {
    %c0_i32 = arith.constant 0 : i32
    %c0_i32_0 = arith.constant 0 : i32
    %c0_i32_1 = arith.constant 0 : i32
    return %c0_i32, %c0_i32_0 : i32, i32
  }
  func.func @transform_6(%arg0: i32) -> (i32, i32) {
    %c0_i32 = arith.constant 0 : i32
    %c0_i32_0 = arith.constant 0 : i32
    %c0_i32_1 = arith.constant 0 : i32
    return %c0_i32, %c0_i32_0 : i32, i32
  }
  func.func @transform_7(%arg0: i32) -> (i32, i32, i32) {
    %c0_i32 = arith.constant 0 : i32
    %c0_i32_0 = arith.constant 0 : i32
    %c0_i32_1 = arith.constant 0 : i32
    return %arg0, %c0_i32, %c0_i32_0 : i32, i32, i32
  }
}

</mosaic_0001>

<bundles_post_ra>
// kernel: net_forward.3
= control target key start
LH: loop header
LB: loop body
LE: loop exit
PB: predicated region body
PF: predicated region fallthrough
CT: control target
= control target key end

     0   :  { %vm10_vm0 = vcmask 254976   ;;  %s106_s0 = inlined_call_operand.vmem [shape: f32[2,32], index: 0, kind: input, shape index: {}]   ;;  %s107_s1 = inlined_call_operand.hbm [shape: f32[2,32], index: 1, kind: output, shape index: {}]  }
   0x1   :  { %v9_v0 = vld [vmem:[%s106_s0] sm:$0x3] }
   0x2   :  { %6 = vsyncpa [#allocation3], 0  ;;  %v11_v1 = vsel %vm10_vm0, %v9_v0, 0.0  ;;  %v19_v2 = vmul.f32 %v9_v0, %v9_v0  ;;  %s77_s0 = smov [#allocation2]  }
   0x3   :  { %v12_v3 = vrot.slane %v11_v1, 4  ;;  %s42_s8 = sshll.u32 %s77_s0, 4  ;;  %s43_s8 = int_to_ptr.vmem [resolvable:$true] %s42_s8 }
   0x4   :  { %v20_v4 = vsel %vm10_vm0, %v19_v2, 0.0  ;;  %s53_s9 = scalar_lea.vmem %s43_s8, 32  ;;  %p58_p1 = scmp.lt.s32.totalorder %s43_s8, %s43_s8 }
   0x5   :  { %v13_v5 = vadd.f32 %v12_v3, %v11_v1  ;;  %v21_v6 = vrot.slane %v20_v4, 4  ;;  %p54_p0 = scmp.ne.s32.totalorder %s43_s8, %s53_s9  ;;  %p59_p2 = scmp.lt.s32.totalorder %s53_s9, %s53_s9 }
   0x7   :  { %v14_v7 = vrot.slane %v13_v5, 2  ;;  %v22_v8 = vadd.f32 %v21_v6, %v20_v4  ;;  %p60_p3 = por %p59_p2, %p58_p1 }
   0x9   :  { %v15_v9 = vadd.f32 %v14_v7, %v13_v5  ;;  %v23_v10 = vrot.slane %v22_v8, 2  ;;  %p61_p4 = pnand %p60_p3, %p54_p0 }
   0xb   :  { %v16_v11 = vrot.slane %v15_v9, 1  ;;  %v24_v12 = vadd.f32 %v23_v10, %v22_v8 }
   0xd   :  { %v17_v13 = vadd.f32 %v16_v11, %v15_v9  ;;  %v25_v14 = vrot.slane %v24_v12, 1 }
   0xf   :  { %v18_v15 = vmul.f32 0.5, %v17_v13  ;;  %v26_v16 = vadd.f32 %v25_v14, %v24_v12 }
  0x11   :  { %v27_v17 = vmul.f32 0.5, %v26_v16  ;;  %v28_v18 = vmul.f32 %v18_v15, %v18_v15  ;;  %v30_v21 = vsub.f32 %v9_v0, %v18_v15 }
  0x13   :  { %v29_v19 = vsub.f32 %v27_v17, %v28_v18 }
  0x15   :  { %v31_v20 = vadd.f32 1e-05, %v29_v19 }
  0x17   :  { %51 = vrsqrt.f32 %v31_v20 }
  0x21   :  { %v52_v22 = vpop.eup %51 }
  0x22   :  { %v33_v23 = vmul.f32 %v52_v22, %v30_v21 }
  0x24   :  { %v34_v24 = vmax.f32 %v33_v23, 0.0 }
  0x26   :  { %35 = vst.msk [vmem:[#allocation2] sm:$0x3] %vm10_vm0, %v34_v24 }
  0x27   :  { %64 = shalt.err (!%p61_p4)
}
  0x28   :  { %s65_s12 = scalar_lea.hbm %s107_s1, 32 }
  0x29   :  { %p66_p5 = scmp.ne.s32.totalorder %s107_s1, %s65_s12  ;;  %p69_p6 = scmp.lt.u32.totalorder %s65_s12, %s107_s1 }
  0x2b   :  { %p71_p7 = pnand %p69_p6, %p66_p5 }
  0x2d   :  { %74 = shalt.err (!%p71_p7)
}
  0x2e   :  { %45 = dma.vmem_to_hbm [thread:$0]  %s43_s8, 32, %s107_s1, [#allocation3]  }
  0x2f   :  { %75 = dma.done.wait [#allocation3], 32  }
  0x30   :  { %76 = vsyncadd [#allocation3], 4294967264 }
  0x31   :  { %49 = vsyncpa [#allocation3], 1 }

// kernel: net_forward.2
= control target key start
LH: loop header
LB: loop body
LE: loop exit
PB: predicated region body
PF: predicated region fallthrough
CT: control target
= control target key end

     0   :  { %s2999_s24 = smov 0   ;;  %s3889_s0 = inlined_call_operand.vmem [shape: f32[2,64,64], index: 0, kind: input, shape index: {}]   ;;  %s3890_s1 = inlined_call_operand.vmem [shape: f32[64,16], index: 1, kind: input, shape index: {}]   ;;  %s3891_s2 = inlined_call_operand.vmem [shape: f32[48,32], index: 2, kind: input, shape index: {}]   ;;  %s3892_s3 = inlined_call_operand.vmem [shape: f32[96,64], index: 3, kind: input, shape index: {}]   ;;  %s3893_s4 = inlined_call_operand.vmem [shape: f32[192,64], index: 4, kind: input, shape index: {}]   ;;  %s3894_s5 = inlined_call_operand.vmem [shape: f32[192,64], index: 5, kind: input, shape index: {}]   ;;  %s3895_s6 = inlined_call_operand.vmem [shape: f32[64,32], index: 6, kind: input, shape index: {}]   ;;  %s3896_s7 = inlined_call_operand.vmem [shape: f32[2,1,32], index: 7, kind: output, shape index: {}]  }
   0x1 LB: > { %s2549_s25 = sadd.s32 4294967295, %s2949_s24   ;;  %p2553_p0 = scmp.ge.s32.totalorder %s2949_s24, 1  ;;  %s2949_s24 = sphi %s2999_s24, %s17_s24  }
   0x2   : > { %p237_p1 = scmp.lt.s32.totalorder %s2949_s24, 3 }
   0x4   : > { %p238_p2 = pnand %p2553_p0, %p237_p1 }
   0x5   : > { %v283_v0 = vld [vmem:[%s3890_s1] sm:$0xff] (!%p238_p2)  ;;  %v284_v1 = vld [vmem:[%s3890_s1 + $0x8] sm:$0xff] (!%p238_p2)  ;;  %v285_v2 = vld [vmem:[%s3890_s1 + $0x10] sm:$0xff] (!%p238_p2)  ;;  %p267_p3 = scmp.lt.s32.totalorder (!%p238_p2), %s2549_s25, 1  ;;  %vm291_vm0 = vcmask (!%p238_p2), 523264   ;;  %vm421_vm1 = vcmask (!%p238_p2), 130048  }
   0x6   : > { %241 = sbr.rel (%p238_p2) target bundleno = 2418 (0x972), region = 48  ;;  %v2717_v3 = vpack.c.bf16 (!%p238_p2), %v284_v1, %v283_v0  ;;  %v286_v4 = vld [vmem:[%s3890_s1 + $0x18] sm:$0xff] (!%p238_p2)  ;;  %v287_v6 = vld [vmem:[%s3890_s1 + $0x20] sm:$0xff] (!%p238_p2)  ;;  %v288_v7 = vld [vmem:[%s3890_s1 + $0x28] sm:$0xff] (!%p238_p2)  ;;  %vm878_vm10 = vcmask (!%p238_p2), 123904   ;;  %vm1137_vm11 = vcmask (!%p238_p2), 1041409  }
   0x7   : > { %v2721_v5 = vpack.c.bf16 (!%p238_p2), %v286_v4, %v285_v2  ;;  %v2725_v8 = vpack.c.bf16 (!%p238_p2), %v288_v7, %v287_v6  ;;  %v289_v9 = vld [vmem:[%s3890_s1 + $0x30] sm:$0xff] (!%p238_p2)  ;;  %v290_v10 = vld [vmem:[%s3890_s1 + $0x38] sm:$0xff] (!%p238_p2)  ;;  %vm1139_vm12 = vcmask (!%p238_p2), 1042434   ;;  %vm1141_vm13 = vcmask (!%p238_p2), 1043459   ;;  %s2954_s10 = smov (!%p238_p2), 16   ;;  %s2955_s11 = smov (!%p238_p2), 32  }
   0x8   : > { %2718 = vmatprep.subr.bf16.mxu0 (!%p238_p2), %v2717_v3  ;;  %v2729_v12 = vpack.c.bf16 (!%p238_p2), %v290_v10, %v289_v9  ;;  %vm1143_vm14 = vcmask (!%p238_p2), 1044484   ;;  %vm1145_vm15 = vcmask (!%p238_p2), 1045509   ;;  %s2956_s20 = smov (!%p238_p2), 64  }
   0x9   : > { %2720 = vmatpush3.bf16.msra.mxu0 (!%p238_p2), %v2717_v3 }
   0xa   : > { %2722 = vmatprep.subr.bf16.mxu0 (!%p238_p2), %v2721_v5 }
   0xd   : > { %s3898_s25 = smov (!%p267_p3, %s2549_s25), 1  ;;  %2724 = vmatpush3.bf16.msra.mxu0 %v2721_v5 }
   0xe   : > { %s2575_s15 = sshll.u32 %s3898_s25, 6  ;;  %2726 = vmatprep.subr.bf16.mxu0 %v2725_v8  ;;  %s274_s13 = scalar_lea.vmem %s3896_s7, %s3898_s25 }
   0xf   : > { %s271_s18 = scalar_lea.vmem %s3889_s0, %s2575_s15 }
  0x10   : > { %v275_v11 = vld [vmem:[%s271_s18] sm:$0xff]  ;;  %v276_v13 = vld [vmem:[%s271_s18 + $0x8] sm:$0xff]  ;;  %v277_v14 = vld [vmem:[%s271_s18 + $0x10] sm:$0xff] }
  0x11   : > { %2641 = vmatprep.mubr.msk.f32.mxu0 %vm291_vm0, %v275_v11  ;;  %2728 = vmatpush3.bf16.msra.mxu0 %v2725_v8  ;;  %v278_v15 = vld [vmem:[%s271_s18 + $0x18] sm:$0xff]  ;;  %v279_v16 = vld [vmem:[%s271_s18 + $0x20] sm:$0xff]  ;;  %v280_v17 = vld [vmem:[%s271_s18 + $0x28] sm:$0xff] }
  0x12   : > { %2730 = vmatprep.subr.bf16.mxu0 %v2729_v12  ;;  %v281_v18 = vld [vmem:[%s271_s18 + $0x30] sm:$0xff]  ;;  %v282_v19 = vld [vmem:[%s271_s18 + $0x38] sm:$0xff] }
  0x15   : > { %2732 = vmatpush3.bf16.msra.mxu0 %v2729_v12 }
  0x18   : > { %2642 = vmatmul.mubr.msk.f32.vlgmr.msra.gmra.mrb[0].mxu0 %vm291_vm0, %v276_v13 }
  0x19   : > { %2644 = vmatprep.mubr.msk.f32.mxu0 %vm291_vm0, %v277_v14 }
  0x1c   : > { %2645 = vmatmul.mubr.msk.f32.gmra.mrb[2].mxu0 %vm291_vm0, %v278_v15 }
  0x1d   : > { %2647 = vmatprep.mubr.msk.f32.mxu0 %vm291_vm0, %v279_v16 }
  0x20   : > { %2648 = vmatmul.mubr.msk.f32.gmra.mrb[4].mxu0 %vm291_vm0, %v280_v17 }
  0x21   : > { %2650 = vmatprep.mubr.msk.f32.mxu0 %vm291_vm0, %v281_v18 }
  0x24   : > { %2651 = vmatmul.mubr.msk.f32.gmra.mrb[6].mxu0 %vm291_vm0, %v282_v19 }
  0xeb   : > { %v3045_v20 = vpop.f32.mrb[0].mxu0 }
  0xec   : > { %v423_v21 = vsel %vm421_vm1, %v3045_v20, 0.0  ;;  %v445_v22 = vmul.f32 %v3045_v20, %v3045_v20  ;;  %v3051_v23 = vpop.f32.mrb[1].mxu0 }
  0xed   : > { %v422_v24 = vsel %vm421_vm1, %v3051_v23, 0.0  ;;  %v444_v25 = vmul.f32 %v3051_v23, %v3051_v23 }
  0xee   : > { %v453_v26 = vsel %vm421_vm1, %v445_v22, 0.0  ;;  %v424_v27 = vadd.f32 %v423_v21, %v422_v24 }
  0xef   : > { %v452_v28 = vsel %vm421_vm1, %v444_v25, 0.0  ;;  %v3059_v29 = vpop.f32.mrb[2].mxu0 }
  0xf0   : > { %v454_v30 = vadd.f32 %v453_v26, %v452_v28  ;;  %v3061_v31 = vpop.f32.mrb[3].mxu0  ;;  %v447_v32 = vmul.f32 %v3059_v29, %v3059_v29  ;;  %v427_v36 = vsel %vm421_vm1, %v3059_v29, 0.0 }
  0xf1   : > { %v425_v33 = vsel %vm421_vm1, %v3061_v31, 0.0  ;;  %v446_v34 = vmul.f32 %v3061_v31, %v3061_v31 }
  0xf2   : > { %v426_v35 = vadd.f32 %v425_v33, %v424_v27  ;;  %v457_v42 = vsel %vm421_vm1, %v447_v32, 0.0  ;;  %v714_v32 = vlaneseq }
  0xf3   : > { %v455_v37 = vsel %vm421_vm1, %v446_v34, 0.0  ;;  %v2649_v38 = vpop.f32.mrb[4].mxu0 }
  0xf4   : > { %v456_v39 = vadd.f32 %v455_v37, %v454_v30  ;;  %v402_v40 = vpop.f32.mrb[5].mxu0  ;;  %v428_v41 = vadd.f32 %v427_v36, %v426_v35  ;;  %v449_v43 = vmul.f32 %v2649_v38, %v2649_v38  ;;  %v431_v48 = vsel %vm421_vm1, %v2649_v38, 0.0 }
  0xf5   : > { %v429_v44 = vsel %vm421_vm1, %v402_v40, 0.0  ;;  %v448_v45 = vmul.f32 %v402_v40, %v402_v40 }
  0xf6   : > { %v430_v46 = vadd.f32 %v429_v44, %v428_v41  ;;  %v458_v47 = vadd.f32 %v457_v42, %v456_v39  ;;  %v461_v54 = vsel %vm421_vm1, %v449_v43, 0.0  ;;  %v2951_v42 = vmov 1983009808  }
  0xf7   : > { %v459_v49 = vsel %vm421_vm1, %v448_v45, 0.0  ;;  %v2652_v50 = vpop.f32.mrb[6].mxu0  ;;  %v712_v43 = vunpack.c.l.s4 %v2951_v42  ;;  %v715_v44 = vshrl.u32 %v714_v32, 7  ;;  %v1233_v42 = vld [vmem:[%s3891_s2] sm:$0xff] }
  0xf8   : > { %v460_v51 = vadd.f32 %v459_v49, %v458_v47  ;;  %v412_v52 = vpop.f32.mrb[7].mxu0  ;;  %v432_v53 = vadd.f32 %v431_v48, %v430_v46  ;;  %v451_v55 = vmul.f32 %v2652_v50, %v2652_v50  ;;  %v435_v60 = vsel %vm421_vm1, %v2652_v50, 0.0 }
  0xf9   : > { %v433_v56 = vsel %vm421_vm1, %v412_v52, 0.0  ;;  %v450_v57 = vmul.f32 %v412_v52, %v412_v52 }
  0xfa   : > { %v434_v58 = vadd.f32 %v433_v56, %v432_v53  ;;  %v462_v59 = vadd.f32 %v461_v54, %v460_v51  ;;  %v465_v0 = vsel %vm421_vm1, %v451_v55, 0.0 }
  0xfb   : > { %v463_v61 = vsel %vm421_vm1, %v450_v57, 0.0 }
  0xfc   : > { %v436_v62 = vadd.f32 %v435_v60, %v434_v58  ;;  %v464_v63 = vadd.f32 %v463_v61, %v462_v59 }
  0xfe   : > { %v437_v1 = vrot.slane %v436_v62, 4  ;;  %v466_v2 = vadd.f32 %v465_v0, %v464_v63 }
 0x100   : > { %v438_v3 = vadd.f32 %v437_v1, %v436_v62  ;;  %v467_v4 = vrot.slane %v466_v2, 4  ;;  %v713_v62 = vunpack.c.0.s8 %v712_v43  ;;  %v1234_v43 = vld [vmem:[%s3891_s2 + $0x8] sm:$0xff] }
 0x102   : > { %v439_v5 = vrot.slane %v438_v3, 2  ;;  %v468_v6 = vadd.f32 %v467_v4, %v466_v2 }
 0x104   : > { %v440_v7 = vadd.f32 %v439_v5, %v438_v3  ;;  %v469_v8 = vrot.slane %v468_v6, 2 }
 0x106   : > { %v441_v9 = vrot.slane %v440_v7, 1  ;;  %v470_v10 = vadd.f32 %v469_v8, %v468_v6 }
 0x108   : > { %v442_v11 = vadd.f32 %v441_v9, %v440_v7  ;;  %v471_v12 = vrot.slane %v470_v10, 1 }
 0x10a   : > { %v443_v13 = vmul.f32 0.015625, %v442_v11  ;;  %v472_v14 = vadd.f32 %v471_v12, %v470_v10 }
 0x10c   : > { %v473_v15 = vmul.f32 0.015625, %v472_v14  ;;  %v474_v16 = vmul.f32 %v443_v13, %v443_v13  ;;  %v476_v17 = vsub.f32 %v3051_v23, %v443_v13  ;;  %v477_v18 = vsub.f32 %v3045_v20, %v443_v13 }
 0x10d   : > { %v478_v19 = vsub.f32 %v3061_v31, %v443_v13  ;;  %v479_v21 = vsub.f32 %v3059_v29, %v443_v13  ;;  %v480_v22 = vsub.f32 %v402_v40, %v443_v13  ;;  %v481_v24 = vsub.f32 %v2649_v38, %v443_v13 }
 0x10e   : > { %v475_v25 = vsub.f32 %v473_v15, %v474_v16  ;;  %v482_v26 = vsub.f32 %v412_v52, %v443_v13  ;;  %v483_v27 = vsub.f32 %v2652_v50, %v443_v13  ;;  %v2952_v15 = vmov -1.0  }
 0x110   : > { %v484_v28 = vadd.f32 1e-05, %v475_v25 }
 0x112   : > { %2869 = vrsqrt.f32 %v484_v28  ;;  %v3121_v28 = vsub.s32 %v713_v62, %v715_v44 }
 0x11c   : > { %v2870_v30 = vpop.eup %2869 }
 0x11d   : > { %v486_v33 = vmul.f32 %v2870_v30, %v476_v17  ;;  %v488_v34 = vmul.f32 %v2870_v30, %v478_v19  ;;  %v490_v35 = vmul.f32 %v2870_v30, %v480_v22  ;;  %v3085_v36 = vmul.f32 %v2870_v30, %v481_v24 }
 0x11e   : > { %v492_v23 = vmul.f32 %v2870_v30, %v482_v26  ;;  %v493_v20 = vmul.f32 %v2870_v30, %v483_v27  ;;  %v3087_v37 = vmul.f32 %v2870_v30, %v477_v18  ;;  %v3089_v31 = vmul.f32 %v2870_v30, %v479_v21 }
 0x11f   : > { %v502_v29 = vmul.f32 0.70710677, %v486_v33  ;;  %v504_v38 = vmul.f32 0.70710677, %v488_v34  ;;  %v506_v39 = vmul.f32 0.70710677, %v490_v35 }
 0x120   : > { %v3092_v40 = vmul.f32 0.70710677, %v3085_v36  ;;  %v508_v41 = vmul.f32 0.70710677, %v492_v23  ;;  %v3094_v45 = vmul.f32 0.5, %v486_v33  ;;  %v3096_v46 = vmul.f32 0.5, %v488_v34 }
 0x121   : > { %v509_v47 = vmul.f32 0.70710677, %v493_v20  ;;  %v526_v48 = vand.u32 2147483647, %v502_v29  ;;  %v3098_v49 = vmul.f32 0.5, %v490_v35  ;;  %v3100_v50 = vmul.f32 0.5, %v492_v23 }
 0x122   : > { %v3102_v51 = vmul.f32 0.5, %v493_v20  ;;  %vm510_vm2 = vcmp.ge.f32.partialorder %v502_v29, 0.0  ;;  %vm512_vm3 = vcmp.ge.f32.partialorder %v504_v38, 0.0  ;;  %vm514_vm4 = vcmp.ge.f32.partialorder %v506_v39, 0.0 }
 0x123   : > { %vm516_vm5 = vcmp.ge.f32.partialorder %v508_v41, 0.0  ;;  %v528_v52 = vand.u32 2147483647, %v504_v38  ;;  %v530_v53 = vand.u32 2147483647, %v506_v39  ;;  %v630_v2 = vsub.f32 0.0, %v526_v48 }
 0x124   : > { %v531_v54 = vand.u32 2147483647, %v3092_v40  ;;  %v532_v55 = vand.u32 2147483647, %v508_v41  ;;  %v533_v56 = vand.u32 2147483647, %v509_v47 }
 0x125   : > { %v534_v57 = vmul.f32 0.3275911, %v526_v48  ;;  %v536_v58 = vmul.f32 0.3275911, %v528_v52  ;;  %v538_v59 = vmul.f32 0.3275911, %v530_v53  ;;  %v638_v12 = vmul.f32 %v630_v2, %v526_v48 }
 0x126   : > { %v539_v60 = vmul.f32 0.3275911, %v531_v54  ;;  %v540_v61 = vmul.f32 0.3275911, %v532_v55  ;;  %v541_v63 = vmul.f32 0.3275911, %v533_v56 }
 0x127   : > { %v542_v0 = vadd.f32 1.0, %v534_v57  ;;  %v544_v1 = vadd.f32 1.0, %v536_v58  ;;  %v546_v3 = vadd.f32 1.0, %v538_v59  ;;  %v632_v6 = vsub.f32 0.0, %v528_v52 }
 0x128   : > { %v547_v4 = vadd.f32 1.0, %v539_v60  ;;  %v548_v5 = vadd.f32 1.0, %v540_v61  ;;  %v549_v7 = vadd.f32 1.0, %v541_v63  ;;  %v634_v8 = vsub.f32 0.0, %v530_v53 }
 0x129   : > { %2871 = vrcp.f32 %v542_v0  ;;  %v635_v9 = vsub.f32 0.0, %v531_v54  ;;  %v636_v10 = vsub.f32 0.0, %v532_v55  ;;  %v637_v11 = vsub.f32 0.0, %v533_v56 }
 0x12a   : > { %2873 = vrcp.f32 %v544_v1  ;;  %vm517_vm6 = vcmp.ge.f32.partialorder %v509_v47, 0.0  ;;  %v640_v13 = vmul.f32 %v632_v6, %v528_v52  ;;  %v642_v14 = vmul.f32 %v634_v8, %v530_v53  ;;  %v1235_v6 = vld [vmem:[%s3891_s2 + $0x10] sm:$0xff] }
 0x12b   : > { %2875 = vrcp.f32 %v546_v3  ;;  %v3107_v16 = vsel %vm510_vm2, 1.0, %v2952_v15  ;;  %v643_v17 = vmul.f32 %v635_v9, %v531_v54  ;;  %v644_v18 = vmul.f32 %v636_v10, %v532_v55 }
 0x12c   : > { %2877 = vrcp.f32 %v547_v4  ;;  %v3111_v19 = vsel %vm512_vm3, 1.0, %v2952_v15  ;;  %v645_v21 = vmul.f32 %v637_v11, %v533_v56  ;;  %v646_v22 = vmul.f32 1.442695, %v638_v12 }
 0x12d   : > { %2879 = vrcp.f32 %v548_v5  ;;  %v3115_v24 = vsel %vm514_vm4, 1.0, %v2952_v15  ;;  %v3119_v25 = vsel %vm516_vm5, 1.0, %v2952_v15  ;;  %v650_v26 = vmul.f32 1.442695, %v640_v13 }
 0x12e   : > { %2881 = vrcp.f32 %v549_v7  ;;  %v654_v27 = vmul.f32 1.442695, %v642_v14  ;;  %v503_v30 = vmul.f32 0.70710677, %v3087_v37  ;;  %v505_v32 = vmul.f32 0.70710677, %v3089_v31 }
 0x12f   : > { %v3127_v33 = vsel %vm517_vm6, 1.0, %v2952_v15  ;;  %v656_v34 = vmul.f32 1.442695, %v643_v17  ;;  %v3129_v35 = vmul.f32 1.442695, %v644_v18  ;;  %2883 = vpow2.f32 %v646_v22  ;;  %v1236_v7 = vld [vmem:[%s3891_s2 + $0x18] sm:$0xff] }
 0x130   : > { %v3131_v23 = vmul.f32 1.442695, %v645_v21  ;;  %v3134_v20 = vmul.f32 0.5, %v3087_v37  ;;  %v527_v29 = vand.u32 2147483647, %v503_v30  ;;  %v2953_v38 = vmov 0.0  }
 0x131   : > { %1104 = vst.msk [vmem:[#allocation2 + $0x28] sm:$0xff] %vm421_vm1, %v2953_v38  ;;  %1103 = vst.msk [vmem:[#allocation2] sm:$0xff] %vm421_vm1, %v2953_v38  ;;  %2885 = vpow2.f32 %v650_v26  ;;  %v3145_v39 = vmul.f32 0.5, %v3089_v31  ;;  %v529_v37 = vand.u32 2147483647, %v505_v32  ;;  %v3148_v41 = vmul.f32 0.5, %v3085_v36 }
 0x132   : > { %2025 = vst.msk [vmem:[#allocation4] sm:$0xff] %vm291_vm0, %v2953_v38  ;;  %2026 = vst.msk [vmem:[#allocation4 + $0x10] sm:$0xff] %vm291_vm0, %v2953_v38  ;;  %2887 = vpow2.f32 %v654_v27  ;;  %vm511_vm7 = vcmp.ge.f32.partialorder %v503_v30, 0.0  ;;  %v535_v47 = vmul.f32 0.3275911, %v527_v29  ;;  %vm515_vm8 = vcmp.ge.f32.partialorder %v3092_v40, 0.0 }
 0x133   : > { %v3156_v44 = vpop.eup %2871  ;;  %2889 = vpow2.f32 %v656_v34  ;;  %vm513_vm9 = vcmp.ge.f32.partialorder %v505_v32, 0.0  ;;  %v537_v48 = vmul.f32 0.3275911, %v529_v37  ;;  %v631_v55 = vsub.f32 0.0, %v527_v29 }
 0x134   : > { %v3159_v31 = vpop.eup %2873  ;;  %v558_v36 = vmul.f32 1.0614054, %v3156_v44  ;;  %v543_v54 = vadd.f32 1.0, %v535_v47  ;;  %v2733_v56 = vpack.c.bf16 %v1234_v43, %v1233_v42  ;;  %v3170_v60 = vsel %vm511_vm7, 1.0, %v2952_v15 }
 0x135   : > { %v3162_v52 = vpop.eup %2875  ;;  %v560_v53 = vmul.f32 1.0614054, %v3159_v31  ;;  %v545_v61 = vadd.f32 1.0, %v537_v48  ;;  %v633_v0 = vsub.f32 0.0, %v529_v37  ;;  %v3189_v10 = vsel %vm513_vm9, 1.0, %v2952_v15 }
 0x136   : > { %v3165_v57 = vpop.eup %2877  ;;  %v562_v58 = vmul.f32 1.0614054, %v3162_v52  ;;  %v566_v59 = vadd.f32 -1.4531521, %v558_v36  ;;  %2891 = vrcp.f32 %v543_v54  ;;  %2734 = vmatprep.subr.bf16.mxu1 %v2733_v56  ;;  %v639_v11 = vmul.f32 %v631_v55, %v527_v29 }
 0x137   : > { %v3172_v62 = vpop.eup %2879  ;;  %v568_v63 = vadd.f32 -1.4531521, %v560_v53  ;;  %v563_v1 = vmul.f32 1.0614054, %v3165_v57  ;;  %2893 = vrcp.f32 %v545_v61  ;;  %2736 = vmatpush3.bf16.msra.mxu1 %v2733_v56  ;;  %v641_v26 = vmul.f32 %v633_v0, %v529_v37 }
 0x138   : > { %v3175_v2 = vpop.eup %2881  ;;  %v564_v3 = vmul.f32 1.0614054, %v3172_v62  ;;  %v570_v4 = vadd.f32 -1.4531521, %v562_v58  ;;  %v574_v5 = vmul.f32 %v3156_v44, %v566_v59  ;;  %v2737_v27 = vpack.c.bf16 %v1236_v7, %v1235_v6 }
 0x139   : > { %v565_v8 = vmul.f32 1.0614054, %v3175_v2  ;;  %v576_v9 = vmul.f32 %v3159_v31, %v568_v63  ;;  %v571_v17 = vadd.f32 -1.4531521, %v563_v1  ;;  %v2884_v18 = vpop.eup %2883  ;;  %v648_v48 = vmul.f32 1.442695, %v639_v11 }
 0x13a   : > { %v572_v12 = vadd.f32 -1.4531521, %v564_v3  ;;  %v578_v13 = vmul.f32 %v3162_v52, %v570_v4  ;;  %v582_v14 = vadd.f32 1.4214138, %v574_v5  ;;  %v3200_v53 = vsel %vm515_vm8, 1.0, %v2952_v15  ;;  %2738 = vmatprep.subr.bf16.mxu1 %v2737_v27 }
 0x13b   : > { %v573_v21 = vadd.f32 -1.4531521, %v565_v8  ;;  %v584_v22 = vadd.f32 1.4214138, %v576_v9  ;;  %v2886_v30 = vpop.eup %2885  ;;  %v579_v32 = vmul.f32 %v3165_v57, %v571_v17  ;;  %2740 = vmatpush3.bf16.msra.mxu1 %v2737_v27  ;;  %2895 = vpow2.f32 %v3129_v35 }
 0x13c   : > { %v580_v34 = vmul.f32 %v3172_v62, %v572_v12  ;;  %v586_v42 = vadd.f32 1.4214138, %v578_v13  ;;  %v590_v43 = vmul.f32 %v3156_v44, %v582_v14  ;;  %v2888_v47 = vpop.eup %2887  ;;  %v652_v63 = vmul.f32 1.442695, %v641_v26 }
 0x13d   : > { %v581_v29 = vmul.f32 %v3175_v2, %v573_v21  ;;  %v592_v36 = vmul.f32 %v3159_v31, %v584_v22  ;;  %v3202_v37 = vpop.eup %2889  ;;  %v587_v58 = vadd.f32 1.4214138, %v579_v32  ;;  %2897 = vpow2.f32 %v3131_v23 }
 0x13e   : > { %v588_v54 = vadd.f32 1.4214138, %v580_v34  ;;  %v594_v55 = vmul.f32 %v3162_v52, %v586_v42  ;;  %v598_v56 = vadd.f32 -0.28449672, %v590_v43  ;;  %2899 = vpow2.f32 %v648_v48 }
 0x13f   : > { %v589_v59 = vadd.f32 1.4214138, %v581_v29  ;;  %v600_v61 = vadd.f32 -0.28449672, %v592_v36  ;;  %v595_v6 = vmul.f32 %v3165_v57, %v587_v58  ;;  %2901 = vpow2.f32 %v652_v63 }
 0x140   : > { %v596_v0 = vmul.f32 %v3172_v62, %v588_v54  ;;  %v602_v1 = vadd.f32 -0.28449672, %v594_v55  ;;  %v606_v40 = vmul.f32 %v3156_v44, %v598_v56  ;;  %v3209_v3 = vpop.eup %2891  ;;  %vm1147_vm2 = vcmask 1046534  }
 0x141   : > { %v597_v4 = vmul.f32 %v3175_v2, %v589_v59  ;;  %v608_v5 = vmul.f32 %v3159_v31, %v600_v61  ;;  %v3214_v7 = vpop.eup %2893  ;;  %v559_v11 = vmul.f32 1.0614054, %v3209_v3  ;;  %v603_v42 = vadd.f32 -0.28449672, %v595_v6 }
 0x142   : > { %v604_v35 = vadd.f32 -0.28449672, %v596_v0  ;;  %v610_v8 = vmul.f32 %v3162_v52, %v602_v1  ;;  %v614_v9 = vadd.f32 0.2548296, %v606_v40  ;;  %v561_v23 = vmul.f32 1.0614054, %v3214_v7 }
 0x143   : > { %v605_v12 = vadd.f32 -0.28449672, %v597_v4  ;;  %v616_v13 = vadd.f32 0.2548296, %v608_v5  ;;  %v567_v22 = vadd.f32 -1.4531521, %v559_v11  ;;  %v611_v56 = vmul.f32 %v3165_v57, %v603_v42 }
 0x144   : > { %v612_v14 = vmul.f32 %v3172_v62, %v604_v35  ;;  %v618_v17 = vadd.f32 0.2548296, %v610_v8  ;;  %v622_v21 = vmul.f32 %v3156_v44, %v614_v9  ;;  %v569_v34 = vadd.f32 -1.4531521, %v561_v23 }
 0x145   : > { %v613_v26 = vmul.f32 %v3175_v2, %v605_v12  ;;  %v624_v27 = vmul.f32 %v3159_v31, %v616_v13  ;;  %v575_v36 = vmul.f32 %v3209_v3, %v567_v22  ;;  %v2896_v31 = vpop.eup %2895  ;;  %vm1149_vm3 = vcmask 1047559  }
 0x146   : > { %v620_v43 = vadd.f32 0.2548296, %v612_v14  ;;  %v626_v32 = vmul.f32 %v3162_v52, %v618_v17  ;;  %v662_v29 = vmul.f32 %v2884_v18, %v622_v21  ;;  %v577_v55 = vmul.f32 %v3214_v7, %v569_v34 }
 0x147   : > { %v621_v48 = vadd.f32 0.2548296, %v613_v26  ;;  %v664_v54 = vmul.f32 %v2886_v30, %v624_v27  ;;  %v583_v61 = vadd.f32 1.4214138, %v575_v36  ;;  %v619_v52 = vadd.f32 0.2548296, %v611_v56  ;;  %v2898_v18 = vpop.eup %2897 }
 0x148   : > { %v628_v44 = vmul.f32 %v3172_v62, %v620_v43  ;;  %v666_v58 = vmul.f32 %v2888_v47, %v626_v32  ;;  %v670_v59 = vsub.f32 1.0, %v662_v29  ;;  %v585_v1 = vadd.f32 1.4214138, %v577_v55  ;;  %v2900_v6 = vpop.eup %2899 }
 0x149   : > { %v629_v63 = vmul.f32 %v3175_v2, %v621_v48  ;;  %v672_v0 = vsub.f32 1.0, %v664_v54  ;;  %v591_v5 = vmul.f32 %v3209_v3, %v583_v61  ;;  %v627_v8 = vmul.f32 %v3165_v57, %v619_v52  ;;  %v2902_v13 = vpop.eup %2901 }
 0x14a   : > { %v668_v40 = vmul.f32 %v2896_v31, %v628_v44  ;;  %v674_v4 = vsub.f32 1.0, %v666_v58  ;;  %v678_v30 = vmul.f32 %v670_v59, %v3107_v16  ;;  %v593_v47 = vmul.f32 %v3214_v7, %v585_v1 }
 0x14b   : > { %v669_v35 = vmul.f32 %v2898_v18, %v629_v63  ;;  %v680_v62 = vmul.f32 %v672_v0, %v3111_v19  ;;  %v599_v12 = vadd.f32 -0.28449672, %v591_v5  ;;  %v3236_v17 = vmul.f32 %v3202_v37, %v627_v8 }
 0x14c   : > { %v676_v2 = vsub.f32 1.0, %v668_v40  ;;  %v682_v9 = vmul.f32 %v674_v4, %v3115_v24  ;;  %v686_v11 = vadd.f32 1.0, %v678_v30  ;;  %v601_v16 = vadd.f32 -0.28449672, %v593_v47 }
 0x14d   : > { %v677_v23 = vsub.f32 1.0, %v669_v35  ;;  %v688_v14 = vadd.f32 1.0, %v680_v62  ;;  %v607_v26 = vmul.f32 %v3209_v3, %v599_v12  ;;  %v675_v34 = vsub.f32 1.0, %v3236_v17 }
 0x14e   : > { %v684_v21 = vmul.f32 %v676_v2, %v3119_v25  ;;  %v690_v19 = vadd.f32 1.0, %v682_v9  ;;  %v694_v22 = vmul.f32 %v686_v11, %v3094_v45  ;;  %v609_v27 = vmul.f32 %v3214_v7, %v601_v16 }
 0x14f   : > { %v685_v57 = vmul.f32 %v677_v23, %v3127_v33  ;;  %v696_v24 = vmul.f32 %v688_v14, %v3096_v46  ;;  %v615_v37 = vadd.f32 0.2548296, %v607_v26  ;;  %vm1228_vm4 = vcmask 261120  }
 0x150   : > { %v692_v42 = vadd.f32 1.0, %v684_v21  ;;  %v3246_v43 = vmul.f32 %v690_v19, %v3098_v49  ;;  %v710_v32 = vcombine.high %v694_v22, %v694_v22  ;;  %v617_v29 = vadd.f32 0.2548296, %v609_v27  ;;  %1686 = vst.msk [vmem:[#allocation3] sm:$0xff] %vm1228_vm4, %v2953_v38  ;;  %1687 = vst.msk [vmem:[#allocation3 + $0x18] sm:$0xff] %vm1228_vm4, %v2953_v38 }
 0x151   : > { %v693_v25 = vadd.f32 1.0, %v685_v57  ;;  %v3249_v45 = vrot.slane %v694_v22, %v3121_v28  ;;  %v744_v36 = vcombine.high %v696_v24, %v696_v24  ;;  %v623_v46 = vmul.f32 %v3209_v3, %v615_v37 }
 0x152   : > { %v700_v33 = vmul.f32 %v692_v42, %v3100_v50  ;;  %v3254_v48 = vrot.slane %v710_v32, %v3121_v28  ;;  %v3257_v54 = vrot.slane %v696_v24, %v3121_v28  ;;  %v625_v55 = vmul.f32 %v3214_v7, %v617_v29 }
 0x153   : > { %v701_v49 = vmul.f32 %v693_v25, %v3102_v51  ;;  %v725_v56 = vcombine.high %v3249_v45, %v3249_v45  ;;  %v3264_v44 = vrot.slane %v744_v36, %v3121_v28  ;;  %v663_v3 = vmul.f32 %v2900_v6, %v623_v46 }
 0x154   : > { %v812_v58 = vcombine.high %v700_v33, %v700_v33  ;;  %v819_v50 = vrot.slane %v700_v33, %v3121_v28  ;;  %v726_v59 = vcombine.high %v3254_v48, %v3254_v48  ;;  %v665_v63 = vmul.f32 %v2902_v13, %v625_v55 }
 0x155   : > { %v829_v61 = vcombine.high %v701_v49, %v701_v49  ;;  %v836_v31 = vrot.slane %v701_v49, %v3121_v28  ;;  %v759_v51 = vcombine.high %v3257_v54, %v3257_v54  ;;  %v671_v52 = vsub.f32 1.0, %v663_v3 }
 0x156   : > { %v826_v7 = vrot.slane %v812_v58, %v3121_v28  ;;  %v827_v0 = vcombine.high %v819_v50, %v819_v50  ;;  %v1047_v1 = vsel %vm878_vm10, %v819_v50, -inf  ;;  %v673_v24 = vsub.f32 1.0, %v665_v63 }
 0x157   : > { %v3275_v18 = vrot.slane %v829_v61, %v3121_v28  ;;  %v844_v40 = vcombine.high %v836_v31, %v836_v31  ;;  %v1048_v4 = vrot.slane %v1047_v1, 4  ;;  %v1075_v30 = vsel %vm878_vm10, %v836_v31, -inf }
 0x158   : > { %v828_v5 = vcombine.high %v826_v7, %v826_v7  ;;  %v1054_v6 = vsel %vm878_vm10, %v827_v0, -inf  ;;  %v1061_v35 = vsel %vm878_vm10, %v826_v7, -inf  ;;  %v1076_v62 = vrot.slane %v1075_v30, 4 }
 0x159   : > { %v1049_v47 = vmax.f32 %v1047_v1, %v1048_v4  ;;  %v1055_v8 = vrot.slane %v1054_v6, 4  ;;  %v1062_v2 = vrot.slane %v1061_v35, 4  ;;  %v1082_v9 = vsel %vm878_vm10, %v844_v40, -inf }
 0x15a   : > { %v1068_v11 = vsel %vm878_vm10, %v828_v5, -inf  ;;  %v1077_v12 = vmax.f32 %v1075_v30, %v1076_v62  ;;  %v1083_v13 = vrot.slane %v1082_v9, 4  ;;  %v1089_v23 = vsel %vm878_vm10, %v3275_v18, -inf }
 0x15b   : > { %v1050_v14 = vrot.slane %v1049_v47, 2  ;;  %v1056_v16 = vmax.f32 %v1054_v6, %v1055_v8  ;;  %v1063_v21 = vmax.f32 %v1061_v35, %v1062_v2  ;;  %v1069_v19 = vrot.slane %v1068_v11, 4 }
 0x15c   : > { %v1078_v22 = vrot.slane %v1077_v12, 2  ;;  %v1084_v26 = vmax.f32 %v1082_v9, %v1083_v13  ;;  %v1090_v57 = vrot.slane %v1089_v23, 4  ;;  %v679_v33 = vmul.f32 %v671_v52, %v3170_v60 }
 0x15d   : > { %v1051_v27 = vmax.f32 %v1049_v47, %v1050_v14  ;;  %v1057_v42 = vrot.slane %v1056_v16, 2  ;;  %v1064_v37 = vrot.slane %v1063_v21, 2  ;;  %v1070_v32 = vmax.f32 %v1068_v11, %v1069_v19 }
 0x15e   : > { %v1079_v25 = vmax.f32 %v1077_v12, %v1078_v22  ;;  %v1085_v29 = vrot.slane %v1084_v26, 2  ;;  %v1091_v36 = vmax.f32 %v1089_v23, %v1090_v57  ;;  %v681_v31 = vmul.f32 %v673_v24, %v3189_v10 }
 0x15f   : > { %v1052_v46 = vrot.slane %v1051_v27, 1  ;;  %v1058_v49 = vmax.f32 %v1056_v16, %v1057_v42  ;;  %v1065_v55 = vmax.f32 %v1063_v21, %v1064_v37  ;;  %v1071_v58 = vrot.slane %v1070_v32, 2 }
 0x160   : > { %v1080_v50 = vrot.slane %v1079_v25, 1  ;;  %v1086_v3 = vmax.f32 %v1084_v26, %v1085_v29  ;;  %v1092_v61 = vrot.slane %v1091_v36, 2  ;;  %v687_v5 = vadd.f32 1.0, %v679_v33 }
 0x161   : > { %v1053_v63 = vmax.f32 %v1051_v27, %v1052_v46  ;;  %v1059_v7 = vrot.slane %v1058_v49, 1  ;;  %v1066_v0 = vrot.slane %v1065_v55, 1  ;;  %v1072_v1 = vmax.f32 %v1070_v32, %v1071_v58 }
 0x162   : > { %v1081_v40 = vmax.f32 %v1079_v25, %v1080_v50  ;;  %v1087_v4 = vrot.slane %v1086_v3, 1  ;;  %v1093_v30 = vmax.f32 %v1091_v36, %v1092_v61  ;;  %v689_v35 = vadd.f32 1.0, %v681_v31 }
 0x163   : > { %v1060_v6 = vmax.f32 %v1058_v49, %v1059_v7  ;;  %v1067_v60 = vmax.f32 %v1065_v55, %v1066_v0  ;;  %v1073_v52 = vrot.slane %v1072_v1, 1  ;;  %v695_v8 = vmul.f32 %v687_v5, %v3134_v20 }
 0x164   : > { %v1088_v62 = vmax.f32 %v1086_v3, %v1087_v4  ;;  %v1094_v47 = vrot.slane %v1093_v30, 1  ;;  %v760_v2 = vcombine.high %v3264_v44, %v3264_v44  ;;  %v697_v11 = vmul.f32 %v689_v35, %v3145_v39 }
 0x165   : > { %v1074_v10 = vmax.f32 %v1072_v1, %v1073_v52  ;;  %v1165_v9 = vsel %vm1137_vm11, %v1060_v6, %v1053_v63  ;;  %v879_v12 = vsel %vm878_vm10, %v3249_v45, -inf  ;;  %v727_v14 = vcombine.high %v695_v8, %v695_v8 }
 0x166   : > { %v1095_v13 = vmax.f32 %v1093_v30, %v1094_v47  ;;  %v1166_v23 = vsel %vm1139_vm12, %v1067_v60, %v1165_v9  ;;  %v734_v16 = vrot.slane %v695_v8, %v3121_v28  ;;  %v761_v20 = vcombine.high %v697_v11, %v697_v11 }
 0x167   : > { %v1167_v21 = vsel %vm1141_vm13, %v1074_v10, %v1166_v23  ;;  %v3297_v19 = vrot.slane %v697_v11, %v3121_v28  ;;  %v880_v22 = vrot.slane %v879_v12, 4  ;;  %v741_v39 = vrot.slane %v727_v14, %v3121_v28 }
 0x168   : > { %v1168_v26 = vsel %vm1143_vm14, %v1081_v40, %v1167_v21  ;;  %v742_v57 = vcombine.high %v734_v16, %v734_v16  ;;  %v886_v24 = vsel %vm878_vm10, %v725_v56, -inf  ;;  %v3307_v42 = vrot.slane %v761_v20, %v3121_v28 }
 0x169   : > { %v1169_v27 = vsel %vm1145_vm15, %v1088_v62, %v1168_v26  ;;  %v776_v37 = vcombine.high %v3297_v19, %v3297_v19  ;;  %v881_v32 = vmax.f32 %v879_v12, %v880_v22  ;;  %v743_v29 = vcombine.high %v741_v39, %v741_v39 }
 0x16a   : > { %v3312_v25 = vsel %vm1147_vm2, %v1095_v13, %v1169_v27  ;;  %v887_v36 = vrot.slane %v886_v24, 4  ;;  %v893_v33 = vsel %vm878_vm10, %v3254_v48, -inf  ;;  %v777_v45 = vcombine.high %v3307_v42, %v3307_v42 }
 0x16b   : > { %v882_v56 = vrot.slane %v881_v32, 2  ;;  %v894_v46 = vrot.slane %v893_v33, 4  ;;  %v900_v49 = vsel %vm878_vm10, %v726_v59, -inf  ;;  %v907_v50 = vsel %vm878_vm10, %v734_v16, -inf }
 0x16c   : > { %v888_v55 = vmax.f32 %v886_v24, %v887_v36  ;;  %v901_v58 = vrot.slane %v900_v49, 4  ;;  %v914_v3 = vsel %vm878_vm10, %v742_v57, -inf  ;;  %v908_v63 = vrot.slane %v907_v50, 4 }
 0x16d   : > { %v883_v61 = vmax.f32 %v881_v32, %v882_v56  ;;  %v895_v31 = vmax.f32 %v893_v33, %v894_v46  ;;  %v915_v7 = vrot.slane %v914_v3, 4  ;;  %v921_v40 = vsel %vm878_vm10, %v741_v39, -inf }
 0x16e   : > { %v889_v0 = vrot.slane %v888_v55, 2  ;;  %v902_v1 = vmax.f32 %v900_v49, %v901_v58  ;;  %v928_v4 = vsel %vm878_vm10, %v743_v29, -inf  ;;  %v909_v5 = vmax.f32 %v907_v50, %v908_v63 }
 0x16f   : > { %v884_v30 = vrot.slane %v883_v61, 1  ;;  %v896_v48 = vrot.slane %v895_v31, 2  ;;  %v916_v59 = vmax.f32 %v914_v3, %v915_v7  ;;  %v922_v52 = vrot.slane %v921_v40, 4 }
 0x170   : > { %v890_v6 = vmax.f32 %v888_v55, %v889_v0  ;;  %v903_v60 = vrot.slane %v902_v1, 2  ;;  %v929_v35 = vrot.slane %v928_v4, 4  ;;  %v910_v8 = vrot.slane %v909_v5, 2 }
 0x171   : > { %v3326_v62 = vmax.f32 %v883_v61, %v884_v30  ;;  %v897_v47 = vmax.f32 %v895_v31, %v896_v48  ;;  %v917_v10 = vrot.slane %v916_v59, 2  ;;  %v923_v12 = vmax.f32 %v921_v40, %v922_v52 }
 0x172   : > { %v891_v9 = vrot.slane %v890_v6, 1  ;;  %v904_v11 = vmax.f32 %v902_v1, %v903_v60  ;;  %v930_v13 = vmax.f32 %v928_v4, %v929_v35  ;;  %v911_v14 = vmax.f32 %v909_v5, %v910_v8 }
 0x173   : > { %v898_v23 = vrot.slane %v897_v47, 1  ;;  %v918_v16 = vmax.f32 %v916_v59, %v917_v10  ;;  %v935_v21 = vsel %vm878_vm10, %v3257_v54, -inf  ;;  %v924_v26 = vrot.slane %v923_v12, 2 }
 0x174   : > { %v892_v20 = vmax.f32 %v890_v6, %v891_v9  ;;  %v905_v22 = vrot.slane %v904_v11, 1  ;;  %v931_v39 = vrot.slane %v930_v13, 2  ;;  %v912_v24 = vrot.slane %v911_v14, 1 }
 0x175   : > { %v899_v57 = vmax.f32 %v897_v47, %v898_v23  ;;  %v919_v27 = vrot.slane %v918_v16, 1  ;;  %v936_v32 = vrot.slane %v935_v21, 4  ;;  %v925_v36 = vmax.f32 %v923_v12, %v924_v26 }
 0x176   : > { %v906_v29 = vmax.f32 %v904_v11, %v905_v22  ;;  %v932_v33 = vmax.f32 %v930_v13, %v931_v39  ;;  %v942_v56 = vsel %vm878_vm10, %v759_v51, -inf  ;;  %v3334_v46 = vmax.f32 %v911_v14, %v912_v24 }
 0x177   : > { %v3336_v49 = vmax.f32 %v918_v16, %v919_v27  ;;  %v937_v55 = vmax.f32 %v935_v21, %v936_v32  ;;  %v943_v58 = vrot.slane %v942_v56, 4  ;;  %v926_v50 = vrot.slane %v925_v36, 1 }
 0x178   : > { %v933_v3 = vrot.slane %v932_v33, 1  ;;  %v949_v61 = vsel %vm878_vm10, %v3264_v44, -inf  ;;  %v956_v31 = vsel %vm878_vm10, %v760_v2, -inf  ;;  %v963_v40 = vsel %vm878_vm10, %v3297_v19, -inf }
 0x179   : > { %v938_v63 = vrot.slane %v937_v55, 2  ;;  %v944_v54 = vmax.f32 %v942_v56, %v943_v58  ;;  %v950_v7 = vrot.slane %v949_v61, 4  ;;  %v957_v51 = vrot.slane %v956_v31, 4 }
 0x17a   : > { %v927_v0 = vmax.f32 %v925_v36, %v926_v50  ;;  %v3344_v1 = vmax.f32 %v932_v33, %v933_v3  ;;  %v970_v4 = vsel %vm878_vm10, %v776_v37, -inf  ;;  %v964_v2 = vrot.slane %v963_v40, 4 }
 0x17b   : > { %v939_v30 = vmax.f32 %v937_v55, %v938_v63  ;;  %v945_v48 = vrot.slane %v944_v54, 2  ;;  %v951_v44 = vmax.f32 %v949_v61, %v950_v7  ;;  %v958_v5 = vmax.f32 %v956_v31, %v957_v51 }
 0x17c   : > { %v971_v59 = vrot.slane %v970_v4, 4  ;;  %v977_v6 = vsel %vm878_vm10, %v3307_v42, -inf  ;;  %v984_v60 = vsel %vm878_vm10, %v777_v45, -inf  ;;  %v965_v8 = vmax.f32 %v963_v40, %v964_v2 }
 0x17d   : > { %v940_v52 = vrot.slane %v939_v30, 1  ;;  %v946_v35 = vmax.f32 %v944_v54, %v945_v48  ;;  %v952_v47 = vrot.slane %v951_v44, 2  ;;  %v959_v19 = vrot.slane %v958_v5, 2 }
 0x17e   : > { %v972_v37 = vmax.f32 %v970_v4, %v971_v59  ;;  %v978_v10 = vrot.slane %v977_v6, 4  ;;  %v985_v9 = vrot.slane %v984_v60, 4  ;;  %v966_v14 = vrot.slane %v965_v8, 2 }
 0x17f   : > { %v941_v11 = vmax.f32 %v939_v30, %v940_v52  ;;  %v947_v12 = vrot.slane %v946_v35, 1  ;;  %v953_v13 = vmax.f32 %v951_v44, %v952_v47  ;;  %v960_v23 = vmax.f32 %v958_v5, %v959_v19 }
 0x180   : > { %v973_v16 = vrot.slane %v972_v37, 2  ;;  %v979_v21 = vmax.f32 %v977_v6, %v978_v10  ;;  %v986_v22 = vmax.f32 %v984_v60, %v985_v9  ;;  %v1138_v39 = vsel %vm1137_vm11, %v892_v20, %v3326_v62 }
 0x181   : > { %v948_v42 = vmax.f32 %v946_v35, %v947_v12  ;;  %v954_v26 = vrot.slane %v953_v13, 1  ;;  %v961_v45 = vrot.slane %v960_v23, 1  ;;  %v967_v24 = vmax.f32 %v965_v8, %v966_v14 }
 0x182   : > { %v974_v27 = vmax.f32 %v972_v37, %v973_v16  ;;  %v980_v32 = vrot.slane %v979_v21, 2  ;;  %v987_v36 = vrot.slane %v986_v22, 2  ;;  %v1140_v55 = vsel %vm1139_vm12, %v899_v57, %v1138_v39 }
 0x183   : > { %v955_v33 = vmax.f32 %v953_v13, %v954_v26  ;;  %v962_v56 = vmax.f32 %v960_v23, %v961_v45  ;;  %v1151_v58 = vsel %vm1137_vm11, %v948_v42, %v941_v11  ;;  %v968_v50 = vrot.slane %v967_v24, 1 }
 0x184   : > { %v975_v3 = vrot.slane %v974_v27, 1  ;;  %v981_v61 = vmax.f32 %v979_v21, %v980_v32  ;;  %v988_v31 = vmax.f32 %v986_v22, %v987_v36  ;;  %v1142_v63 = vsel %vm1141_vm13, %v906_v29, %v1140_v55 }
 0x185   : > { %v1152_v54 = vsel %vm1139_vm12, %v955_v33, %v1151_v58  ;;  %v683_v62 = vmul.f32 %v675_v34, %v3200_v53  ;;  %v778_v20 = vcombine.high %v3246_v43, %v3246_v43  ;;  %v969_v7 = vmax.f32 %v967_v24, %v968_v50 }
 0x186   : > { %v976_v51 = vmax.f32 %v974_v27, %v975_v3  ;;  %v982_v57 = vrot.slane %v981_v61, 1  ;;  %v989_v40 = vrot.slane %v988_v31, 1  ;;  %v1144_v4 = vsel %vm1143_vm14, %v3334_v46, %v1142_v63 }
 0x187   : > { %v1153_v30 = vsel %vm1141_vm13, %v962_v56, %v1152_v54  ;;  %v691_v48 = vadd.f32 1.0, %v683_v62  ;;  %v785_v29 = vrot.slane %v3246_v43, %v3121_v28  ;;  %v1146_v53 = vsel %vm1145_vm15, %v3336_v49, %v1144_v4 }
 0x188   : > { %v983_v44 = vmax.f32 %v981_v61, %v982_v57  ;;  %v990_v5 = vmax.f32 %v988_v31, %v989_v40  ;;  %v1154_v17 = vsel %vm1143_vm14, %v969_v7, %v1153_v30  ;;  %v1148_v34 = vsel %vm1147_vm2, %v927_v0, %v1146_v53 }
 0x189   : > { %v1155_v2 = vsel %vm1145_vm15, %v976_v51, %v1154_v17  ;;  %v699_v59 = vmul.f32 %v691_v48, %v3148_v41  ;;  %v792_v46 = vrot.slane %v778_v20, %v3121_v28  ;;  %v1150_v6 = vsel %vm1149_vm3, %v3344_v1, %v1148_v34  ;;  %v1237_v17 = vld [vmem:[%s3891_s2 + $0x20] sm:$0xff]  ;;  %v1238_v34 = vld [vmem:[%s3891_s2 + $0x28] sm:$0xff] }
 0x18a   : > { %v1156_v43 = vsel %vm1147_vm2, %v983_v44, %v1155_v2  ;;  %v793_v60 = vcombine.high %v785_v29, %v785_v29  ;;  %v991_v52 = vsel %vm878_vm10, %v785_v29, -inf  ;;  %1176 = vst.msk [vmem:[#allocation2 + $0x8] sm:$0xff] %vm421_vm1, %v1150_v6  ;;  %v845_v8 = vcombine.high %v3275_v18, %v3275_v18 }
 0x18b   : > { %v1157_v49 = vsel %vm1149_vm3, %v990_v5, %v1156_v43  ;;  %v794_v35 = vcombine.high %v792_v46, %v792_v46  ;;  %v795_v0 = vcombine.high %v699_v59, %v699_v59  ;;  %v802_v47 = vrot.slane %v699_v59, %v3121_v28 }
 0x18c   : > { %1177 = vst.msk [vmem:[#allocation2 + $0x10] sm:$0xff] %vm421_vm1, %v1157_v49  ;;  %v992_v41 = vrot.slane %v991_v52, 4  ;;  %v998_v19 = vsel %vm878_vm10, %v793_v60, -inf  ;;  %v1005_v1 = vsel %vm878_vm10, %v792_v46, -inf  ;;  %v1096_v14 = vsel %vm878_vm10, %v845_v8, -inf }
 0x18d   : > { %v809_v37 = vrot.slane %v795_v0, %v3121_v28  ;;  %v810_v10 = vcombine.high %v802_v47, %v802_v47  ;;  %v999_v9 = vrot.slane %v998_v19, 4  ;;  %v1006_v11 = vrot.slane %v1005_v1, 4 }
 0x18e   : > { %v993_v12 = vmax.f32 %v991_v52, %v992_v41  ;;  %v1012_v13 = vsel %vm878_vm10, %v794_v35, -inf  ;;  %v1019_v23 = vsel %vm878_vm10, %v802_v47, -inf  ;;  %v1097_v49 = vrot.slane %v1096_v14, 4 }
 0x18f   : > { %v811_v16 = vcombine.high %v809_v37, %v809_v37  ;;  %v1000_v21 = vmax.f32 %v998_v19, %v999_v9  ;;  %v1007_v22 = vmax.f32 %v1005_v1, %v1006_v11  ;;  %v1013_v42 = vrot.slane %v1012_v13, 4 }
 0x190   : > { %v994_v26 = vrot.slane %v993_v12, 2  ;;  %v1020_v45 = vrot.slane %v1019_v23, 4  ;;  %v1026_v18 = vsel %vm878_vm10, %v810_v10, -inf  ;;  %v1033_v39 = vsel %vm878_vm10, %v809_v37, -inf }
 0x191   : > { %v1001_v24 = vrot.slane %v1000_v21, 2  ;;  %v1008_v27 = vrot.slane %v1007_v22, 2  ;;  %v1014_v32 = vmax.f32 %v1012_v13, %v1013_v42  ;;  %v1027_v36 = vrot.slane %v1026_v18, 4  ;;  %v1184_v33 = vld [vmem:[#allocation2 + $0x8] sm:$0xff] }
 0x192   : > { %v995_v56 = vmax.f32 %v993_v12, %v994_v26  ;;  %v1021_v55 = vmax.f32 %v1019_v23, %v1020_v45  ;;  %v1034_v58 = vrot.slane %v1033_v39, 4  ;;  %v1040_v50 = vsel %vm878_vm10, %v811_v16, -inf  ;;  %1196 = vrot.lane.b32.xlu0 %v1184_v33, %s2954_s10 }
 0x193   : > { %v1188_v3 = vld [vmem:[#allocation2 + $0x9] sm:$0xff]  ;;  %v1002_v61 = vmax.f32 %v1000_v21, %v1001_v24  ;;  %v1009_v31 = vmax.f32 %v1007_v22, %v1008_v27  ;;  %v1015_v63 = vrot.slane %v1014_v32, 2  ;;  %v1028_v54 = vmax.f32 %v1026_v18, %v1027_v36 }
 0x194   : > { %1212 = vrot.lane.b32.xlu1 %v1188_v3, %s2955_s11  ;;  %v996_v62 = vrot.slane %v995_v56, 1  ;;  %v1022_v20 = vrot.slane %v1021_v55, 2  ;;  %v1035_v7 = vmax.f32 %v1033_v39, %v1034_v58  ;;  %v1041_v51 = vrot.slane %v1040_v50, 4  ;;  %v1185_v53 = vld [vmem:[#allocation2 + $0x10] sm:$0xff] }
 0x195   : > { %v1003_v57 = vrot.slane %v1002_v61, 1  ;;  %v1010_v40 = vrot.slane %v1009_v31, 1  ;;  %v1016_v4 = vmax.f32 %v1014_v32, %v1015_v63  ;;  %v1029_v30 = vrot.slane %v1028_v54, 2 }
 0x196   : > { %v997_v48 = vmax.f32 %v995_v56, %v996_v62  ;;  %v1023_v29 = vmax.f32 %v1021_v55, %v1022_v20  ;;  %v1036_v44 = vrot.slane %v1035_v7, 2  ;;  %v1042_v5 = vmax.f32 %v1040_v50, %v1041_v51  ;;  %1198 = vrot.lane.b32.xlu0 %v1185_v53, %s2954_s10  ;;  %v1180_v55 = vld [vmem:[#allocation2 + $0x7] sm:$0xff] }
 0x197   : > { %v1004_v2 = vmax.f32 %v1002_v61, %v1003_v57  ;;  %v1011_v59 = vmax.f32 %v1009_v31, %v1010_v40  ;;  %v1017_v46 = vrot.slane %v1016_v4, 1  ;;  %v1030_v6 = vmax.f32 %v1028_v54, %v1029_v30  ;;  %v1181_v61 = vld [vmem:[#allocation2 + $0xf] sm:$0xff] }
 0x198   : > { %v1024_v43 = vrot.slane %v1023_v29, 1  ;;  %v1037_v60 = vmax.f32 %v1035_v7, %v1036_v44  ;;  %v1043_v52 = vrot.slane %v1042_v5, 2  ;;  %v2741_v41 = vpack.c.bf16 %v1238_v34, %v1237_v17 }
 0x199   : > { %v1018_v35 = vmax.f32 %v1016_v4, %v1017_v46  ;;  %v1031_v0 = vrot.slane %v1030_v6, 1  ;;  %v1158_v47 = vsel %vm1137_vm11, %v1004_v2, %v997_v48  ;;  %v1098_v11 = vmax.f32 %v1096_v14, %v1097_v49 }
 0x19a   : > { %v1025_v19 = vmax.f32 %v1023_v29, %v1024_v43  ;;  %v1038_v1 = vrot.slane %v1037_v60, 1  ;;  %v1044_v8 = vmax.f32 %v1042_v5, %v1043_v52  ;;  %v1159_v37 = vsel %vm1139_vm12, %v1011_v59, %v1158_v47  ;;  %2742 = vmatprep.subr.bf16.mxu1 %v2741_v41 }
 0x19b   : > { %v1032_v10 = vmax.f32 %v1030_v6, %v1031_v0  ;;  %v1160_v9 = vsel %vm1141_vm13, %v1018_v35, %v1159_v37  ;;  %2744 = vmatpush3.bf16.msra.mxu1 %v2741_v41  ;;  %v1099_v21 = vrot.slane %v1098_v11, 2  ;;  %vm1239_vm5 = vcmask 392192  }
 0x19c   : > { %v1039_v12 = vmax.f32 %v1037_v60, %v1038_v1  ;;  %v1045_v13 = vrot.slane %v1044_v8, 1  ;;  %v1161_v23 = vsel %vm1143_vm14, %v1025_v19, %v1160_v9  ;;  %vm1573_vm9 = vcmask 254976  }
 0x19d   : > { %v1162_v16 = vsel %vm1145_vm15, %v1032_v10, %v1161_v23  ;;  %v1100_v14 = vmax.f32 %v1098_v11, %v1099_v21  ;;  %vm1760_vm10 = vcmask 785408  }
 0x19e   : > { %v1046_v22 = vmax.f32 %v1044_v8, %v1045_v13  ;;  %v1163_v42 = vsel %vm1147_vm2, %v1039_v12, %v1162_v16 }
 0x19f   : > { %v1101_v45 = vrot.slane %v1100_v14, 1 }
 0x1a0   : > { %v1164_v26 = vsel %vm1149_vm3, %v1046_v22, %v1163_v42  ;;  %v1748_v22 = vld [vmem:[%s3892_s3] sm:$0xff]  ;;  %v1749_v42 = vld [vmem:[%s3892_s3 + $0x8] sm:$0xff] }
 0x1a1   : > { %1178 = vst.msk [vmem:[#allocation2 + $0x18] sm:$0xff] %vm421_vm1, %v1164_v26  ;;  %v1102_v18 = vmax.f32 %v1100_v14, %v1101_v45  ;;  %v1750_v14 = vld [vmem:[%s3892_s3 + $0x10] sm:$0xff]  ;;  %v2745_v26 = vpack.c.bf16 %v1749_v42, %v1748_v22  ;;  %v1751_v45 = vld [vmem:[%s3892_s3 + $0x18] sm:$0xff] }
 0x1a3   : > { %v1171_v39 = vsel %vm1149_vm3, %v1102_v18, %v3312_v25  ;;  %2746 = vmatprep.subr.bf16.mxu1 %v2745_v26 }
 0x1a4   : > { %1179 = vst.msk [vmem:[#allocation2 + $0x20] sm:$0xff] %vm421_vm1, %v1171_v39 }
 0x1a8   : > { %v1189_v24 = vld [vmem:[#allocation2 + $0x11] sm:$0xff] }
 0x1a9   : > { %v1186_v27 = vld [vmem:[#allocation2 + $0x18] sm:$0xff]  ;;  %1214 = vrot.lane.b32.xlu1 %v1189_v24, %s2955_s11  ;;  %v2749_v24 = vpack.c.bf16 %v1751_v45, %v1750_v14 }
 0x1aa   : > { %1200 = vrot.lane.b32.xlu0 %v1186_v27, %s2954_s10  ;;  %v1182_v20 = vld [vmem:[#allocation2 + $0x17] sm:$0xff]  ;;  %v1752_v27 = vld [vmem:[%s3892_s3 + $0x20] sm:$0xff] }
 0x1ab   : > { %v1187_v32 = vld [vmem:[#allocation2 + $0x20] sm:$0xff] }
 0x1ac   : > { %v1190_v36 = vld [vmem:[#allocation2 + $0x19] sm:$0xff]  ;;  %v1191_v33 = vld [vmem:[#allocation2 + $0x21] sm:$0xff] }
 0x1ad   : > { %1202 = vrot.lane.b32.xlu1 %v1187_v32, %s2954_s10  ;;  %v1183_v4 = vld [vmem:[#allocation2 + $0x1f] sm:$0xff]  ;;  %v1753_v32 = vld [vmem:[%s3892_s3 + $0x28] sm:$0xff] }
 0x1ae   : > { %1216 = vrot.lane.b32.xlu0 %v1190_v36, %s2955_s11 }
 0x1b1   : > { %1218 = vrot.lane.b32.xlu1 %v1191_v33, %s2955_s11 }
 0x204   : > { %v1197_v56 = vpop.permute.xlu0 %1196 }
 0x205   : > { %v1224_v58 = vsel %vm421_vm1, %v1180_v55, %v1197_v56  ;;  %v2753_v56 = vpack.c.bf16 %v1753_v32, %v1752_v27 }
 0x206   : > { %v1213_v25 = vpop.permute.xlu1 %1212 }
 0x207   : > { %v1229_v50 = vsel %vm1228_vm4, %v1224_v58, %v1213_v25  ;;  %v1754_v58 = vld [vmem:[%s3892_s3 + $0x30] sm:$0xff] }
 0x208   : > { %2665 = vmatprep.mubr.msk.f32.mxu1 %vm1239_vm5, %v1229_v50  ;;  %v1199_v3 = vpop.permute.xlu0 %1198  ;;  %v1755_v50 = vld [vmem:[%s3892_s3 + $0x38] sm:$0xff] }
 0x209   : > { %v1225_v31 = vsel %vm421_vm1, %v1181_v61, %v1199_v3 }
 0x21b   : > { %v1215_v63 = vpop.permute.xlu1 %1214 }
 0x21c   : > { %v1201_v54 = vpop.permute.xlu0 %1200  ;;  %v1230_v62 = vsel %vm1228_vm4, %v1225_v31, %v1215_v63 }
 0x21d   : > { %2666 = vmatmul.mubr.msk.f32.vlgmr.msra.gmra.mrb[0].mxu1 %vm1239_vm5, %v1230_v62  ;;  %v1226_v51 = vsel %vm421_vm1, %v1182_v20, %v1201_v54  ;;  %v2757_v20 = vpack.c.bf16 %v1755_v50, %v1754_v58 }
 0x21e   : > { %2748 = vmatpush3.bf16.msra.mxu1 %v2745_v26 }
 0x21f   : > { %v1203_v7 = vpop.permute.xlu1 %1202  ;;  %2750 = vmatprep.subr.bf16.mxu1 %v2749_v24 }
 0x220   : > { %v1217_v57 = vpop.permute.xlu0 %1216  ;;  %v1227_v30 = vsel %vm421_vm1, %v1183_v4, %v1203_v7 }
 0x221   : > { %v1231_v40 = vsel %vm1228_vm4, %v1226_v51, %v1217_v57  ;;  %v1756_v51 = vld [vmem:[%s3892_s3 + $0x40] sm:$0xff]  ;;  %v1757_v57 = vld [vmem:[%s3892_s3 + $0x48] sm:$0xff] }
 0x222   : > { %2668 = vmatprep.mubr.msk.f32.mxu1 %vm1239_vm5, %v1231_v40  ;;  %2752 = vmatpush3.bf16.msra.mxu1 %v2749_v24  ;;  %v2761_v4 = vpack.c.bf16 %v1757_v57, %v1756_v51 }
 0x223   : > { %v1219_v48 = vpop.permute.xlu1 %1218  ;;  %2754 = vmatprep.subr.bf16.mxu1 %v2753_v56 }
 0x224   : > { %v1232_v29 = vsel %vm1228_vm4, %v1227_v30, %v1219_v48 }
 0x225   : > { %2669 = vmatmul.mubr.msk.f32.gmra.mrb[2].mxu1 %vm1239_vm5, %v1232_v29 }
 0x226   : > { %2756 = vmatpush3.bf16.msra.mxu1 %v2753_v56 }
 0x227   : > { %2758 = vmatprep.subr.bf16.mxu1 %v2757_v20 }
 0x22a   : > { %2760 = vmatpush3.bf16.msra.mxu1 %v2757_v20 }
 0x22b   : > { %2762 = vmatprep.subr.bf16.mxu1 %v2761_v4 }
 0x22e   : > { %2764 = vmatpush3.bf16.msra.mxu1 %v2761_v4 }
 0x2f0   : > { %v3441_v44 = vpop.f32.mrb[0].mxu1 }
 0x2f1   : > { %v1338_v5 = vsel %vm1228_vm4, %v3441_v44, 0.0  ;;  %v1352_v53 = vmul.f32 %v3441_v44, %v3441_v44  ;;  %v3447_v17 = vpop.f32.mrb[1].mxu1 }
 0x2f2   : > { %v1337_v34 = vsel %vm1228_vm4, %v3447_v17, 0.0  ;;  %v1351_v2 = vmul.f32 %v3447_v17, %v3447_v17 }
 0x2f3   : > { %v1356_v59 = vsel %vm1228_vm4, %v1352_v53, 0.0  ;;  %v1339_v46 = vadd.f32 %v1338_v5, %v1337_v34 }
 0x2f4   : > { %v1355_v6 = vsel %vm1228_vm4, %v1351_v2, 0.0 }
 0x2f5   : > { %v1357_v43 = vadd.f32 %v1356_v59, %v1355_v6 }
 0x2f8   : > { %v3455_v60 = vpop.f32.mrb[2].mxu1 }
 0x2f9   : > { %v1328_v52 = vpop.f32.mrb[3].mxu1  ;;  %v1354_v49 = vmul.f32 %v3455_v60, %v3455_v60  ;;  %v1342_v41 = vsel %vm1228_vm4, %v3455_v60, 0.0 }
 0x2fa   : > { %v1340_v35 = vsel %vm1228_vm4, %v1328_v52, 0.0  ;;  %v1353_v0 = vmul.f32 %v1328_v52, %v1328_v52 }
 0x2fb   : > { %v1341_v47 = vadd.f32 %v1340_v35, %v1339_v46  ;;  %v1360_v37 = vsel %vm1228_vm4, %v1354_v49, 0.0 }
 0x2fc   : > { %v1358_v19 = vsel %vm1228_vm4, %v1353_v0, 0.0 }
 0x2fd   : > { %v1343_v1 = vadd.f32 %v1342_v41, %v1341_v47  ;;  %v1359_v8 = vadd.f32 %v1358_v19, %v1357_v43 }
 0x2ff   : > { %v1344_v10 = vrot.slane %v1343_v1, 4  ;;  %v1361_v9 = vadd.f32 %v1360_v37, %v1359_v8 }
 0x301   : > { %v1345_v11 = vadd.f32 %v1344_v10, %v1343_v1  ;;  %v1362_v12 = vrot.slane %v1361_v9, 4 }
 0x303   : > { %v1346_v13 = vrot.slane %v1345_v11, 2  ;;  %v1363_v23 = vadd.f32 %v1362_v12, %v1361_v9 }
 0x305   : > { %v1347_v16 = vadd.f32 %v1346_v13, %v1345_v11  ;;  %v1364_v21 = vrot.slane %v1363_v23, 2 }
 0x307   : > { %v1348_v18 = vrot.slane %v1347_v16, 1  ;;  %v1365_v39 = vadd.f32 %v1364_v21, %v1363_v23 }
 0x309   : > { %v1349_v36 = vadd.f32 %v1348_v18, %v1347_v16  ;;  %v1366_v33 = vrot.slane %v1365_v39, 1 }
 0x30b   : > { %v1350_v55 = vmul.f32 0.03125, %v1349_v36  ;;  %v1367_v25 = vadd.f32 %v1366_v33, %v1365_v39 }
 0x30d   : > { %v1368_v3 = vmul.f32 0.03125, %v1367_v25  ;;  %v1369_v61 = vmul.f32 %v1350_v55, %v1350_v55  ;;  %v1371_v31 = vsub.f32 %v3447_v17, %v1350_v55  ;;  %v1372_v63 = vsub.f32 %v3441_v44, %v1350_v55 }
 0x30e   : > { %v1373_v54 = vsub.f32 %v1328_v52, %v1350_v55  ;;  %v1374_v62 = vsub.f32 %v3455_v60, %v1350_v55 }
 0x30f   : > { %v1370_v7 = vsub.f32 %v1368_v3, %v1369_v61 }
 0x311   : > { %v1375_v40 = vadd.f32 1e-05, %v1370_v7 }
 0x313   : > { %2903 = vrsqrt.f32 %v1375_v40 }
 0x31d   : > { %v2904_v30 = vpop.eup %2903 }
 0x31e   : > { %v3497_v48 = vmul.f32 %v2904_v30, %v1371_v31  ;;  %v3499_v29 = vmul.f32 %v2904_v30, %v1372_v63  ;;  %v3501_v44 = vmul.f32 %v2904_v30, %v1373_v54  ;;  %v3503_v5 = vmul.f32 %v2904_v30, %v1374_v62 }
 0x320   : > { %v3506_v53 = vmul.f32 0.70710677, %v3497_v48  ;;  %v3509_v17 = vmul.f32 0.70710677, %v3499_v29  ;;  %v3512_v34 = vmul.f32 0.70710677, %v3501_v44 }
 0x321   : > { %v3515_v2 = vmul.f32 0.70710677, %v3503_v5 }
 0x322   : > { %v1397_v59 = vand.u32 2147483647, %v3506_v53  ;;  %v1398_v46 = vand.u32 2147483647, %v3509_v17  ;;  %v1399_v6 = vand.u32 2147483647, %v3512_v34 }
 0x323   : > { %v1400_v43 = vand.u32 2147483647, %v3515_v2  ;;  %vm1389_vm1 = vcmp.ge.f32.partialorder %v3506_v53, 0.0  ;;  %vm1390_vm6 = vcmp.ge.f32.partialorder %v3509_v17, 0.0  ;;  %vm1391_vm7 = vcmp.ge.f32.partialorder %v3512_v34, 0.0 }
 0x324   : > { %v1401_v60 = vmul.f32 0.3275911, %v1397_v59  ;;  %v1402_v52 = vmul.f32 0.3275911, %v1398_v46  ;;  %v1403_v49 = vmul.f32 0.3275911, %v1399_v6 }
 0x325   : > { %v1404_v35 = vmul.f32 0.3275911, %v1400_v43  ;;  %v1449_v1 = vsub.f32 0.0, %v1397_v59  ;;  %v1450_v8 = vsub.f32 0.0, %v1398_v46  ;;  %v1451_v37 = vsub.f32 0.0, %v1399_v6 }
 0x326   : > { %v1405_v0 = vadd.f32 1.0, %v1401_v60  ;;  %v1406_v47 = vadd.f32 1.0, %v1402_v52  ;;  %v1407_v41 = vadd.f32 1.0, %v1403_v49  ;;  %v1452_v10 = vsub.f32 0.0, %v1400_v43 }
 0x327   : > { %v1408_v19 = vadd.f32 1.0, %v1404_v35  ;;  %v1453_v11 = vmul.f32 %v1449_v1, %v1397_v59  ;;  %v1454_v23 = vmul.f32 %v1450_v8, %v1398_v46  ;;  %v1455_v22 = vmul.f32 %v1451_v37, %v1399_v6 }
 0x328   : > { %2905 = vrcp.f32 %v1405_v0  ;;  %v1456_v45 = vmul.f32 %v1452_v10, %v1400_v43  ;;  %vm1392_vm8 = vcmp.ge.f32.partialorder %v3515_v2, 0.0  ;;  %v1394_v53 = vsel %vm1390_vm6, 1.0, %v2952_v15 }
 0x329   : > { %2907 = vrcp.f32 %v1406_v47  ;;  %v1457_v24 = vmul.f32 1.442695, %v1453_v11  ;;  %v1459_v36 = vmul.f32 1.442695, %v1454_v23  ;;  %v1461_v55 = vmul.f32 1.442695, %v1455_v22 }
 0x32a   : > { %2909 = vrcp.f32 %v1407_v41  ;;  %v1463_v50 = vmul.f32 1.442695, %v1456_v45  ;;  %v1396_v34 = vsel %vm1392_vm8, 1.0, %v2952_v15  ;;  %v1382_v2 = vmul.f32 0.5, %v3499_v29 }
 0x32b   : > { %2911 = vrcp.f32 %v1408_v19 }
 0x32c   : > { %2913 = vpow2.f32 %v1457_v24 }
 0x32d   : > { %2915 = vpow2.f32 %v1459_v36 }
 0x32e   : > { %2917 = vpow2.f32 %v1461_v55 }
 0x32f   : > { %2919 = vpow2.f32 %v1463_v50 }
 0x332   : > { %v2906_v9 = vpop.eup %2905 }
 0x333   : > { %v2908_v12 = vpop.eup %2907  ;;  %v1413_v13 = vmul.f32 1.0614054, %v2906_v9 }
 0x334   : > { %v2910_v16 = vpop.eup %2909  ;;  %v1414_v21 = vmul.f32 1.0614054, %v2908_v12 }
 0x335   : > { %v2912_v42 = vpop.eup %2911  ;;  %v1415_v14 = vmul.f32 1.0614054, %v2910_v16  ;;  %v1417_v26 = vadd.f32 -1.4531521, %v1413_v13 }
 0x336   : > { %v1416_v18 = vmul.f32 1.0614054, %v2912_v42  ;;  %v1418_v39 = vadd.f32 -1.4531521, %v1414_v21  ;;  %v2914_v35 = vpop.eup %2913 }
 0x337   : > { %v1419_v27 = vadd.f32 -1.4531521, %v1415_v14  ;;  %v1421_v32 = vmul.f32 %v2906_v9, %v1417_v26  ;;  %v2916_v41 = vpop.eup %2915  ;;  %v1395_v14 = vsel %vm1391_vm7, 1.0, %v2952_v15  ;;  %v1381_v26 = vmul.f32 0.5, %v3497_v48 }
 0x338   : > { %v1420_v33 = vadd.f32 -1.4531521, %v1416_v18  ;;  %v1422_v56 = vmul.f32 %v2908_v12, %v1418_v39  ;;  %v2918_v8 = vpop.eup %2917 }
 0x339   : > { %v1423_v25 = vmul.f32 %v2910_v16, %v1419_v27  ;;  %v1425_v58 = vadd.f32 1.4214138, %v1421_v32  ;;  %v2920_v11 = vpop.eup %2919  ;;  %v1383_v27 = vmul.f32 0.5, %v3501_v44 }
 0x33a   : > { %v1424_v3 = vmul.f32 %v2912_v42, %v1420_v33  ;;  %v1426_v61 = vadd.f32 1.4214138, %v1422_v56  ;;  %v1384_v33 = vmul.f32 0.5, %v3503_v5 }
 0x33b   : > { %v1427_v31 = vadd.f32 1.4214138, %v1423_v25  ;;  %v1429_v63 = vmul.f32 %v2906_v9, %v1425_v58 }
 0x33c   : > { %v1428_v54 = vadd.f32 1.4214138, %v1424_v3  ;;  %v1430_v62 = vmul.f32 %v2908_v12, %v1426_v61 }
 0x33d   : > { %v1431_v20 = vmul.f32 %v2910_v16, %v1427_v31  ;;  %v1433_v7 = vadd.f32 -0.28449672, %v1429_v63 }
 0x33e   : > { %v1432_v51 = vmul.f32 %v2912_v42, %v1428_v54  ;;  %v1434_v57 = vadd.f32 -0.28449672, %v1430_v62 }
 0x33f   : > { %v1435_v40 = vadd.f32 -0.28449672, %v1431_v20  ;;  %v1437_v4 = vmul.f32 %v2906_v9, %v1433_v7 }
 0x340   : > { %v1436_v30 = vadd.f32 -0.28449672, %v1432_v51  ;;  %v1438_v59 = vmul.f32 %v2908_v12, %v1434_v57 }
 0x341   : > { %v1439_v46 = vmul.f32 %v2910_v16, %v1435_v40  ;;  %v1441_v6 = vadd.f32 0.2548296, %v1437_v4 }
 0x342   : > { %v1440_v43 = vmul.f32 %v2912_v42, %v1436_v30  ;;  %v1442_v60 = vadd.f32 0.2548296, %v1438_v59 }
 0x343   : > { %v1443_v52 = vadd.f32 0.2548296, %v1439_v46  ;;  %v1445_v49 = vmul.f32 %v2906_v9, %v1441_v6  ;;  %v1393_v9 = vsel %vm1389_vm1, 1.0, %v2952_v15  ;;  %vm1968_vm1 = vcmask 517120  }
 0x344   : > { %v1444_v0 = vadd.f32 0.2548296, %v1440_v43  ;;  %v1446_v47 = vmul.f32 %v2908_v12, %v1442_v60 }
 0x345   : > { %v1447_v19 = vmul.f32 %v2910_v16, %v1443_v52  ;;  %v1465_v1 = vmul.f32 %v2914_v35, %v1445_v49 }
 0x346   : > { %v1448_v37 = vmul.f32 %v2912_v42, %v1444_v0  ;;  %v1466_v10 = vmul.f32 %v2916_v41, %v1446_v47 }
 0x347   : > { %v1467_v13 = vmul.f32 %v2918_v8, %v1447_v19  ;;  %v1469_v23 = vsub.f32 1.0, %v1465_v1 }
 0x348   : > { %v1468_v12 = vmul.f32 %v2920_v11, %v1448_v37  ;;  %v1470_v21 = vsub.f32 1.0, %v1466_v10 }
 0x349   : > { %v1471_v16 = vsub.f32 1.0, %v1467_v13  ;;  %v1473_v22 = vmul.f32 %v1469_v23, %v1393_v9 }
 0x34a   : > { %v1472_v17 = vsub.f32 1.0, %v1468_v12  ;;  %v1474_v42 = vmul.f32 %v1470_v21, %v1394_v53 }
 0x34b   : > { %v1475_v45 = vmul.f32 %v1471_v16, %v1395_v14  ;;  %v1477_v18 = vadd.f32 1.0, %v1473_v22 }
 0x34c   : > { %v1476_v39 = vmul.f32 %v1472_v17, %v1396_v34  ;;  %v1478_v24 = vadd.f32 1.0, %v1474_v42 }
 0x34d   : > { %v1479_v32 = vadd.f32 1.0, %v1475_v45  ;;  %v1481_v36 = vmul.f32 %v1477_v18, %v1381_v26 }
 0x34e   : > { %v1480_v56 = vadd.f32 1.0, %v1476_v39  ;;  %v1482_v55 = vmul.f32 %v1478_v24, %v1382_v2 }
 0x34f   : > { %v1483_v25 = vmul.f32 %v1479_v32, %v1383_v27  ;;  %v1489_v58 = vcombine.high %v1481_v36, %v1481_v36  ;;  %v1496_v48 = vrot.slane %v1481_v36, %v3121_v28 }
 0x350   : > { %v1484_v50 = vmul.f32 %v1480_v56, %v1384_v33  ;;  %v1506_v3 = vcombine.high %v1482_v55, %v1482_v55  ;;  %v1513_v61 = vrot.slane %v1482_v55, %v3121_v28 }
 0x351   : > { %v1503_v29 = vrot.slane %v1489_v58, %v3121_v28  ;;  %v1504_v31 = vcombine.high %v1496_v48, %v1496_v48  ;;  %v1523_v63 = vcombine.high %v1483_v25, %v1483_v25  ;;  %v3537_v44 = vrot.slane %v1483_v25, %v3121_v28 }
 0x352   : > { %v1520_v5 = vrot.slane %v1506_v3, %v3121_v28  ;;  %v1540_v54 = vcombine.high %v1484_v50, %v1484_v50  ;;  %v3541_v62 = vrot.slane %v1484_v50, %v3121_v28  ;;  %v1521_v7 = vcombine.high %v1513_v61, %v1513_v61 }
 0x353   : > { %v1505_v20 = vcombine.high %v1503_v29, %v1503_v29  ;;  %v1574_v51 = vsel %vm1573_vm9, %v1496_v48, -inf  ;;  %v1537_v40 = vrot.slane %v1523_v63, %v3121_v28  ;;  %v1538_v4 = vcombine.high %v3537_v44, %v3537_v44 }
 0x354   : > { %v1522_v57 = vcombine.high %v1520_v5, %v1520_v5  ;;  %v1575_v30 = vrot.slane %v1574_v51, 4  ;;  %v3548_v59 = vrot.slane %v1540_v54, %v3121_v28  ;;  %v1581_v46 = vsel %vm1573_vm9, %v1504_v31, -inf }
 0x355   : > { %v1588_v6 = vsel %vm1573_vm9, %v1503_v29, -inf  ;;  %v1595_v43 = vsel %vm1573_vm9, %v1505_v20, -inf  ;;  %v1555_v60 = vcombine.high %v3541_v62, %v3541_v62  ;;  %v1582_v49 = vrot.slane %v1581_v46, 4 }
 0x356   : > { %v1576_v52 = vmax.f32 %v1574_v51, %v1575_v30  ;;  %v1589_v35 = vrot.slane %v1588_v6, 4  ;;  %v1596_v0 = vrot.slane %v1595_v43, 4  ;;  %v1602_v47 = vsel %vm1573_vm9, %v1513_v61, -inf }
 0x357   : > { %v1609_v41 = vsel %vm1573_vm9, %v1521_v7, -inf  ;;  %v1616_v19 = vsel %vm1573_vm9, %v1520_v5, -inf  ;;  %v1583_v8 = vmax.f32 %v1581_v46, %v1582_v49  ;;  %v1603_v10 = vrot.slane %v1602_v47, 4 }
 0x358   : > { %v1577_v1 = vrot.slane %v1576_v52, 2  ;;  %v1590_v37 = vmax.f32 %v1588_v6, %v1589_v35  ;;  %v1597_v11 = vmax.f32 %v1595_v43, %v1596_v0  ;;  %v1610_v13 = vrot.slane %v1609_v41, 4 }
 0x359   : > { %v1617_v23 = vrot.slane %v1616_v19, 4  ;;  %v1623_v9 = vsel %vm1573_vm9, %v1522_v57, -inf  ;;  %v1584_v21 = vrot.slane %v1583_v8, 2  ;;  %v1604_v16 = vmax.f32 %v1602_v47, %v1603_v10 }
 0x35a   : > { %v1578_v12 = vmax.f32 %v1576_v52, %v1577_v1  ;;  %v1591_v53 = vrot.slane %v1590_v37, 2  ;;  %v1598_v22 = vrot.slane %v1597_v11, 2  ;;  %v1611_v14 = vmax.f32 %v1609_v41, %v1610_v13 }
 0x35b   : > { %v1618_v17 = vmax.f32 %v1616_v19, %v1617_v23  ;;  %v1624_v42 = vrot.slane %v1623_v9, 4  ;;  %v1585_v34 = vmax.f32 %v1583_v8, %v1584_v21  ;;  %v1605_v18 = vrot.slane %v1604_v16, 2 }
 0x35c   : > { %v1579_v26 = vrot.slane %v1578_v12, 1  ;;  %v1592_v45 = vmax.f32 %v1590_v37, %v1591_v53  ;;  %v1599_v2 = vmax.f32 %v1597_v11, %v1598_v22  ;;  %v1612_v39 = vrot.slane %v1611_v14, 2 }
 0x35d   : > { %v1619_v24 = vrot.slane %v1618_v17, 2  ;;  %v3559_v27 = vmax.f32 %v1623_v9, %v1624_v42  ;;  %v1539_v32 = vcombine.high %v1537_v40, %v1537_v40  ;;  %v1586_v36 = vrot.slane %v1585_v34, 1 }
 0x35e   : > { %v1593_v33 = vrot.slane %v1592_v45, 1  ;;  %v3561_v56 = vmax.f32 %v1604_v16, %v1605_v18  ;;  %v1556_v55 = vcombine.high %v3548_v59, %v3548_v59  ;;  %v1600_v25 = vrot.slane %v1599_v2, 1 }
 0x35f   : > { %v3565_v58 = vmax.f32 %v1611_v14, %v1612_v39  ;;  %v3567_v48 = vmax.f32 %v1618_v17, %v1619_v24  ;;  %v1580_v50 = vmax.f32 %v1578_v12, %v1579_v26  ;;  %v1587_v3 = vmax.f32 %v1585_v34, %v1586_v36 }
 0x360   : > { %v1626_v61 = vrot.slane %v3559_v27, 2  ;;  %v1630_v29 = vsel %vm1573_vm9, %v3537_v44, -inf  ;;  %v3572_v31 = vmax.f32 %v1592_v45, %v1593_v33  ;;  %v3574_v63 = vmax.f32 %v1599_v2, %v1600_v25 }
 0x361   : > { %v1607_v5 = vrot.slane %v3561_v56, 1  ;;  %v1631_v54 = vrot.slane %v1630_v29, 4  ;;  %v1614_v20 = vrot.slane %v3565_v58, 1  ;;  %v1637_v7 = vsel %vm1573_vm9, %v1538_v4, -inf }
 0x362   : > { %v1644_v51 = vsel %vm1573_vm9, %v1537_v40, -inf  ;;  %v1651_v57 = vsel %vm1573_vm9, %v1539_v32, -inf  ;;  %v1621_v30 = vrot.slane %v3567_v48, 1  ;;  %v1638_v6 = vrot.slane %v1637_v7, 4 }
 0x363   : > { %v1632_v46 = vmax.f32 %v1630_v29, %v1631_v54  ;;  %v1645_v44 = vrot.slane %v1644_v51, 4  ;;  %v1652_v43 = vrot.slane %v1651_v57, 4  ;;  %v1658_v52 = vsel %vm1573_vm9, %v3541_v62, -inf }
 0x364   : > { %v1665_v49 = vsel %vm1573_vm9, %v1555_v60, -inf  ;;  %v1672_v35 = vsel %vm1573_vm9, %v3548_v59, -inf  ;;  %v1639_v4 = vmax.f32 %v1637_v7, %v1638_v6  ;;  %v1659_v40 = vrot.slane %v1658_v52, 4 }
 0x365   : > { %v1633_v0 = vrot.slane %v1632_v46, 2  ;;  %v1646_v47 = vmax.f32 %v1644_v51, %v1645_v44  ;;  %v1653_v41 = vmax.f32 %v1651_v57, %v1652_v43  ;;  %v1666_v19 = vrot.slane %v1665_v49, 4 }
 0x366   : > { %v1673_v1 = vrot.slane %v1672_v35, 4  ;;  %v1679_v8 = vsel %vm1573_vm9, %v1556_v55, -inf  ;;  %v1640_v10 = vrot.slane %v1639_v4, 2  ;;  %v1660_v13 = vmax.f32 %v1658_v52, %v1659_v40 }
 0x367   : > { %v1634_v37 = vmax.f32 %v1632_v46, %v1633_v0  ;;  %v1647_v11 = vrot.slane %v1646_v47, 2  ;;  %v1654_v23 = vrot.slane %v1653_v41, 2  ;;  %v1667_v62 = vmax.f32 %v1665_v49, %v1666_v19 }
 0x368   : > { %v1674_v9 = vmax.f32 %v1672_v35, %v1673_v1  ;;  %v1680_v60 = vrot.slane %v1679_v8, 4  ;;  %v1641_v21 = vmax.f32 %v1639_v4, %v1640_v10  ;;  %v1661_v53 = vrot.slane %v1660_v13, 2 }
 0x369   : > { %v1635_v12 = vrot.slane %v1634_v37, 1  ;;  %v1648_v59 = vmax.f32 %v1646_v47, %v1647_v11  ;;  %v1655_v16 = vmax.f32 %v1653_v41, %v1654_v23  ;;  %v1668_v22 = vrot.slane %v1667_v62, 2 }
 0x36a   : > { %v1675_v14 = vrot.slane %v1674_v9, 2  ;;  %v1681_v17 = vmax.f32 %v1679_v8, %v1680_v60  ;;  %v1642_v26 = vrot.slane %v1641_v21, 1  ;;  %v1662_v45 = vmax.f32 %v1660_v13, %v1661_v53 }
 0x36b   : > { %v1636_v42 = vmax.f32 %v1634_v37, %v1635_v12  ;;  %v1649_v34 = vrot.slane %v1648_v59, 1  ;;  %v1656_v18 = vrot.slane %v1655_v16, 1  ;;  %v1669_v2 = vmax.f32 %v1667_v62, %v1668_v22  ;;  %v2053_v22 = vld [vmem:[%s3893_s4 + $0x8] sm:$0xff] }
 0x36c   : > { %v1676_v39 = vmax.f32 %v1674_v9, %v1675_v14  ;;  %v1682_v24 = vrot.slane %v1681_v17, 2  ;;  %v1643_v32 = vmax.f32 %v1641_v21, %v1642_v26  ;;  %v1663_v33 = vrot.slane %v1662_v45, 1  ;;  %v2054_v14 = vld [vmem:[%s3893_s4 + $0x10] sm:$0xff]  ;;  %v2055_v26 = vld [vmem:[%s3893_s4 + $0x18] sm:$0xff] }
 0x36d   : > { %v1650_v36 = vmax.f32 %v1648_v59, %v1649_v34  ;;  %v1704_v55 = vsel %vm1137_vm11, %v1587_v3, %v1580_v50  ;;  %v1657_v25 = vmax.f32 %v1655_v16, %v1656_v18  ;;  %v1670_v29 = vrot.slane %v1669_v2, 1  ;;  %v2052_v16 = vld [vmem:[%s3893_s4] sm:$0xff]  ;;  %v2057_v18 = vld [vmem:[%s3893_s4 + $0x28] sm:$0xff] }
 0x36e   : > { %v1677_v54 = vrot.slane %v1676_v39, 1  ;;  %v1683_v7 = vmax.f32 %v1681_v17, %v1682_v24  ;;  %v1608_v51 = vmax.f32 %v3561_v56, %v1607_v5  ;;  %v1711_v57 = vsel %vm1137_vm11, %v1643_v32, %v1636_v42  ;;  %v2059_v24 = vld [vmem:[%s3893_s4 + $0x38] sm:$0xff] }
 0x36f   : > { %v1627_v46 = vmax.f32 %v3559_v27, %v1626_v61  ;;  %v1615_v6 = vmax.f32 %v3565_v58, %v1614_v20  ;;  %v1664_v44 = vmax.f32 %v1662_v45, %v1663_v33  ;;  %v1712_v43 = vsel %vm1139_vm12, %v1650_v36, %v1711_v57  ;;  %v1758_v58 = vld [vmem:[%s3892_s3 + $0x50] sm:$0xff]  ;;  %v1759_v61 = vld [vmem:[%s3892_s3 + $0x58] sm:$0xff]  ;;  %v2056_v45 = vld [vmem:[%s3893_s4 + $0x20] sm:$0xff] }
 0x370   : > { %v1684_v52 = vrot.slane %v1683_v7, 1  ;;  %v1671_v49 = vmax.f32 %v1669_v2, %v1670_v29  ;;  %v1713_v35 = vsel %vm1141_vm13, %v1657_v25, %v1712_v43  ;;  %v1705_v3 = vsel %vm1139_vm12, %v3572_v31, %v1704_v55  ;;  %v2060_v29 = vld [vmem:[%s3893_s4 + $0x40] sm:$0xff] }
 0x371   : > { %v1628_v50 = vrot.slane %v1627_v46, 1  ;;  %v1678_v0 = vmax.f32 %v1676_v39, %v1677_v54  ;;  %v1714_v56 = vsel %vm1143_vm14, %v1664_v44, %v1713_v35  ;;  %v1622_v5 = vmax.f32 %v3567_v48, %v1621_v30  ;;  %v2058_v39 = vld [vmem:[%s3893_s4 + $0x30] sm:$0xff]  ;;  %v2061_v54 = vld [vmem:[%s3893_s4 + $0x48] sm:$0xff]  ;;  %v2063_v35 = vld [vmem:[%s3893_s4 + $0x58] sm:$0xff] }
 0x372   : > { %v1706_v27 = vsel %vm1141_vm13, %v3574_v63, %v1705_v3  ;;  %v1715_v20 = vsel %vm1145_vm15, %v1671_v49, %v1714_v56  ;;  %v1685_v4 = vmax.f32 %v1683_v7, %v1684_v52  ;;  %v2765_v47 = vpack.c.bf16 %v1759_v61, %v1758_v58  ;;  %v2062_v49 = vld [vmem:[%s3893_s4 + $0x50] sm:$0xff]  ;;  %v2065_v58 = vld [vmem:[%s3893_s4 + $0x68] sm:$0xff] }
 0x373   : > { %v1707_v31 = vsel %vm1143_vm14, %v1608_v51, %v1706_v27  ;;  %v1716_v40 = vsel %vm1147_vm2, %v1678_v0, %v1715_v20  ;;  %v1629_v48 = vmax.f32 %v1627_v46, %v1628_v50  ;;  %v2957_v17 = vmov 0.0|0.0   ;;  %v2064_v27 = vld [vmem:[%s3893_s4 + $0x60] sm:$0xff] }
 0x374   : > { %v1708_v30 = vsel %vm1145_vm15, %v1615_v6, %v1707_v31  ;;  %v1717_v63 = vsel %vm1149_vm3, %v1685_v4, %v1716_v40  ;;  %2766 = vmatprep.subr.bf16.mxu1 %v2765_v47  ;;  %2769 = vmatprep.subr.bf16.mxu0 %v2957_v17  ;;  %v2770_v42 = vpack.c.bf16 %v2053_v22, %v2052_v16  ;;  %v2066_v40 = vld [vmem:[%s3893_s4 + $0x70] sm:$0xff]  ;;  %v2073_v16 = vld [vmem:[%s3893_s4 + $0xa8] sm:$0xff] }
 0x375   : > { %v1709_v41 = vsel %vm1147_vm2, %v1622_v5, %v1708_v30  ;;  %1721 = vst.msk [vmem:[#allocation3 + $0x10] sm:$0xff] %vm1228_vm4, %v1717_v63  ;;  %2768 = vmatpush3.bf16.msra.mxu1 %v2765_v47  ;;  %v2773_v34 = vpack.c.bf16 %v2055_v26, %v2054_v14  ;;  %v2776_v2 = vpack.c.bf16 %v2057_v18, %v2056_v45  ;;  %v2074_v14 = vld [vmem:[%s3893_s4 + $0xb0] sm:$0xff] }
 0x376   : > { %v1710_v19 = vsel %vm1149_vm3, %v1629_v48, %v1709_v41  ;;  %2805 = vmatprep.subr.bf16.mxu1 %v2957_v17  ;;  %2771 = vmatpush1.bf16.msra.mxu0 %v2770_v42  ;;  %v2779_v36 = vpack.c.bf16 %v2059_v24, %v2058_v39  ;;  %v2782_v44 = vpack.c.bf16 %v2061_v54, %v2060_v29  ;;  %v2067_v48 = vld [vmem:[%s3893_s4 + $0x78] sm:$0xff] }
 0x377   : > { %1720 = vst.msk [vmem:[#allocation3 + $0x8] sm:$0xff] %vm1228_vm4, %v1710_v19  ;;  %2772 = vmatprep.subr.bf16.mxu0 %v2957_v17  ;;  %v2785_v0 = vpack.c.bf16 %v2063_v35, %v2062_v49  ;;  %v2788_v4 = vpack.c.bf16 %v2065_v58, %v2064_v27  ;;  %v2791_v41 = vpack.c.bf16 %v2067_v48, %v2066_v40  ;;  %v2075_v42 = vld [vmem:[%s3893_s4 + $0xb8] sm:$0xff] }
 0x378   : > { %v2803_v26 = vpack.c.bf16 %v2075_v42, %v2074_v14 }
 0x37a   : > { %2774 = vmatpush1.bf16.msra.mxu0 %v2773_v34 }
 0x37b   : > { %2775 = vmatprep.subr.bf16.mxu0 %v2957_v17 }
 0x37c   : > { %v1725_v1 = vld [vmem:[#allocation3 + $0x10] sm:$0xff] }
 0x37d   : > { %1732 = vrot.lane.b32.xlu1 %v1725_v1, %s2955_s11  ;;  %v1727_v37 = vld [vmem:[#allocation3 + $0x11] sm:$0xff] }
 0x37e   : > { %v1724_v8 = vld [vmem:[#allocation3 + $0x8] sm:$0xff]  ;;  %2777 = vmatpush1.bf16.msra.mxu0 %v2776_v2 }
 0x37f   : > { %1730 = vrot.lane.b32.xlu0 %v1724_v8, %s2955_s11  ;;  %v1726_v10 = vld [vmem:[#allocation3 + $0x9] sm:$0xff]  ;;  %2778 = vmatprep.subr.bf16.mxu0 %v2957_v17 }
 0x380   : > { %v1723_v23 = vld [vmem:[#allocation3 + $0xf] sm:$0xff]  ;;  %v1722_v9 = vld [vmem:[#allocation3 + $0x7] sm:$0xff] }
 0x381   : > { %1740 = vrot.lane.b32.xlu1 %v1727_v37, %s2956_s20  ;;  %v2068_v8 = vld [vmem:[%s3893_s4 + $0x80] sm:$0xff]  ;;  %v2069_v37 = vld [vmem:[%s3893_s4 + $0x88] sm:$0xff] }
 0x382   : > { %2780 = vmatpush1.bf16.msra.mxu0 %v2779_v36 }
 0x383   : > { %1738 = vrot.lane.b32.xlu0 %v1726_v10, %s2956_s20  ;;  %2781 = vmatprep.subr.bf16.mxu0 %v2957_v17 }
 0x386   : > { %2783 = vmatpush1.bf16.msra.mxu0 %v2782_v44 }
 0x387   : > { %2784 = vmatprep.subr.bf16.mxu0 %v2957_v17 }
 0x38a   : > { %2786 = vmatpush1.bf16.msra.mxu0 %v2785_v0 }
 0x38b   : > { %2787 = vmatprep.subr.bf16.mxu0 %v2957_v17 }
 0x38e   : > { %2789 = vmatpush1.bf16.msra.mxu0 %v2788_v4 }
 0x38f   : > { %2790 = vmatprep.subr.bf16.mxu0 %v2957_v17 }
 0x392   : > { %2792 = vmatpush1.bf16.msra.mxu0 %v2791_v41 }
 0x393   : > { %2793 = vmatprep.subr.bf16.mxu0 %v2957_v17 }
 0x3ef   : > { %v1733_v11 = vpop.permute.xlu1 %1732 }
 0x3f0   : > { %v1745_v62 = vsel %vm1228_vm4, %v1723_v23, %v1733_v11 }
 0x3f1   : > { %v1731_v13 = vpop.permute.xlu0 %1730 }
 0x3f2   : > { %v1744_v12 = vsel %vm1228_vm4, %v1722_v9, %v1731_v13 }
 0x3f3   : > { %v1741_v60 = vpop.permute.xlu1 %1740 }
 0x3f4   : > { %v1747_v21 = vsel %vm291_vm0, %v1745_v62, %v1741_v60  ;;  %v2794_v62 = vpack.c.bf16 %v2069_v37, %v2068_v8  ;;  %v2070_v60 = vld [vmem:[%s3893_s4 + $0x90] sm:$0xff] }
 0x3f5   : > { %v1739_v59 = vpop.permute.xlu0 %1738 }
 0x3f6   : > { %v1746_v53 = vsel %vm291_vm0, %v1744_v12, %v1739_v59  ;;  %v2071_v12 = vld [vmem:[%s3893_s4 + $0x98] sm:$0xff]  ;;  %2795 = vmatpush1.bf16.msra.mxu0 %v2794_v62 }
 0x3f7   : > { %2695 = vmatprep.mubr.msk.f32.mxu1 %vm1760_vm10, %v1746_v53  ;;  %v2797_v59 = vpack.c.bf16 %v2071_v12, %v2070_v60  ;;  %2796 = vmatprep.subr.bf16.mxu0 %v2957_v17  ;;  %v2072_v53 = vld [vmem:[%s3893_s4 + $0xa0] sm:$0xff] }
 0x3f8   : > { %2696 = vmatmul.mubr.msk.f32.vlgmr.msra.gmra.mrb[4].mxu1 %vm1760_vm10, %v1747_v21  ;;  %v2800_v22 = vpack.c.bf16 %v2073_v16, %v2072_v53 }
 0x3fa   : > { %2798 = vmatpush1.bf16.msra.mxu0 %v2797_v59 }
 0x3fb   : > { %2799 = vmatprep.subr.bf16.mxu0 %v2957_v17 }
 0x3fe   : > { %2801 = vmatpush1.bf16.msra.mxu0 %v2800_v22 }
 0x3ff   : > { %2802 = vmatprep.subr.bf16.mxu0 %v2957_v17 }
 0x402   : > { %2804 = vmatpush1.bf16.msra.mxu0 %v2803_v26 }
 0x403   : > { %2841 = vmatprep.subr.bf16.mxu0 %v2957_v17 }
 0x4cb   : > { %v3652_v32 = vpop.f32.mrb[4].mxu1 }
 0x4cc   : > { %v1843_v33 = vsel %vm291_vm0, %v3652_v32, 0.0  ;;  %v1853_v55 = vmul.f32 %v3652_v32, %v3652_v32  ;;  %v3658_v25 = vpop.f32.mrb[5].mxu1 }
 0x4cd   : > { %v1842_v7 = vsel %vm291_vm0, %v3658_v25, 0.0  ;;  %v1852_v51 = vmul.f32 %v3658_v25, %v3658_v25 }
 0x4ce   : > { %v1855_v57 = vsel %vm291_vm0, %v1853_v55, 0.0  ;;  %v1844_v46 = vadd.f32 %v1843_v33, %v1842_v7 }
 0x4cf   : > { %v1854_v6 = vsel %vm291_vm0, %v1852_v51, 0.0 }
 0x4d0   : > { %v1845_v43 = vrot.slane %v1844_v46, 4  ;;  %v1856_v52 = vadd.f32 %v1855_v57, %v1854_v6 }
 0x4d2   : > { %v1846_v50 = vadd.f32 %v1845_v43, %v1844_v46  ;;  %v1857_v3 = vrot.slane %v1856_v52, 4 }
 0x4d4   : > { %v1847_v56 = vrot.slane %v1846_v50, 2  ;;  %v1858_v5 = vadd.f32 %v1857_v3, %v1856_v52 }
 0x4d6   : > { %v1848_v61 = vadd.f32 %v1847_v56, %v1846_v50  ;;  %v1859_v20 = vrot.slane %v1858_v5, 2 }
 0x4d8   : > { %v1849_v31 = vrot.slane %v1848_v61, 1  ;;  %v1860_v47 = vadd.f32 %v1859_v20, %v1858_v5 }
 0x4da   : > { %v1850_v30 = vadd.f32 %v1849_v31, %v1848_v61  ;;  %v1861_v63 = vrot.slane %v1860_v47, 1 }
 0x4dc   : > { %v1851_v19 = vmul.f32 0.0625, %v1850_v30  ;;  %v1862_v1 = vadd.f32 %v1861_v63, %v1860_v47 }
 0x4de   : > { %v1863_v10 = vmul.f32 0.0625, %v1862_v1  ;;  %v1864_v11 = vmul.f32 %v1851_v19, %v1851_v19  ;;  %v1866_v13 = vsub.f32 %v3658_v25, %v1851_v19  ;;  %v1867_v23 = vsub.f32 %v3652_v32, %v1851_v19 }
 0x4e0   : > { %v1865_v9 = vsub.f32 %v1863_v10, %v1864_v11 }
 0x4e2   : > { %v1868_v21 = vadd.f32 1e-05, %v1865_v9 }
 0x4e4   : > { %2921 = vrsqrt.f32 %v1868_v21 }
 0x4ee   : > { %v2922_v34 = vpop.eup %2921 }
 0x4ef   : > { %v1870_v45 = vmul.f32 %v2922_v34, %v1866_v13  ;;  %v1871_v18 = vmul.f32 %v2922_v34, %v1867_v23 }
 0x4f1   : > { %v1874_v2 = vmul.f32 0.70710677, %v1870_v45  ;;  %v1875_v39 = vmul.f32 0.70710677, %v1871_v18  ;;  %v1872_v23 = vmul.f32 0.5, %v1870_v45  ;;  %v1873_v9 = vmul.f32 0.5, %v1871_v18 }
 0x4f3   : > { %v1880_v24 = vand.u32 2147483647, %v1874_v2  ;;  %v1881_v32 = vand.u32 2147483647, %v1875_v39  ;;  %vm1876_vm4 = vcmp.ge.f32.partialorder %v1874_v2, 0.0  ;;  %vm1877_vm5 = vcmp.ge.f32.partialorder %v1875_v39, 0.0 }
 0x4f4   : > { %v1878_v8 = vsel %vm1876_vm4, 1.0, %v2952_v15  ;;  %v1879_v10 = vsel %vm1877_vm5, 1.0, %v2952_v15 }
 0x4f5   : > { %v1882_v36 = vmul.f32 0.3275911, %v1880_v24  ;;  %v1883_v33 = vmul.f32 0.3275911, %v1881_v32  ;;  %v1906_v29 = vsub.f32 0.0, %v1880_v24  ;;  %v1907_v54 = vsub.f32 0.0, %v1881_v32 }
 0x4f7   : > { %v1884_v55 = vadd.f32 1.0, %v1882_v36  ;;  %v1885_v25 = vadd.f32 1.0, %v1883_v33  ;;  %v1908_v51 = vmul.f32 %v1906_v29, %v1880_v24  ;;  %v1909_v6 = vmul.f32 %v1907_v54, %v1881_v32 }
 0x4f9   : > { %2923 = vrcp.f32 %v1884_v55  ;;  %v1910_v49 = vmul.f32 1.442695, %v1908_v51  ;;  %v1912_v50 = vmul.f32 1.442695, %v1909_v6 }
 0x4fa   : > { %2925 = vrcp.f32 %v1885_v25 }
 0x4fb   : > { %2927 = vpow2.f32 %v1910_v49 }
 0x4fc   : > { %2929 = vpow2.f32 %v1912_v50 }
 0x503   : > { %v2924_v7 = vpop.eup %2923 }
 0x504   : > { %v2926_v57 = vpop.eup %2925  ;;  %v1888_v46 = vmul.f32 1.0614054, %v2924_v7 }
 0x505   : > { %v1889_v44 = vmul.f32 1.0614054, %v2926_v57  ;;  %v2928_v48 = vpop.eup %2927 }
 0x506   : > { %v1890_v43 = vadd.f32 -1.4531521, %v1888_v46  ;;  %v2930_v63 = vpop.eup %2929 }
 0x507   : > { %v1891_v52 = vadd.f32 -1.4531521, %v1889_v44 }
 0x508   : > { %v1892_v35 = vmul.f32 %v2924_v7, %v1890_v43 }
 0x509   : > { %v1893_v3 = vmul.f32 %v2926_v57, %v1891_v52 }
 0x50a   : > { %v1894_v0 = vadd.f32 1.4214138, %v1892_v35 }
 0x50b   : > { %v1895_v56 = vadd.f32 1.4214138, %v1893_v3 }
 0x50c   : > { %v1896_v5 = vmul.f32 %v2924_v7, %v1894_v0 }
 0x50d   : > { %v1897_v27 = vmul.f32 %v2926_v57, %v1895_v56 }
 0x50e   : > { %v1898_v58 = vadd.f32 -0.28449672, %v1896_v5 }
 0x50f   : > { %v1899_v61 = vadd.f32 -0.28449672, %v1897_v27 }
 0x510   : > { %v1900_v20 = vmul.f32 %v2924_v7, %v1898_v58 }
 0x511   : > { %v1901_v4 = vmul.f32 %v2926_v57, %v1899_v61 }
 0x512   : > { %v1902_v31 = vadd.f32 0.2548296, %v1900_v20 }
 0x513   : > { %v1903_v47 = vadd.f32 0.2548296, %v1901_v4 }
 0x514   : > { %v1904_v40 = vmul.f32 %v2924_v7, %v1902_v31 }
 0x515   : > { %v1905_v30 = vmul.f32 %v2926_v57, %v1903_v47 }
 0x516   : > { %v1914_v41 = vmul.f32 %v2928_v48, %v1904_v40 }
 0x517   : > { %v1915_v19 = vmul.f32 %v2930_v63, %v1905_v30 }
 0x518   : > { %v1916_v1 = vsub.f32 1.0, %v1914_v41 }
 0x519   : > { %v1917_v37 = vsub.f32 1.0, %v1915_v19 }
 0x51a   : > { %v1918_v11 = vmul.f32 %v1916_v1, %v1878_v8 }
 0x51b   : > { %v1919_v13 = vmul.f32 %v1917_v37, %v1879_v10 }
 0x51c   : > { %v1920_v62 = vadd.f32 1.0, %v1918_v11 }
 0x51d   : > { %v1921_v60 = vadd.f32 1.0, %v1919_v13 }
 0x51e   : > { %v1922_v12 = vmul.f32 %v1920_v62, %v1872_v23 }
 0x51f   : > { %v1923_v21 = vmul.f32 %v1921_v60, %v1873_v9 }
 0x520   : > { %v1926_v59 = vcombine.high %v1922_v12, %v1922_v12  ;;  %v1933_v53 = vrot.slane %v1922_v12, %v3121_v28 }
 0x521   : > { %v1943_v16 = vcombine.high %v1923_v21, %v1923_v21  ;;  %v1950_v22 = vrot.slane %v1923_v21, %v3121_v28 }
 0x522   : > { %v1940_v14 = vrot.slane %v1926_v59, %v3121_v28  ;;  %v1941_v42 = vcombine.high %v1933_v53, %v1933_v53  ;;  %v1969_v26 = vsel %vm1968_vm1, %v1933_v53, -inf }
 0x523   : > { %v1957_v34 = vrot.slane %v1943_v16, %v3121_v28  ;;  %v1958_v45 = vcombine.high %v1950_v22, %v1950_v22  ;;  %v1970_v2 = vrot.slane %v1969_v26, 4  ;;  %v1997_v18 = vsel %vm1968_vm1, %v1950_v22, -inf }
 0x524   : > { %v1942_v39 = vcombine.high %v1940_v14, %v1940_v14  ;;  %v1976_v24 = vsel %vm1968_vm1, %v1941_v42, -inf  ;;  %v1983_v32 = vsel %vm1968_vm1, %v1940_v14, -inf  ;;  %v1998_v36 = vrot.slane %v1997_v18, 4 }
 0x525   : > { %v1959_v33 = vcombine.high %v1957_v34, %v1957_v34  ;;  %v1971_v55 = vmax.f32 %v1969_v26, %v1970_v2  ;;  %v1977_v25 = vrot.slane %v1976_v24, 4  ;;  %v1984_v29 = vrot.slane %v1983_v32, 4 }
 0x526   : > { %v1990_v54 = vsel %vm1968_vm1, %v1942_v39, -inf  ;;  %v1999_v7 = vmax.f32 %v1997_v18, %v1998_v36  ;;  %v2004_v51 = vsel %vm1968_vm1, %v1958_v45, -inf  ;;  %v2011_v57 = vsel %vm1968_vm1, %v1957_v34, -inf }
 0x527   : > { %v1972_v46 = vrot.slane %v1971_v55, 2  ;;  %v1978_v6 = vmax.f32 %v1976_v24, %v1977_v25  ;;  %v1985_v44 = vmax.f32 %v1983_v32, %v1984_v29  ;;  %v1991_v43 = vrot.slane %v1990_v54, 4  ;;  %v2266_v29 = vld [vmem:[%s3894_s5] sm:$0xff] }
 0x528   : > { %v2000_v52 = vrot.slane %v1999_v7, 2  ;;  %v2005_v49 = vrot.slane %v2004_v51, 4  ;;  %v2012_v35 = vrot.slane %v2011_v57, 4  ;;  %v2018_v50 = vsel %vm1968_vm1, %v1959_v33, -inf }
 0x529   : > { %v1973_v3 = vmax.f32 %v1971_v55, %v1972_v46  ;;  %v1979_v0 = vrot.slane %v1978_v6, 2  ;;  %v1986_v56 = vrot.slane %v1985_v44, 2  ;;  %v1992_v5 = vmax.f32 %v1990_v54, %v1991_v43  ;;  %v2267_v54 = vld [vmem:[%s3894_s5 + $0x8] sm:$0xff] }
 0x52a   : > { %v2001_v27 = vmax.f32 %v1999_v7, %v2000_v52  ;;  %v2006_v58 = vmax.f32 %v2004_v51, %v2005_v49  ;;  %v2013_v61 = vmax.f32 %v2011_v57, %v2012_v35  ;;  %v2019_v20 = vrot.slane %v2018_v50, 4  ;;  %v2268_v7 = vld [vmem:[%s3894_s5 + $0x10] sm:$0xff]  ;;  %v2269_v57 = vld [vmem:[%s3894_s5 + $0x18] sm:$0xff] }
 0x52b   : > { %v1974_v4 = vrot.slane %v1973_v3, 1  ;;  %v1980_v31 = vmax.f32 %v1978_v6, %v1979_v0  ;;  %v1987_v47 = vmax.f32 %v1985_v44, %v1986_v56  ;;  %v1993_v40 = vrot.slane %v1992_v5, 2  ;;  %v2270_v6 = vld [vmem:[%s3894_s5 + $0x20] sm:$0xff]  ;;  %v2271_v44 = vld [vmem:[%s3894_s5 + $0x28] sm:$0xff]  ;;  %v2272_v52 = vld [vmem:[%s3894_s5 + $0x30] sm:$0xff] }
 0x52c   : > { %v2007_v48 = vrot.slane %v2006_v58, 2  ;;  %v2014_v30 = vrot.slane %v2013_v61, 2  ;;  %v2020_v63 = vmax.f32 %v2018_v50, %v2019_v20  ;;  %v2002_v8 = vrot.slane %v2001_v27, 1  ;;  %v2273_v49 = vld [vmem:[%s3894_s5 + $0x38] sm:$0xff]  ;;  %v2274_v50 = vld [vmem:[%s3894_s5 + $0x40] sm:$0xff]  ;;  %v2276_v56 = vld [vmem:[%s3894_s5 + $0x50] sm:$0xff] }
 0x52d   : > { %v1981_v41 = vrot.slane %v1980_v31, 1  ;;  %v1988_v19 = vrot.slane %v1987_v47, 1  ;;  %v1994_v1 = vmax.f32 %v1992_v5, %v1993_v40  ;;  %v1975_v13 = vmax.f32 %v1973_v3, %v1974_v4  ;;  %v2275_v3 = vld [vmem:[%s3894_s5 + $0x48] sm:$0xff]  ;;  %v2277_v5 = vld [vmem:[%s3894_s5 + $0x58] sm:$0xff] }
 0x52e   : > { %v2008_v37 = vmax.f32 %v2006_v58, %v2007_v48  ;;  %v2015_v10 = vmax.f32 %v2013_v61, %v2014_v30  ;;  %v2021_v11 = vrot.slane %v2020_v63, 2  ;;  %v2003_v16 = vmax.f32 %v2001_v27, %v2002_v8  ;;  %v2279_v40 = vld [vmem:[%s3894_s5 + $0x68] sm:$0xff]  ;;  %v2280_v8 = vld [vmem:[%s3894_s5 + $0x70] sm:$0xff] }
 0x52f   : > { %v1982_v23 = vmax.f32 %v1980_v31, %v1981_v41  ;;  %v1989_v62 = vmax.f32 %v1987_v47, %v1988_v19  ;;  %v1995_v9 = vrot.slane %v1994_v1, 1  ;;  %v2806_v51 = vpack.c.bf16 %v2267_v54, %v2266_v29  ;;  %v2278_v47 = vld [vmem:[%s3894_s5 + $0x60] sm:$0xff] }
 0x530   : > { %v2009_v60 = vrot.slane %v2008_v37, 1  ;;  %v2016_v12 = vrot.slane %v2015_v10, 1  ;;  %v2022_v21 = vmax.f32 %v2020_v63, %v2021_v11  ;;  %v2809_v46 = vpack.c.bf16 %v2269_v57, %v2268_v7 }
 0x531   : > { %v1996_v59 = vmax.f32 %v1994_v1, %v1995_v9  ;;  %v2035_v53 = vsel %vm1137_vm11, %v1982_v23, %v1975_v13  ;;  %2807 = vmatpush1.bf16.msra.mxu1 %v2806_v51  ;;  %v2812_v43 = vpack.c.bf16 %v2271_v44, %v2270_v6  ;;  %v2815_v35 = vpack.c.bf16 %v2273_v49, %v2272_v52  ;;  %v2282_v9 = vld [vmem:[%s3894_s5 + $0x80] sm:$0xff] }
 0x532   : > { %v2023_v22 = vrot.slane %v2022_v21, 1  ;;  %v2036_v14 = vsel %vm1139_vm12, %v1989_v62, %v2035_v53  ;;  %v2010_v42 = vmax.f32 %v2008_v37, %v2009_v60  ;;  %v2017_v34 = vmax.f32 %v2015_v10, %v2016_v12  ;;  %2808 = vmatprep.subr.bf16.mxu1 %v2957_v17  ;;  %v2281_v37 = vld [vmem:[%s3894_s5 + $0x78] sm:$0xff]  ;;  %v2283_v60 = vld [vmem:[%s3894_s5 + $0x88] sm:$0xff] }
 0x533   : > { %v2037_v26 = vsel %vm1141_vm13, %v1996_v59, %v2036_v14  ;;  %v2818_v0 = vpack.c.bf16 %v2275_v3, %v2274_v50  ;;  %v2821_v4 = vpack.c.bf16 %v2277_v5, %v2276_v56  ;;  %v2824_v41 = vpack.c.bf16 %v2279_v40, %v2278_v47  ;;  %v2285_v14 = vld [vmem:[%s3894_s5 + $0x98] sm:$0xff] }
 0x534   : > { %v2038_v45 = vsel %vm1143_vm14, %v2003_v16, %v2037_v26  ;;  %v2024_v2 = vmax.f32 %v2022_v21, %v2023_v22  ;;  %v2827_v13 = vpack.c.bf16 %v2281_v37, %v2280_v8  ;;  %v2830_v59 = vpack.c.bf16 %v2283_v60, %v2282_v9  ;;  %v2284_v22 = vld [vmem:[%s3894_s5 + $0x90] sm:$0xff] }
 0x535   : > { %v2039_v18 = vsel %vm1145_vm15, %v2010_v42, %v2038_v45  ;;  %2810 = vmatpush1.bf16.msra.mxu1 %v2809_v46  ;;  %vm2256_vm15 = vcmask 519168  }
 0x536   : > { %v2040_v39 = vsel %vm1147_vm2, %v2017_v34, %v2039_v18  ;;  %2811 = vmatprep.subr.bf16.mxu1 %v2957_v17  ;;  %v2833_v34 = vpack.c.bf16 %v2285_v14, %v2284_v22  ;;  %v2287_v18 = vld [vmem:[%s3894_s5 + $0xa8] sm:$0xff] }
 0x537   : > { %v2041_v24 = vsel %vm1149_vm3, %v2024_v2, %v2040_v39  ;;  %v2286_v2 = vld [vmem:[%s3894_s5 + $0xa0] sm:$0xff] }
 0x538   : > { %2043 = vst.msk [vmem:[#allocation4 + $0x8] sm:$0xff] %vm291_vm0, %v2041_v24  ;;  %v2836_v24 = vpack.c.bf16 %v2287_v18, %v2286_v2 }
 0x539   : > { %2813 = vmatpush1.bf16.msra.mxu1 %v2812_v43 }
 0x53a   : > { %2814 = vmatprep.subr.bf16.mxu1 %v2957_v17 }
 0x53d   : > { %2816 = vmatpush1.bf16.msra.mxu1 %v2815_v35 }
 0x53e   : > { %2817 = vmatprep.subr.bf16.mxu1 %v2957_v17 }
 0x53f   : > { %v2046_v32 = vld [vmem:[#allocation4 + $0x9] sm:$0xff] }
 0x540   : > { %v2045_v36 = vld [vmem:[#allocation4 + $0x8] sm:$0xff]  ;;  %2570 = vmatprep.mubr.msk.f32.mxu0 %vm291_vm0, %v2046_v32  ;;  %v2288_v32 = vld [vmem:[%s3894_s5 + $0xb0] sm:$0xff] }
 0x541   : > { %2048 = vrot.lane.b32.xlu0 %v2045_v36, %s2956_s20  ;;  %v2044_v55 = vld [vmem:[#allocation4 + $0x7] sm:$0xff]  ;;  %2819 = vmatpush1.bf16.msra.mxu1 %v2818_v0 }
 0x542   : > { %2820 = vmatprep.subr.bf16.mxu1 %v2957_v17  ;;  %v2289_v36 = vld [vmem:[%s3894_s5 + $0xb8] sm:$0xff] }
 0x545   : > { %2822 = vmatpush1.bf16.msra.mxu1 %v2821_v4 }
 0x546   : > { %2823 = vmatprep.subr.bf16.mxu1 %v2957_v17 }
 0x549   : > { %2825 = vmatpush1.bf16.msra.mxu1 %v2824_v41 }
 0x54a   : > { %2826 = vmatprep.subr.bf16.mxu1 %v2957_v17 }
 0x54d   : > { %2828 = vmatpush1.bf16.msra.mxu1 %v2827_v13 }
 0x54e   : > { %2829 = vmatprep.subr.bf16.mxu1 %v2957_v17 }
 0x551   : > { %2831 = vmatpush1.bf16.msra.mxu1 %v2830_v59 }
 0x552   : > { %2832 = vmatprep.subr.bf16.mxu1 %v2957_v17 }
 0x555   : > { %2834 = vmatpush1.bf16.msra.mxu1 %v2833_v34 }
 0x556   : > { %2835 = vmatprep.subr.bf16.mxu1 %v2957_v17 }
 0x559   : > { %2837 = vmatpush1.bf16.msra.mxu1 %v2836_v24 }
 0x55a   : > { %2838 = vmatprep.subr.bf16.mxu1 %v2957_v17 }
 0x5b3   : > { %v2049_v33 = vpop.permute.xlu0 %2048 }
 0x5b4   : > { %v2051_v25 = vsel %vm291_vm0, %v2044_v55, %v2049_v33  ;;  %v2839_v33 = vpack.c.bf16 %v2289_v36, %v2288_v32 }
 0x5b5   : > { %2144 = vmatmul.mubr.f32.vlgmr.msra.gmra.mrb[8].mxu0 %v2051_v25 }
 0x5b6   : > { %2840 = vmatpush1.bf16.msra.mxu1 %v2839_v33 }
 0x688   : > { %v2145_v27 = vpop.f32.mrb[8].mxu0 }
 0x689   : > { %v2149_v58 = vsel %vm291_vm0, %v2145_v27, 0.0  ;;  %v2157_v61 = vmul.f32 %v2145_v27, %v2145_v27  ;;  %v2147_v20 = vpop.f32.mrb[9].mxu0 }
 0x68a   : > { %v2150_v31 = vrot.slane %v2149_v58, 4 }
 0x68b   : > { %v2158_v48 = vsel %vm291_vm0, %v2157_v61, 0.0 }
 0x68c   : > { %v2151_v30 = vadd.f32 %v2150_v31, %v2149_v58  ;;  %v2159_v63 = vrot.slane %v2158_v48, 4 }
 0x68e   : > { %v2152_v19 = vrot.slane %v2151_v30, 2  ;;  %v2160_v1 = vadd.f32 %v2159_v63, %v2158_v48 }
 0x690   : > { %v2153_v10 = vadd.f32 %v2152_v19, %v2151_v30  ;;  %v2161_v11 = vrot.slane %v2160_v1, 2 }
 0x692   : > { %v2154_v23 = vrot.slane %v2153_v10, 1  ;;  %v2162_v62 = vadd.f32 %v2161_v11, %v2160_v1 }
 0x694   : > { %v2155_v12 = vadd.f32 %v2154_v23, %v2153_v10  ;;  %v2163_v21 = vrot.slane %v2162_v62, 1 }
 0x696   : > { %v2156_v53 = vmul.f32 0.125, %v2155_v12  ;;  %v2164_v16 = vadd.f32 %v2163_v21, %v2162_v62 }
 0x698   : > { %v2165_v42 = vmul.f32 0.125, %v2164_v16  ;;  %v2166_v26 = vmul.f32 %v2156_v53, %v2156_v53  ;;  %v2168_v55 = vsub.f32 %v2145_v27, %v2156_v53 }
 0x69a   : > { %v2167_v45 = vsub.f32 %v2165_v42, %v2166_v26 }
 0x69c   : > { %v2169_v39 = vadd.f32 1e-05, %v2167_v45 }
 0x69e   : > { %2931 = vrsqrt.f32 %v2169_v39 }
 0x6a8   : > { %v2932_v25 = vpop.eup %2931 }
 0x6a9   : > { %v2171_v29 = vmul.f32 %v2932_v25, %v2168_v55 }
 0x6ab   : > { %v2173_v54 = vmul.f32 0.70710677, %v2171_v29  ;;  %v2172_v47 = vmul.f32 0.5, %v2171_v29 }
 0x6ad   : > { %v2176_v7 = vand.u32 2147483647, %v2173_v54  ;;  %vm2174_vm14 = vcmp.ge.f32.partialorder %v2173_v54, 0.0 }
 0x6ae   : > { %v2175_v4 = vsel %vm2174_vm14, 1.0, %v2952_v15 }
 0x6af   : > { %v2177_v51 = vmul.f32 0.3275911, %v2176_v7  ;;  %v2189_v46 = vsub.f32 0.0, %v2176_v7 }
 0x6b1   : > { %v2178_v57 = vadd.f32 1.0, %v2177_v51  ;;  %v2190_v44 = vmul.f32 %v2189_v46, %v2176_v7 }
 0x6b3   : > { %2933 = vrcp.f32 %v2178_v57  ;;  %v2191_v49 = vmul.f32 1.442695, %v2190_v44  ;;  %v2420_v44 = vld [vmem:[%s3895_s6 + $0x8] sm:$0xff] }
 0x6b5   : > { %2935 = vpow2.f32 %v2191_v49  ;;  %v2422_v49 = vld [vmem:[%s3895_s6 + $0x18] sm:$0xff] }
 0x6bd   : > { %v2934_v6 = vpop.eup %2933 }
 0x6be   : > { %v2180_v43 = vmul.f32 1.0614054, %v2934_v6 }
 0x6bf   : > { %v2936_v58 = vpop.eup %2935 }
 0x6c0   : > { %v2181_v52 = vadd.f32 -1.4531521, %v2180_v43 }
 0x6c2   : > { %v2182_v35 = vmul.f32 %v2934_v6, %v2181_v52  ;;  %v2421_v52 = vld [vmem:[%s3895_s6 + $0x10] sm:$0xff] }
 0x6c4   : > { %v2183_v50 = vadd.f32 1.4214138, %v2182_v35  ;;  %v2845_v35 = vpack.c.bf16 %v2422_v49, %v2421_v52 }
 0x6c6   : > { %v2184_v3 = vmul.f32 %v2934_v6, %v2183_v50  ;;  %v2423_v50 = vld [vmem:[%s3895_s6 + $0x20] sm:$0xff] }
 0x6c8   : > { %v2185_v0 = vadd.f32 -0.28449672, %v2184_v3  ;;  %v2424_v3 = vld [vmem:[%s3895_s6 + $0x28] sm:$0xff] }
 0x6ca   : > { %v2186_v56 = vmul.f32 %v2934_v6, %v2185_v0  ;;  %v2848_v0 = vpack.c.bf16 %v2424_v3, %v2423_v50 }
 0x6cc   : > { %v2187_v5 = vadd.f32 0.2548296, %v2186_v56  ;;  %v2425_v56 = vld [vmem:[%s3895_s6 + $0x30] sm:$0xff] }
 0x6ce   : > { %v2188_v27 = vmul.f32 %v2934_v6, %v2187_v5  ;;  %v2419_v6 = vld [vmem:[%s3895_s6] sm:$0xff]  ;;  %v2426_v5 = vld [vmem:[%s3895_s6 + $0x38] sm:$0xff] }
 0x6cf   : > { %v2842_v43 = vpack.c.bf16 %v2420_v44, %v2419_v6 }
 0x6d0   : > { %v2193_v61 = vmul.f32 %v2936_v58, %v2188_v27  ;;  %v2851_v27 = vpack.c.bf16 %v2426_v5, %v2425_v56 }
 0x6d1   : > { %2843 = vmatpush3.bf16.msra.mxu0 %v2842_v43 }
 0x6d2   : > { %v2194_v20 = vsub.f32 1.0, %v2193_v61  ;;  %2844 = vmatprep.subr.bf16.mxu0 %v2957_v17 }
 0x6d4   : > { %v2195_v31 = vmul.f32 %v2194_v20, %v2175_v4 }
 0x6d5   : > { %2846 = vmatpush3.bf16.msra.mxu0 %v2845_v35 }
 0x6d6   : > { %v2196_v40 = vadd.f32 1.0, %v2195_v31  ;;  %2847 = vmatprep.subr.bf16.mxu0 %v2957_v17 }
 0x6d8   : > { %v2197_v48 = vmul.f32 %v2196_v40, %v2172_v47 }
 0x6d9   : > { %2849 = vmatpush3.bf16.msra.mxu0 %v2848_v0 }
 0x6da   : > { %v2199_v30 = vcombine.high %v2197_v48, %v2197_v48  ;;  %v2206_v63 = vrot.slane %v2197_v48, %v3121_v28  ;;  %2850 = vmatprep.subr.bf16.mxu0 %v2957_v17 }
 0x6dc   : > { %v2213_v41 = vrot.slane %v2199_v30, %v3121_v28  ;;  %v2214_v19 = vcombine.high %v2206_v63, %v2206_v63  ;;  %v2220_v1 = vsel %vm1968_vm1, %v2206_v63, -inf }
 0x6dd   : > { %v2221_v8 = vrot.slane %v2220_v1, 4  ;;  %2852 = vmatpush3.bf16.msra.mxu0 %v2851_v27 }
 0x6de   : > { %v2215_v37 = vcombine.high %v2213_v41, %v2213_v41  ;;  %v2227_v10 = vsel %vm1968_vm1, %v2214_v19, -inf  ;;  %v2234_v11 = vsel %vm1968_vm1, %v2213_v41, -inf }
 0x6df   : > { %v2222_v13 = vmax.f32 %v2220_v1, %v2221_v8  ;;  %v2228_v23 = vrot.slane %v2227_v10, 4  ;;  %v2235_v62 = vrot.slane %v2234_v11, 4 }
 0x6e0   : > { %v2241_v9 = vsel %vm1968_vm1, %v2215_v37, -inf }
 0x6e1   : > { %v2223_v60 = vrot.slane %v2222_v13, 2  ;;  %v2229_v12 = vmax.f32 %v2227_v10, %v2228_v23  ;;  %v2236_v21 = vmax.f32 %v2234_v11, %v2235_v62  ;;  %v2242_v59 = vrot.slane %v2241_v9, 4 }
 0x6e3   : > { %v2224_v53 = vmax.f32 %v2222_v13, %v2223_v60  ;;  %v2230_v28 = vrot.slane %v2229_v12, 2  ;;  %v2237_v16 = vrot.slane %v2236_v21, 2  ;;  %v2243_v22 = vmax.f32 %v2241_v9, %v2242_v59 }
 0x6e5   : > { %v2225_v14 = vrot.slane %v2224_v53, 1  ;;  %v2231_v42 = vmax.f32 %v2229_v12, %v2230_v28  ;;  %v2238_v26 = vmax.f32 %v2236_v21, %v2237_v16  ;;  %v2244_v34 = vrot.slane %v2243_v22, 2 }
 0x6e7   : > { %v2232_v45 = vrot.slane %v2231_v42, 1  ;;  %v2239_v2 = vrot.slane %v2238_v26, 1  ;;  %v2245_v18 = vmax.f32 %v2243_v22, %v2244_v34  ;;  %v2226_v39 = vmax.f32 %v2224_v53, %v2225_v14 }
 0x6e9   : > { %v2233_v24 = vmax.f32 %v2231_v42, %v2232_v45  ;;  %v2240_v32 = vmax.f32 %v2238_v26, %v2239_v2  ;;  %v2246_v36 = vrot.slane %v2245_v18, 1 }
 0x6eb   : > { %v2247_v33 = vmax.f32 %v2245_v18, %v2246_v36  ;;  %v2252_v55 = vsel %vm1137_vm11, %v2233_v24, %v2226_v39  ;;  %vm2958_vm11 = vmmov 0  }
 0x6ec   : > { %v2253_v25 = vsel %vm1139_vm12, %v2240_v32, %v2252_v55  ;;  %2714 = vmatprep.mubr.msk.f32.mxu0 %vm2958_vm11, %v2953_v38 }
 0x6ed   : > { %v2254_v29 = vsel %vm1141_vm13, %v2247_v33, %v2253_v25  ;;  %vm2500_vm13 = vcmask 253952  }
 0x6ee   : > { %2257 = vst.msk [vmem:[#allocation5 + $0x8] sm:$0xf] %vm2256_vm15, %v2254_v29 }
 0x6f5   : > { %v2260_v54 = vld [vmem:[#allocation5 + $0xa] sm:$0x3]  ;;  %v2258_v57 = vld [vmem:[#allocation5 + $0x8] sm:$0x3] }
 0x6f6   : > { %v2259_v7 = vld [vmem:[#allocation5 + $0x9] sm:$0x3]  ;;  %2571 = vmatprep.mubr.msk.f32.mxu1 %vm291_vm0, %v2260_v54 }
 0x6f7   : > { %2262 = vrot.lane.b32.xlu1 %v2259_v7, %s2956_s20 }
 0x769   : > { %v2263_v51 = vpop.permute.xlu1 %2262 }
 0x76a   : > { %v2265_v46 = vsel %vm291_vm0, %v2258_v57, %v2263_v51 }
 0x76b   : > { %2358 = vmatmul.mubr.f32.vlgmr.msra.gmra.mrb[6].mxu1 %v2265_v46 }
 0x83e   : > { %v2359_v58 = vpop.f32.mrb[6].mxu1 }
 0x83f   : > { %v2363_v61 = vsel %vm1968_vm1, %v2359_v58, 0.0  ;;  %v2371_v20 = vmul.f32 %v2359_v58, %v2359_v58  ;;  %v2361_v4 = vpop.f32.mrb[7].mxu1 }
 0x840   : > { %v2364_v31 = vrot.slane %v2363_v61, 4 }
 0x841   : > { %v2372_v47 = vsel %vm1968_vm1, %v2371_v20, 0.0 }
 0x842   : > { %v2365_v40 = vadd.f32 %v2364_v31, %v2363_v61  ;;  %v2373_v48 = vrot.slane %v2372_v47, 4 }
 0x844   : > { %v2366_v30 = vrot.slane %v2365_v40, 2  ;;  %v2374_v63 = vadd.f32 %v2373_v48, %v2372_v47 }
 0x846   : > { %v2367_v41 = vadd.f32 %v2366_v30, %v2365_v40  ;;  %v2375_v19 = vrot.slane %v2374_v63, 2 }
 0x848   : > { %v2368_v38 = vrot.slane %v2367_v41, 1  ;;  %v2376_v1 = vadd.f32 %v2375_v19, %v2374_v63 }
 0x84a   : > { %v2369_v8 = vadd.f32 %v2368_v38, %v2367_v41  ;;  %v2377_v37 = vrot.slane %v2376_v1, 1 }
 0x84c   : > { %v2370_v17 = vmul.f32 0.5, %v2369_v8  ;;  %v2378_v10 = vadd.f32 %v2377_v37, %v2376_v1 }
 0x84e   : > { %v2379_v11 = vmul.f32 0.5, %v2378_v10  ;;  %v2380_v13 = vmul.f32 %v2370_v17, %v2370_v17  ;;  %v2382_v9 = vsub.f32 %v2359_v58, %v2370_v17 }
 0x850   : > { %v2381_v23 = vsub.f32 %v2379_v11, %v2380_v13 }
 0x852   : > { %v2383_v62 = vadd.f32 1e-05, %v2381_v23 }
 0x854   : > { %2937 = vrsqrt.f32 %v2383_v62 }
 0x85e   : > { %v2938_v60 = vpop.eup %2937 }
 0x85f   : > { %v2385_v12 = vmul.f32 %v2938_v60, %v2382_v9 }
 0x861   : > { %v2387_v21 = vmul.f32 0.70710677, %v2385_v12  ;;  %v2386_v7 = vmul.f32 0.5, %v2385_v12 }
 0x863   : > { %v2390_v59 = vand.u32 2147483647, %v2387_v21  ;;  %vm2388_vm12 = vcmp.ge.f32.partialorder %v2387_v21, 0.0 }
 0x864   : > { %v2389_v29 = vsel %vm2388_vm12, 1.0, %v2952_v15 }
 0x865   : > { %v2391_v53 = vmul.f32 0.3275911, %v2390_v59  ;;  %v2403_v16 = vsub.f32 0.0, %v2390_v59 }
 0x867   : > { %v2392_v28 = vadd.f32 1.0, %v2391_v53  ;;  %v2404_v14 = vmul.f32 %v2403_v16, %v2390_v59 }
 0x869   : > { %2939 = vrcp.f32 %v2392_v28  ;;  %v2405_v34 = vmul.f32 1.442695, %v2404_v14 }
 0x86b   : > { %2941 = vpow2.f32 %v2405_v34 }
 0x873   : > { %v2940_v22 = vpop.eup %2939 }
 0x874   : > { %v2394_v42 = vmul.f32 1.0614054, %v2940_v22 }
 0x875   : > { %v2942_v33 = vpop.eup %2941 }
 0x876   : > { %v2395_v26 = vadd.f32 -1.4531521, %v2394_v42 }
 0x878   : > { %v2396_v45 = vmul.f32 %v2940_v22, %v2395_v26 }
 0x87a   : > { %v2397_v2 = vadd.f32 1.4214138, %v2396_v45 }
 0x87c   : > { %v2398_v18 = vmul.f32 %v2940_v22, %v2397_v2 }
 0x87e   : > { %v2399_v39 = vadd.f32 -0.28449672, %v2398_v18 }
 0x880   : > { %v2400_v24 = vmul.f32 %v2940_v22, %v2399_v39 }
 0x882   : > { %v2401_v32 = vadd.f32 0.2548296, %v2400_v24 }
 0x884   : > { %v2402_v36 = vmul.f32 %v2940_v22, %v2401_v32 }
 0x886   : > { %v2407_v55 = vmul.f32 %v2942_v33, %v2402_v36 }
 0x888   : > { %v2408_v25 = vsub.f32 1.0, %v2407_v55 }
 0x88a   : > { %v2409_v54 = vmul.f32 %v2408_v25, %v2389_v29 }
 0x88c   : > { %v2410_v51 = vadd.f32 1.0, %v2409_v54 }
 0x88e   : > { %v2411_v57 = vmul.f32 %v2410_v51, %v2386_v7 }
 0x890   : > { %v2412_v46 = vsel %vm1968_vm1, %v2411_v57, -inf }
 0x891   : > { %v2413_v6 = vrot.slane %v2412_v46, 4 }
 0x893   : > { %v2414_v44 = vmax.f32 %v2412_v46, %v2413_v6 }
 0x895   : > { %v2415_v43 = vrot.slane %v2414_v44, 2 }
 0x897   : > { %v2416_v52 = vmax.f32 %v2414_v44, %v2415_v43 }
 0x899   : > { %v2417_v49 = vrot.slane %v2416_v52, 1 }
 0x89b   : > { %v2418_v35 = vmax.f32 %v2416_v52, %v2417_v49 }
 0x89d   : > { %2715 = vmatmul.mubr.msk.f32.vlgmr.msra.gmra.mrb[10].mxu0 %vm291_vm0, %v2418_v35 }
 0x970   : > { %v2496_v15 = vpop.f32.mrb[10].mxu0 }
 0x971   : > { %2501 = vst.msk [vmem:[%s274_s13] sm:$0x1] %vm2500_vm13, %v2496_v15  ;;  %v2716_v50 = vpop.f32.mrb[11].mxu0 }
 0x972 PF: > { %s17_s24 = sadd.s32 1, %s2949_s24  }
 0x973   : > { %p14_p4 = scmp.ge.s32.totalorder %s17_s24, 4  }
 0x975   :  { %16 = sbr.rel (!%p14_p4) target bundleno = 1 (0x1), region = 78 }

</bundles_post_ra>
